<compile_context>
chip_gen: v5e
topology: v5e:2x2
jax: 0.10.0
libtpu: 0.0.40
codegen_flags: <defaults>
</compile_context>

<pallas_src>
import functools

import jax
import jax.numpy as jnp
from jax.experimental import pallas as pl
from jax.experimental.pallas import tpu as pltpu


def _round_up(v, m):
    return -(-v // m) * m


def _num_tensorcores():
    """TensorCores reachable by one Pallas program via megacore grid sharding."""
    try:
        kind = (jax.devices()[0].device_kind or "").lower()
    except Exception:
        return 1
    return 2 if any(t in kind for t in ("v7", "v5p", "v4")) else 1


def _default_tile_b(B, G, sublane, ncores):
    if ncores >= 2 and G == 1:
        # 2-TC chips: keep >= 2 parallel batch cells so both cores get work.
        tb = _round_up(_round_up(B, 2) // 2, sublane)
    else:
        # single-TC chips: one big batch step amortizes the ~0.35us/grid-step
        # overhead (the dominant cost at these FLOP counts).
        tb = _round_up(B, sublane)
    return max(sublane, min(512, tb))


# ---------------------------------------------------------------------------
# Pallas kernel: one (batch tile, tree group) cell of the ODST forward.
# ---------------------------------------------------------------------------
def _odst_kernel(x_ref, sel_ref, e_ref, codes_ref, om2c_ref, w_ref, o_ref,
                 *, depth, tree_tile, leaf_cols, squeeze_out):
    # Feature selection with folded 1/temperature and folded -threshold (x has
    # a trailing constant-1 column): [TB, F+1] @ [F+1, D*Ng].
    fv = jnp.dot(x_ref[...], sel_ref[0],
                 preferred_element_type=jnp.float32)              # [TB, D*Ng]
    # sparsemoid of the (pre-scaled, pre-shifted) threshold logits
    s = jnp.clip(0.5 * fv + 0.5, 0.0, 1.0)                        # [TB, D*Ng]

    e = e_ref[...]                                                # [Ng, Ng*C]
    # Per-depth expansion + bin-match factor folded into the leaf product:
    # never materializes the full [TB, D*Ng*C] factor tensor.
    rw = None
    for d in range(depth):                                        # D small, unrolled
        s_d = s[:, d * tree_tile:(d + 1) * tree_tile]             # [TB, Ng]
        se_d = jnp.dot(s_d.astype(e.dtype), e,
                       preferred_element_type=jnp.float32)        # [TB, Ng*C]
        lo, hi = d * leaf_cols, (d + 1) * leaf_cols
        f_d = codes_ref[:, lo:hi] + se_d * om2c_ref[:, lo:hi]     # code + s*(1-2*code)
        rw = f_d if rw is None else rw * f_d                      # [TB, Ng*C]

    # Per-group response contraction: [TB, Ng*C] @ [Ng*C, Ng*K]
    out = jnp.dot(rw.astype(w_ref.dtype), w_ref[0],
                  preferred_element_type=jnp.float32).astype(o_ref.dtype)
    if squeeze_out:
        o_ref[0] = out          # grouped fallback layout [1, TB, Ng*K]
    else:
        o_ref[...] = out        # direct final layout     [TB, Ng*K]


# ---------------------------------------------------------------------------
# Wrapper
# ---------------------------------------------------------------------------
def odst_forward(x, params, *, depth, tile_b=None):
    sel3, e_g, codes, om2c, w3 = params
    B, F = x.shape
    G, Faug, DNg = sel3.shape
    assert Faug == F + 1, (Faug, F)
    Ng = DNg // depth
    NgC, NgK = w3.shape[1], w3.shape[2]
    DNgC = codes.shape[1]

    md = sel3.dtype
    sublane = 16 if md == jnp.bfloat16 else 8        # packed bf16 rows

    if tile_b is None:
        tile_b = _default_tile_b(B, G, sublane, _num_tensorcores())
    tile_b = max(sublane, _round_up(tile_b, sublane))
    tile_b = min(tile_b, _round_up(B, sublane))

    bp = _round_up(B, tile_b)
    # fold the threshold subtraction into the selector matmul: append a
    # constant-1 column to x (sel3 carries the -thr*exp(-log_temp) row).
    xk = jnp.concatenate([x, jnp.ones((B, 1), x.dtype)], axis=1).astype(md)
    if bp != B:                                      # robust to any batch size
        xk = jnp.pad(xk, ((0, bp - B), (0, 0)))

    # direct final layout whenever the per-group output block is legal:
    # lane width equals the full output width (G == 1) or a multiple of 128.
    direct = (G == 1) or (NgK % 128 == 0)
    kernel = functools.partial(_odst_kernel, depth=depth, tree_tile=Ng,
                               leaf_cols=NgC, squeeze_out=not direct)

    in_specs = [
        pl.BlockSpec((tile_b, F + 1), lambda i, g: (i, 0)),       # x (+ ones col)
        pl.BlockSpec((1, F + 1, DNg), lambda i, g: (g, 0, 0)),    # selectors (scaled, +thr row)
        pl.BlockSpec((Ng, NgC), lambda i, g: (0, 0)),             # per-depth expansion E
        pl.BlockSpec((1, DNgC), lambda i, g: (0, 0)),             # codes
        pl.BlockSpec((1, DNgC), lambda i, g: (0, 0)),             # 1 - 2*codes
        pl.BlockSpec((1, NgC, NgK), lambda i, g: (g, 0, 0)),      # response block
    ]
    grid = (bp // tile_b, G)
    cp = pltpu.CompilerParams(dimension_semantics=("parallel", "parallel"))

    if direct:
        out = pl.pallas_call(
            kernel,
            out_shape=jax.ShapeDtypeStruct((bp, G * NgK), jnp.float32),
            grid_spec=pltpu.PrefetchScalarGridSpec(
                num_scalar_prefetch=0, grid=grid,
                in_specs=in_specs,
                out_specs=pl.BlockSpec((tile_b, NgK), lambda i, g: (i, g))),
            compiler_params=cp,
        )(xk, sel3, e_g, codes, om2c, w3)
        return out[:B]

    # Grouped fallback (Ng*K neither full-width nor a 128-multiple): costs one
    # wrapper-side transpose over the output.
    out3 = pl.pallas_call(
        kernel,
        out_shape=jax.ShapeDtypeStruct((G, bp, NgK), jnp.float32),
        grid_spec=pltpu.PrefetchScalarGridSpec(
            num_scalar_prefetch=0, grid=grid,
            in_specs=in_specs,
            out_specs=pl.BlockSpec((1, tile_b, NgK), lambda i, g: (g, i, 0))),
        compiler_params=cp,
    )(xk, sel3, e_g, codes, om2c, w3)
    out = jnp.transpose(out3, (1, 0, 2)).reshape(bp, G * NgK)
    return out[:B]


# ---------------------------------------------------------------------------
# Plain-JAX glue: parameter preprocessing (one-time, tiny).
# ---------------------------------------------------------------------------
def prepare_odst_params(response, selectors, thresholds, log_temps, bin_codes,
                        *, tree_tile=None, matmul_dtype=jnp.float32):
    """Flatten ODST parameters into the lane-friendly per-group layouts."""
    F, N, D = selectors.shape
    _, K, C = response.shape
    if tree_tile is None:
        tree_tile = N                                   # one group -> direct layout
    assert N % tree_tile == 0, "num_trees must be divisible by tree_tile"
    G, Ng = N // tree_tile, tree_tile

    inv_t = jnp.exp(-log_temps)                         # [N, D]
    sel = selectors * inv_t[None]                       # fold temperature
    thr = -(thresholds * inv_t)                         # folded as extra "feature"
    sel_aug = jnp.concatenate([sel, thr[None]], axis=0)           # [F+1, N, D]
    sel3 = sel_aug.reshape(F + 1, G, Ng, D).transpose(1, 0, 3, 2) \
                  .reshape(G, F + 1, D * Ng)            # depth-major lanes

    # per-depth expansion: repeat each of the Ng tree columns C times
    e_g = jnp.kron(jnp.eye(Ng, dtype=jnp.float32),
                   jnp.ones((1, C), jnp.float32))       # [Ng, Ng*C]

    codes = jnp.broadcast_to(bin_codes[:, None, :], (D, Ng, C)) \
               .reshape(1, D * Ng * C).astype(jnp.float32)
    om2c = 1.0 - 2.0 * codes

    blocks = jnp.transpose(response, (0, 2, 1)).reshape(G, Ng, C, K)   # [G,Ng,C,K]
    w3 = (jnp.eye(Ng, dtype=jnp.float32)[None, :, None, :, None]
          * blocks[:, :, :, None, :]).reshape(G, Ng * C, Ng * K)

    md = matmul_dtype
    return (sel3.astype(md), e_g.astype(md), codes, om2c, w3.astype(md))


# ---------------------------------------------------------------------------
# Plain-JAX glue: sparsemax over the (parameter-only) feature-selection logits,
# and a pure-JAX reference implementation for validation.
# ---------------------------------------------------------------------------
def sparsemax_jax(z, axis=0):
    z = z - jnp.max(z, axis=axis, keepdims=True)
    z_srt = -jnp.sort(-z, axis=axis)                    # descending sort
    k = z.shape[axis]
    view = [1] * z.ndim
    view[axis] = k
    rho = jnp.arange(1, k + 1, dtype=z.dtype).reshape(view)
    z_cumsum = jnp.cumsum(z_srt, axis=axis) - 1.0
    support = rho * z_srt > z_cumsum
    support_size = jnp.sum(support.astype(jnp.int32), axis=axis, keepdims=True)
    tau = jnp.take_along_axis(z_cumsum, support_size - 1, axis=axis)
    tau = tau / support_size.astype(z.dtype)
    return jnp.maximum(z - tau, 0.0)


def odst_ref(x, response, selectors, thresholds, log_temps, bin_codes):
    fv = jnp.einsum('bi,ind->bnd', x, selectors)
    tl = (fv - thresholds) * jnp.exp(-log_temps)
    tl2 = jnp.stack([-tl, tl], axis=-1)
    bins = jnp.clip(0.5 * tl2 + 0.5, 0.0, 1.0)
    codes_1hot = jnp.stack([bin_codes, 1.0 - bin_codes], axis=-1)   # [D, C, 2]
    bm = jnp.einsum('btds,dcs->btdc', bins, codes_1hot)
    rw = jnp.prod(bm, axis=-2)
    resp = jnp.einsum('bnd,ncd->bnc', rw, response)
    return resp.reshape(x.shape[0], -1)


# ---------------------------------------------------------------------------
# Main
# ---------------------------------------------------------------------------
if __name__ == "__main__":
    B, F, N, D, K = 256, 32, 16, 4, 2          # batch, in_features, trees, depth, tree_dim
    C = 2 ** D                                 # leaves per tree

    key = jax.random.PRNGKey(0)
    kx, kr, ks, kt = jax.random.split(key, 4)

    x = jax.random.normal(kx, (B, F), jnp.float32)

    # Parameters (deterministic, matching __init__ shapes / initializers).
    response = jax.random.normal(kr, (N, K, C), jnp.float32)           # nn.init.normal_
    sel_logits = jax.random.uniform(ks, (F, N, D), jnp.float32)        # nn.init.uniform_
    # TODO(synk): the data-aware initialize() (host-side numpy percentile init of
    # thresholds / log-temperatures) is not translated; use deterministic values.
    thresholds = 0.1 * jax.random.normal(kt, (N, D), jnp.float32)
    log_temps = jnp.zeros((N, D), jnp.float32)

    # bin_codes construction (same as __init__, kept as plain float codes)
    idx = jnp.arange(C)
    off = 2 ** jnp.arange(D)
    bin_codes = ((idx[None, :] // off[:, None]) % 2).astype(jnp.float32)   # [D, C]

    # sparsemax over in_features axis (parameter-only preprocessing, plain JAX)
    selectors = sparsemax_jax(sel_logits, axis=0)                          # [F, N, D]

    ref = odst_ref(x, response, selectors, thresholds, log_temps, bin_codes)

    # --- f32 operands, default tree_tile (G=1 -> direct final-layout output)
    params_f32 = prepare_odst_params(response, selectors, thresholds, log_temps,
                                     bin_codes, matmul_dtype=jnp.float32)
    out_f32 = jax.block_until_ready(odst_forward(x, params_f32, depth=D))
    assert out_f32.shape == (B, N * K), out_f32.shape
    assert jnp.allclose(out_f32, ref, atol=1e-2, rtol=1e-2), \
        float(jnp.max(jnp.abs(out_f32 - ref)))

    # --- bf16 matmul operands (halved DMA bytes; f32 accumulation and f32
    #     element-wise math, so only a small precision hit).
    params_bf16 = prepare_odst_params(response, selectors, thresholds, log_temps,
                                      bin_codes, matmul_dtype=jnp.bfloat16)
    out_bf16 = jax.block_until_ready(odst_forward(x, params_bf16, depth=D))
    assert out_bf16.shape == (B, N * K), out_bf16.shape
    assert jnp.allclose(out_bf16, ref, atol=5e-2, rtol=5e-2), \
        float(jnp.max(jnp.abs(out_bf16 - ref)))

    # --- grouped fallback path (tree groups with narrow Ng*K): still correct.
    params_grp = prepare_odst_params(response, selectors, thresholds, log_temps,
                                     bin_codes, tree_tile=8,
                                     matmul_dtype=jnp.float32)
    out_grp = jax.block_until_ready(odst_forward(x, params_grp, depth=D))
    assert out_grp.shape == (B, N * K), out_grp.shape
    assert jnp.allclose(out_grp, ref, atol=1e-2, rtol=1e-2), \
        float(jnp.max(jnp.abs(out_grp - ref)))

    print("KERNEL_OK")
</pallas_src>

<mosaic_0001>
module attributes {stable_mosaic.version = 11 : i64} {
  func.func @_odst_kernel(%arg0: i32, %arg1: i32, %arg2: memref<256x33xf32, #tpu.memory_space<vmem>>, %arg3: memref<1x33x64xf32, #tpu.memory_space<vmem>>, %arg4: memref<16x256xf32, #tpu.memory_space<vmem>>, %arg5: memref<1x1024xf32, #tpu.memory_space<vmem>>, %arg6: memref<1x1024xf32, #tpu.memory_space<vmem>>, %arg7: memref<1x256x32xf32, #tpu.memory_space<vmem>>, %arg8: memref<256x32xf32, #tpu.memory_space<vmem>>) attributes {dimension_semantics = [#tpu.dimension_semantics<parallel>, #tpu.dimension_semantics<parallel>], iteration_bounds = array<i64: 1, 1>, scalar_prefetch = 0 : i64, scratch_operands = 0 : i64, tpu.core_type = #tpu.core_type<tc>, window_params = [{transform_indices = @transform_0, window_bounds = array<i64: 256, 33>}, {transform_indices = @transform_1, window_bounds = array<i64: 1, 33, 64>}, {pipeline_mode = #tpu.pipeline_mode<synchronous>, transform_indices = @transform_2, window_bounds = array<i64: 16, 256>}, {pipeline_mode = #tpu.pipeline_mode<synchronous>, transform_indices = @transform_3, window_bounds = array<i64: 1, 1024>}, {pipeline_mode = #tpu.pipeline_mode<synchronous>, transform_indices = @transform_4, window_bounds = array<i64: 1, 1024>}, {transform_indices = @transform_5, window_bounds = array<i64: 1, 256, 32>}, {transform_indices = @transform_6, window_bounds = array<i64: 256, 32>}]} {
    %c0 = arith.constant 0 : index
    %c0_0 = arith.constant 0 : index
    %0 = vector.load %arg2[%c0, %c0_0] : memref<256x33xf32, #tpu.memory_space<vmem>>, vector<256x33xf32>
    %c0_1 = arith.constant 0 : index
    %c0_2 = arith.constant 0 : index
    %c0_3 = arith.constant 0 : index
    %1 = vector.load %arg3[%c0_1, %c0_2, %c0_3] : memref<1x33x64xf32, #tpu.memory_space<vmem>>, vector<1x33x64xf32>
    %2 = vector.shape_cast %1 : vector<1x33x64xf32> to vector<33x64xf32>
    %cst = arith.constant dense<0.000000e+00> : vector<256x64xf32>
    %3 = tpu.matmul %0, %2, %cst {dimension_numbers = #tpu.dot_dimension_numbers<[1], [0], [0], [1], [0, 0, 1, 1], [], []>} : vector<256x33xf32>, vector<33x64xf32>, vector<256x64xf32> -> vector<256x64xf32>
    %cst_4 = arith.constant 5.000000e-01 : f32
    %4 = vector.broadcast %cst_4 : f32 to vector<256x64xf32>
    %5 = arith.mulf %4, %3 : vector<256x64xf32>
    %cst_5 = arith.constant 5.000000e-01 : f32
    %6 = vector.broadcast %cst_5 : f32 to vector<256x64xf32>
    %7 = arith.addf %5, %6 : vector<256x64xf32>
    %cst_6 = arith.constant 0.000000e+00 : f32
    %cst_7 = arith.constant 1.000000e+00 : f32
    %8 = vector.broadcast %cst_6 : f32 to vector<256x64xf32>
    %9 = arith.maximumf %8, %7 : vector<256x64xf32>
    %10 = vector.broadcast %cst_7 : f32 to vector<256x64xf32>
    %11 = arith.minimumf %10, %9 : vector<256x64xf32>
    %c0_8 = arith.constant 0 : index
    %c0_9 = arith.constant 0 : index
    %12 = vector.load %arg4[%c0_8, %c0_9] : memref<16x256xf32, #tpu.memory_space<vmem>>, vector<16x256xf32>
    %13 = vector.extract_strided_slice %11 {offsets = [0, 0], sizes = [256, 16], strides = [1, 1]} : vector<256x64xf32> to vector<256x16xf32>
    %cst_10 = arith.constant dense<0.000000e+00> : vector<256x256xf32>
    %14 = tpu.matmul %13, %12, %cst_10 {dimension_numbers = #tpu.dot_dimension_numbers<[1], [0], [0], [1], [0, 0, 1, 1], [], []>} : vector<256x16xf32>, vector<16x256xf32>, vector<256x256xf32> -> vector<256x256xf32>
    %c0_11 = arith.constant 0 : index
    %c0_12 = arith.constant 0 : index
    %15 = vector.load %arg5[%c0_11, %c0_12] : memref<1x1024xf32, #tpu.memory_space<vmem>>, vector<1x256xf32>
    %c0_13 = arith.constant 0 : index
    %c0_14 = arith.constant 0 : index
    %16 = vector.load %arg6[%c0_13, %c0_14] : memref<1x1024xf32, #tpu.memory_space<vmem>>, vector<1x256xf32>
    %17 = vector.broadcast %16 : vector<1x256xf32> to vector<256x256xf32>
    %18 = arith.mulf %14, %17 : vector<256x256xf32>
    %19 = vector.broadcast %15 : vector<1x256xf32> to vector<256x256xf32>
    %20 = arith.addf %19, %18 : vector<256x256xf32>
    %21 = vector.extract_strided_slice %11 {offsets = [0, 16], sizes = [256, 16], strides = [1, 1]} : vector<256x64xf32> to vector<256x16xf32>
    %cst_15 = arith.constant dense<0.000000e+00> : vector<256x256xf32>
    %22 = tpu.matmul %21, %12, %cst_15 {dimension_numbers = #tpu.dot_dimension_numbers<[1], [0], [0], [1], [0, 0, 1, 1], [], []>} : vector<256x16xf32>, vector<16x256xf32>, vector<256x256xf32> -> vector<256x256xf32>
    %c0_16 = arith.constant 0 : index
    %c256 = arith.constant 256 : index
    %23 = vector.load %arg5[%c0_16, %c256] : memref<1x1024xf32, #tpu.memory_space<vmem>>, vector<1x256xf32>
    %c0_17 = arith.constant 0 : index
    %c256_18 = arith.constant 256 : index
    %24 = vector.load %arg6[%c0_17, %c256_18] : memref<1x1024xf32, #tpu.memory_space<vmem>>, vector<1x256xf32>
    %25 = vector.broadcast %24 : vector<1x256xf32> to vector<256x256xf32>
    %26 = arith.mulf %22, %25 : vector<256x256xf32>
    %27 = vector.broadcast %23 : vector<1x256xf32> to vector<256x256xf32>
    %28 = arith.addf %27, %26 : vector<256x256xf32>
    %29 = arith.mulf %20, %28 : vector<256x256xf32>
    %30 = vector.extract_strided_slice %11 {offsets = [0, 32], sizes = [256, 16], strides = [1, 1]} : vector<256x64xf32> to vector<256x16xf32>
    %cst_19 = arith.constant dense<0.000000e+00> : vector<256x256xf32>
    %31 = tpu.matmul %30, %12, %cst_19 {dimension_numbers = #tpu.dot_dimension_numbers<[1], [0], [0], [1], [0, 0, 1, 1], [], []>} : vector<256x16xf32>, vector<16x256xf32>, vector<256x256xf32> -> vector<256x256xf32>
    %c0_20 = arith.constant 0 : index
    %c512 = arith.constant 512 : index
    %32 = vector.load %arg5[%c0_20, %c512] : memref<1x1024xf32, #tpu.memory_space<vmem>>, vector<1x256xf32>
    %c0_21 = arith.constant 0 : index
    %c512_22 = arith.constant 512 : index
    %33 = vector.load %arg6[%c0_21, %c512_22] : memref<1x1024xf32, #tpu.memory_space<vmem>>, vector<1x256xf32>
    %34 = vector.broadcast %33 : vector<1x256xf32> to vector<256x256xf32>
    %35 = arith.mulf %31, %34 : vector<256x256xf32>
    %36 = vector.broadcast %32 : vector<1x256xf32> to vector<256x256xf32>
    %37 = arith.addf %36, %35 : vector<256x256xf32>
    %38 = arith.mulf %29, %37 : vector<256x256xf32>
    %39 = vector.extract_strided_slice %11 {offsets = [0, 48], sizes = [256, 16], strides = [1, 1]} : vector<256x64xf32> to vector<256x16xf32>
    %cst_23 = arith.constant dense<0.000000e+00> : vector<256x256xf32>
    %40 = tpu.matmul %39, %12, %cst_23 {dimension_numbers = #tpu.dot_dimension_numbers<[1], [0], [0], [1], [0, 0, 1, 1], [], []>} : vector<256x16xf32>, vector<16x256xf32>, vector<256x256xf32> -> vector<256x256xf32>
    %c0_24 = arith.constant 0 : index
    %c768 = arith.constant 768 : index
    %41 = vector.load %arg5[%c0_24, %c768] : memref<1x1024xf32, #tpu.memory_space<vmem>>, vector<1x256xf32>
    %c0_25 = arith.constant 0 : index
    %c768_26 = arith.constant 768 : index
    %42 = vector.load %arg6[%c0_25, %c768_26] : memref<1x1024xf32, #tpu.memory_space<vmem>>, vector<1x256xf32>
    %43 = vector.broadcast %42 : vector<1x256xf32> to vector<256x256xf32>
    %44 = arith.mulf %40, %43 : vector<256x256xf32>
    %45 = vector.broadcast %41 : vector<1x256xf32> to vector<256x256xf32>
    %46 = arith.addf %45, %44 : vector<256x256xf32>
    %47 = arith.mulf %38, %46 : vector<256x256xf32>
    %c0_27 = arith.constant 0 : index
    %c0_28 = arith.constant 0 : index
    %c0_29 = arith.constant 0 : index
    %48 = vector.load %arg7[%c0_27, %c0_28, %c0_29] : memref<1x256x32xf32, #tpu.memory_space<vmem>>, vector<1x256x32xf32>
    %49 = vector.shape_cast %48 : vector<1x256x32xf32> to vector<256x32xf32>
    %cst_30 = arith.constant dense<0.000000e+00> : vector<256x32xf32>
    %50 = tpu.matmul %47, %49, %cst_30 {dimension_numbers = #tpu.dot_dimension_numbers<[1], [0], [0], [1], [0, 0, 1, 1], [], []>} : vector<256x256xf32>, vector<256x32xf32>, vector<256x32xf32> -> vector<256x32xf32>
    %c0_31 = arith.constant 0 : index
    %c0_32 = arith.constant 0 : index
    %51 = vector.load %arg8[%c0_31, %c0_32] : memref<256x32xf32, #tpu.memory_space<vmem>>, vector<256x32xf32>
    tpu.vector_store %arg8[%c0_31, %c0_32], %50 {strides = array<i32>} : memref<256x32xf32, #tpu.memory_space<vmem>>, vector<256x32xf32>,
    return
  }
  func.func @transform_0(%arg0: i32, %arg1: i32) -> (i32, i32) {
    %c0_i32 = arith.constant 0 : i32
    %c0_i32_0 = arith.constant 0 : i32
    return %arg0, %c0_i32 : i32, i32
  }
  func.func @transform_1(%arg0: i32, %arg1: i32) -> (i32, i32, i32) {
    %c0_i32 = arith.constant 0 : i32
    %c0_i32_0 = arith.constant 0 : i32
    %c0_i32_1 = arith.constant 0 : i32
    return %arg1, %c0_i32, %c0_i32_0 : i32, i32, i32
  }
  func.func @transform_2(%arg0: i32, %arg1: i32) -> (i32, i32) {
    %c0_i32 = arith.constant 0 : i32
    %c0_i32_0 = arith.constant 0 : i32
    %c0_i32_1 = arith.constant 0 : i32
    return %c0_i32, %c0_i32_0 : i32, i32
  }
  func.func @transform_3(%arg0: i32, %arg1: i32) -> (i32, i32) {
    %c0_i32 = arith.constant 0 : i32
    %c0_i32_0 = arith.constant 0 : i32
    %c0_i32_1 = arith.constant 0 : i32
    return %c0_i32, %c0_i32_0 : i32, i32
  }
  func.func @transform_4(%arg0: i32, %arg1: i32) -> (i32, i32) {
    %c0_i32 = arith.constant 0 : i32
    %c0_i32_0 = arith.constant 0 : i32
    %c0_i32_1 = arith.constant 0 : i32
    return %c0_i32, %c0_i32_0 : i32, i32
  }
  func.func @transform_5(%arg0: i32, %arg1: i32) -> (i32, i32, i32) {
    %c0_i32 = arith.constant 0 : i32
    %c0_i32_0 = arith.constant 0 : i32
    %c0_i32_1 = arith.constant 0 : i32
    return %arg1, %c0_i32, %c0_i32_0 : i32, i32, i32
  }
  func.func @transform_6(%arg0: i32, %arg1: i32) -> (i32, i32) {
    %c0_i32 = arith.constant 0 : i32
    return %arg0, %arg1 : i32, i32
  }
}

</mosaic_0001>

<bundles_post_ra>
// kernel: tpu_custom_call.1
= control target key start
LH: loop header
LB: loop body
LE: loop exit
PB: predicated region body
PF: predicated region fallthrough
CT: control target
= control target key end

     0   :  { %vm157_vm0 = vcmask 1040384   ;;  %vm60_vm1 = vcmask 269312   ;;  %vm406_vm2 = vcmask 130048   ;;  %s3136_s13 = smov 112   ;;  %s3138_s28 = smov 80   ;;  %vm2801_vm3 = vcmask 261120   ;;  %s5762_s1 = inlined_call_operand.vmem [shape: f32[1,33,64], index: 1, kind: input, shape index: {}]   ;;  %s5763_s0 = inlined_call_operand.vmem [shape: f32[256,33], index: 0, kind: input, shape index: {}]   ;;  %s5764_s2 = inlined_call_operand.vmem [shape: f32[16,256], index: 2, kind: input, shape index: {}]   ;;  %s5765_s5 = inlined_call_operand.vmem [shape: f32[1,256,32], index: 5, kind: input, shape index: {}]   ;;  %s5766_s4 = inlined_call_operand.vmem [shape: f32[1,1024], index: 4, kind: input, shape index: {}]   ;;  %s5767_s3 = inlined_call_operand.vmem [shape: f32[1,1024], index: 3, kind: input, shape index: {}]   ;;  %s5768_s6 = inlined_call_operand.vmem [shape: f32[256,32], index: 6, kind: output, shape index: {}]  }
   0x1   :  { %v59_v0 = vld [vmem:[%s5762_s1 + $0x20] sm:$0x1]  ;;  %v58_v1 = vld [vmem:[%s5762_s1 + $0x18] sm:$0xff]  ;;  %v57_v2 = vld [vmem:[%s5762_s1 + $0x10] sm:$0xff] }
   0x2   :  { %2838 = vmatpush.msk.msra.mxu0 %vm157_vm0, %v59_v0  ;;  %v56_v3 = vld [vmem:[%s5762_s1 + $0x8] sm:$0xff]  ;;  %v55_v4 = vld [vmem:[%s5762_s1] sm:$0xff]  ;;  %v25_v7 = vld [vmem:[%s5763_s0 + $0x10] sm:$0xff] }
   0x3   :  { %v23_v5 = vld [vmem:[%s5763_s0] sm:$0xff]  ;;  %v24_v6 = vld [vmem:[%s5763_s0 + $0x8] sm:$0xff]  ;;  %v26_v8 = vld [vmem:[%s5763_s0 + $0x18] sm:$0xff] }
   0x4   :  { %173 = vmatpush.msra.mxu0 %v58_v1  ;;  %v27_v9 = vld [vmem:[%s5763_s0 + $0x20] sm:$0xff]  ;;  %v28_v10 = vld [vmem:[%s5763_s0 + $0x28] sm:$0xff]  ;;  %v29_v11 = vld [vmem:[%s5763_s0 + $0x30] sm:$0xff] }
   0x5   :  { %v30_v12 = vld [vmem:[%s5763_s0 + $0x38] sm:$0xff]  ;;  %v31_v13 = vld [vmem:[%s5763_s0 + $0x40] sm:$0xff]  ;;  %v32_v14 = vld [vmem:[%s5763_s0 + $0x48] sm:$0xff] }
   0x6   :  { %174 = vmatpush.msra.mxu0 %v57_v2  ;;  %v33_v15 = vld [vmem:[%s5763_s0 + $0x50] sm:$0xff]  ;;  %v34_v16 = vld [vmem:[%s5763_s0 + $0x58] sm:$0xff]  ;;  %v35_v17 = vld [vmem:[%s5763_s0 + $0x60] sm:$0xff] }
   0x7   :  { %v36_v18 = vld [vmem:[%s5763_s0 + $0x68] sm:$0xff]  ;;  %v37_v19 = vld [vmem:[%s5763_s0 + $0x70] sm:$0xff]  ;;  %v38_v20 = vld [vmem:[%s5763_s0 + $0x78] sm:$0xff] }
   0x8   :  { %175 = vmatpush.msra.mxu0 %v56_v3  ;;  %v39_v22 = vld [vmem:[%s5763_s0 + $0x80] sm:$0xff]  ;;  %v40_v24 = vld [vmem:[%s5763_s0 + $0x88] sm:$0xff]  ;;  %v41_v26 = vld [vmem:[%s5763_s0 + $0x90] sm:$0xff] }
   0x9   :  { %v42_v28 = vld [vmem:[%s5763_s0 + $0x98] sm:$0xff]  ;;  %v3280_v29 = vld [vmem:[%s5764_s2 + $0x10] sm:$0xff]  ;;  %v3289_v31 = vld [vmem:[%s5764_s2] sm:$0xff] }
   0xa   :  { %176 = vmatpush.msra.mxu0 %v55_v4  ;;  %v405_v30 = vld [vmem:[%s5764_s2 + $0x18] sm:$0xff]  ;;  %3127 = vmatpush.msra.mxu1 %v3280_v29  ;;  %v403_v32 = vld [vmem:[%s5764_s2 + $0x8] sm:$0xff]  ;;  %v43_v34 = vld [vmem:[%s5763_s0 + $0xa0] sm:$0xff] }
   0xb   :  { %2839 = vmatmul.msk.f32.vlgmr.msra.gmra.mxu0 %vm60_vm1, %v23_v5  ;;  %3129 = vmatpush.msra.mxu2 %v405_v30  ;;  %v44_v36 = vld [vmem:[%s5763_s0 + $0xa8] sm:$0xff]  ;;  %v45_v38 = vld [vmem:[%s5763_s0 + $0xb0] sm:$0xff]  ;;  %v46_v40 = vld [vmem:[%s5763_s0 + $0xb8] sm:$0xff] }
   0xc   :  { %517 = vmatpush.msrb.mxu0 %v3280_v29  ;;  %3131 = vmatpush.msra.mxu3 %v3280_v29  ;;  %v47_v46 = vld [vmem:[%s5763_s0 + $0xc0] sm:$0xff]  ;;  %v48_v52 = vld [vmem:[%s5763_s0 + $0xc8] sm:$0xff]  ;;  %v49_v58 = vld [vmem:[%s5763_s0 + $0xd0] sm:$0xff] }
   0xd   :  { %3128 = vmatpush.msra.mxu1 %v3289_v31  ;;  %3130 = vmatpush.msra.mxu2 %v403_v32  ;;  %v50_v0 = vld [vmem:[%s5763_s0 + $0xd8] sm:$0xff] }
   0xe   :  { %518 = vmatpush.msrb.mxu0 %v3289_v31  ;;  %3132 = vmatpush.msra.mxu3 %v3289_v31 }
   0xf   :  { %1124 = vmatpush.msrb.mxu1 %v405_v30  ;;  %1569 = vmatpush.msrb.mxu2 %v3280_v29 }
  0x10   :  { %630 = vmatpush.msra.mxu0 %v405_v30  ;;  %1682 = vmatpush.msrb.mxu3 %v405_v30 }
  0x11   :  { %1125 = vmatpush.msrb.mxu1 %v403_v32  ;;  %1570 = vmatpush.msrb.mxu2 %v3289_v31 }
  0x12   :  { %631 = vmatpush.msra.mxu0 %v403_v32  ;;  %1683 = vmatpush.msrb.mxu3 %v403_v32 }
  0x13   :  { %2840 = vmatmul.msk.f32.gmra.mxu0 %vm60_vm1, %v24_v6  ;;  %v51_v6 = vld [vmem:[%s5763_s0 + $0xe0] sm:$0xff] }
  0x1b   :  { %2841 = vmatmul.msk.f32.gmra.mxu0 %vm60_vm1, %v25_v7 }
  0x23   :  { %2842 = vmatmul.msk.f32.gmra.mxu0 %vm60_vm1, %v26_v8 }
  0x2b   :  { %2843 = vmatmul.msk.f32.gmra.mxu0 %vm60_vm1, %v27_v9 }
  0x33   :  { %2844 = vmatmul.msk.f32.gmra.mxu0 %vm60_vm1, %v28_v10 }
  0x3b   :  { %2845 = vmatmul.msk.f32.gmra.mxu0 %vm60_vm1, %v29_v11 }
  0x43   :  { %2846 = vmatmul.msk.f32.gmra.mxu0 %vm60_vm1, %v30_v12  ;;  %v52_v12 = vld [vmem:[%s5763_s0 + $0xe8] sm:$0xff] }
  0x4b   :  { %2847 = vmatmul.msk.f32.gmra.mxu0 %vm60_vm1, %v31_v13 }
  0x53   :  { %2848 = vmatmul.msk.f32.gmra.mxu0 %vm60_vm1, %v32_v14 }
  0x5b   :  { %2849 = vmatmul.msk.f32.gmra.mxu0 %vm60_vm1, %v33_v15 }
  0x63   :  { %2850 = vmatmul.msk.f32.gmra.mxu0 %vm60_vm1, %v34_v16 }
  0x6b   :  { %2851 = vmatmul.msk.f32.gmra.mxu0 %vm60_vm1, %v35_v17 }
  0x73   :  { %2852 = vmatmul.msk.f32.gmra.mxu0 %vm60_vm1, %v36_v18 }
  0x7b   :  { %2853 = vmatmul.msk.f32.gmra.mxu0 %vm60_vm1, %v37_v19 }
  0x83   :  { %2854 = vmatmul.msk.f32.gmra.mxu0 %vm60_vm1, %v38_v20  ;;  %v53_v20 = vld [vmem:[%s5763_s0 + $0xf0] sm:$0xff] }
  0x88   :  { %v3253_v21 = vpop.f32.mrf.mxu0 }
  0x89   :  { %v274_v14 = vmul.f32 0.5, %v3253_v21 }
  0x8b   :  { %2855 = vmatmul.msk.f32.gmra.mxu0 %vm60_vm1, %v39_v22  ;;  %v306_v17 = vadd.f32 0.5, %v274_v14 }
  0x8d   :  { %v338_v21 = vmax.f32 %v306_v17, 0.0 }
  0x90   :  { %v3259_v23 = vpop.f32.mrf.mxu0 }
  0x93   :  { %2856 = vmatmul.msk.f32.gmra.mxu0 %vm60_vm1, %v40_v24 }
  0x98   :  { %v3265_v25 = vpop.f32.mrf.mxu0 }
  0x9b   :  { %2857 = vmatmul.msk.f32.gmra.mxu0 %vm60_vm1, %v41_v26 }
  0xa0   :  { %v3271_v27 = vpop.f32.mrf.mxu0 }
  0xa3   :  { %2858 = vmatmul.msk.f32.gmra.mxu0 %vm60_vm1, %v42_v28  ;;  %v3408_v28 = vmin.f32 %v338_v21, 1.0 }
  0xa8   :  { %v3296_v33 = vpop.f32.mrf.mxu0 }
  0xab   :  { %2859 = vmatmul.msk.f32.gmra.mxu0 %vm60_vm1, %v43_v34  ;;  %v54_v34 = vld [vmem:[%s5763_s0 + $0xf8] sm:$0xff]  ;;  %s3137_s0 = smov 96  }
  0xb0   :  { %v3307_v35 = vpop.f32.mrf.mxu0 }
  0xb3   :  { %2860 = vmatmul.msk.f32.gmra.mxu0 %vm60_vm1, %v44_v36 }
  0xb8   :  { %v3313_v37 = vpop.f32.mrf.mxu0 }
  0xbb   :  { %2861 = vmatmul.msk.f32.gmra.mxu0 %vm60_vm1, %v45_v38  ;;  %v275_v38 = vmul.f32 0.5, %v3259_v23  ;;  %v276_v23 = vmul.f32 0.5, %v3265_v25 }
  0xc0   :  { %v199_v39 = vpop.f32.mrf.mxu0 }
  0xc1   :  { %v281_v41 = vmul.f32 0.5, %v199_v39 }
  0xc3   :  { %v313_v42 = vadd.f32 0.5, %v281_v41  ;;  %2862 = vmatmul.msk.f32.gmra.mxu0 %vm60_vm1, %v46_v40  ;;  %v307_v41 = vadd.f32 0.5, %v275_v38 }
  0xc5   :  { %v345_v43 = vmax.f32 %v313_v42, 0.0 }
  0xc7   :  { %v3323_v44 = vmin.f32 %v345_v43, 1.0 }
  0xc8   :  { %v202_v45 = vpop.f32.mrf.mxu0 }
  0xc9   :  { %v282_v47 = vmul.f32 0.5, %v202_v45  ;;  %883 = vrot.lane.b32.xlu0 %v3323_v44, %s3136_s13  ;;  %2878 = vmatmul.msk.f32.vlgmr.msra.gmra.mxu1 %vm406_vm2, %v3323_v44 }
  0xca   :  { %2910 = vmatmul.msk.f32.vlgmr.msra.gmra.mxu2 %vm406_vm2, %v3323_v44  ;;  %2240 = vmatpush.msra.mxu1 %v405_v30 }
  0xcb   :  { %v314_v48 = vadd.f32 0.5, %v282_v47  ;;  %2863 = vmatmul.msk.f32.gmra.mxu0 %vm60_vm1, %v47_v46  ;;  %v339_v46 = vmax.f32 %v307_v41, 0.0 }
  0xcc   :  { %2241 = vmatpush.msra.mxu1 %v403_v32 }
  0xcd   :  { %v346_v49 = vmax.f32 %v314_v48, 0.0 }
  0xcf   :  { %v3335_v50 = vmin.f32 %v346_v49, 1.0  ;;  %v3438_v49 = vmin.f32 %v339_v46, 1.0 }
  0xd0   :  { %v205_v51 = vpop.f32.mrf.mxu0 }
  0xd1   :  { %v283_v53 = vmul.f32 0.5, %v205_v51  ;;  %885 = vrot.lane.b32.xlu0 %v3335_v50, %s3136_s13  ;;  %2879 = vmatmul.msk.f32.gmra.mxu1 %vm406_vm2, %v3335_v50  ;;  %v308_v51 = vadd.f32 0.5, %v276_v23 }
  0xd2   :  { %2911 = vmatmul.msk.f32.gmra.mxu2 %vm406_vm2, %v3335_v50 }
  0xd3   :  { %v315_v54 = vadd.f32 0.5, %v283_v53  ;;  %2864 = vmatmul.msk.f32.gmra.mxu0 %vm60_vm1, %v48_v52  ;;  %v340_v25 = vmax.f32 %v308_v51, 0.0 }
  0xd5   :  { %v347_v55 = vmax.f32 %v315_v54, 0.0 }
  0xd7   :  { %v3347_v56 = vmin.f32 %v347_v55, 1.0  ;;  %v277_v55 = vmul.f32 0.5, %v3271_v27 }
  0xd8   :  { %v208_v57 = vpop.f32.mrf.mxu0 }
  0xd9   :  { %v284_v59 = vmul.f32 0.5, %v208_v57  ;;  %887 = vrot.lane.b32.xlu1 %v3347_v56, %s3136_s13  ;;  %2880 = vmatmul.msk.f32.gmra.mxu1 %vm406_vm2, %v3347_v56 }
  0xda   :  { %2912 = vmatmul.msk.f32.gmra.mxu2 %vm406_vm2, %v3347_v56 }
  0xdb   :  { %v316_v60 = vadd.f32 0.5, %v284_v59  ;;  %2865 = vmatmul.msk.f32.gmra.mxu0 %vm60_vm1, %v49_v58  ;;  %v3453_v59 = vmin.f32 %v340_v25, 1.0 }
  0xdd   :  { %v348_v61 = vmax.f32 %v316_v60, 0.0  ;;  %v309_v60 = vadd.f32 0.5, %v277_v55 }
  0xdf   :  { %v3359_v62 = vmin.f32 %v348_v61, 1.0  ;;  %v341_v27 = vmax.f32 %v309_v60, 0.0 }
  0xe0   :  { %v211_v63 = vpop.f32.mrf.mxu0 }
  0xe1   :  { %v285_v1 = vmul.f32 0.5, %v211_v63  ;;  %889 = vrot.lane.b32.xlu1 %v3359_v62, %s3136_s13  ;;  %2881 = vmatmul.msk.f32.gmra.mxu1 %vm406_vm2, %v3359_v62 }
  0xe2   :  { %2913 = vmatmul.msk.f32.gmra.mxu2 %vm406_vm2, %v3359_v62 }
  0xe3   :  { %v317_v2 = vadd.f32 0.5, %v285_v1  ;;  %2866 = vmatmul.msk.f32.gmra.mxu0 %vm60_vm1, %v50_v0  ;;  %v278_v1 = vmul.f32 0.5, %v3296_v33 }
  0xe5   :  { %v349_v3 = vmax.f32 %v317_v2, 0.0 }
  0xe7   :  { %v3371_v4 = vmin.f32 %v349_v3, 1.0 }
  0xe8   :  { %v214_v5 = vpop.f32.mrf.mxu0 }
  0xe9   :  { %v286_v7 = vmul.f32 0.5, %v214_v5  ;;  %891 = vrot.lane.b32.xlu2 %v3371_v4, %s3136_s13  ;;  %2882 = vmatmul.msk.f32.gmra.mxu1 %vm406_vm2, %v3371_v4  ;;  %v3468_v5 = vmin.f32 %v341_v27, 1.0 }
  0xea   :  { %2914 = vmatmul.msk.f32.gmra.mxu2 %vm406_vm2, %v3371_v4 }
  0xeb   :  { %v318_v8 = vadd.f32 0.5, %v286_v7  ;;  %2867 = vmatmul.msk.f32.gmra.mxu0 %vm60_vm1, %v51_v6  ;;  %v310_v6 = vadd.f32 0.5, %v278_v1 }
  0xed   :  { %v350_v9 = vmax.f32 %v318_v8, 0.0  ;;  %v342_v33 = vmax.f32 %v310_v6, 0.0 }
  0xef   :  { %v3383_v10 = vmin.f32 %v350_v9, 1.0  ;;  %v3483_v14 = vmin.f32 %v342_v33, 1.0 }
  0xf0   :  { %v217_v11 = vpop.f32.mrf.mxu0 }
  0xf1   :  { %v287_v13 = vmul.f32 0.5, %v217_v11  ;;  %893 = vrot.lane.b32.xlu2 %v3383_v10, %s3136_s13  ;;  %2883 = vmatmul.msk.f32.gmra.mxu1 %vm406_vm2, %v3383_v10  ;;  %v279_v11 = vmul.f32 0.5, %v3307_v35 }
  0xf2   :  { %2915 = vmatmul.msk.f32.gmra.mxu2 %vm406_vm2, %v3383_v10 }
  0xf3   :  { %v319_v15 = vadd.f32 0.5, %v287_v13  ;;  %2868 = vmatmul.msk.f32.gmra.mxu0 %vm60_vm1, %v52_v12 }
  0xf5   :  { %v351_v16 = vmax.f32 %v319_v15, 0.0  ;;  %v311_v15 = vadd.f32 0.5, %v279_v11 }
  0xf7   :  { %v3396_v18 = vmin.f32 %v351_v16, 1.0  ;;  %v343_v35 = vmax.f32 %v311_v15, 0.0 }
  0xf8   :  { %v220_v19 = vpop.f32.mrf.mxu0 }
  0xf9   :  { %v288_v22 = vmul.f32 0.5, %v220_v19  ;;  %895 = vrot.lane.b32.xlu0 %v3396_v18, %s3136_s13  ;;  %2884 = vmatmul.msk.f32.gmra.mxu1 %vm406_vm2, %v3396_v18 }
  0xfa   :  { %2916 = vmatmul.msk.f32.gmra.mxu2 %vm406_vm2, %v3396_v18 }
  0xfb   :  { %v320_v24 = vadd.f32 0.5, %v288_v22  ;;  %2869 = vmatmul.msk.f32.gmra.mxu0 %vm60_vm1, %v53_v20  ;;  %v280_v20 = vmul.f32 0.5, %v3313_v37 }
  0xfd   :  { %v352_v26 = vmax.f32 %v320_v24, 0.0  ;;  %v3498_v24 = vmin.f32 %v343_v35, 1.0 }
  0xff   :  { %v3410_v30 = vmin.f32 %v352_v26, 1.0  ;;  %v312_v26 = vadd.f32 0.5, %v280_v20 }
 0x100   :  { %v223_v32 = vpop.f32.mrf.mxu0 }
 0x101   :  { %v289_v36 = vmul.f32 0.5, %v223_v32  ;;  %869 = vrot.lane.b32.xlu0 %v3408_v28, %s3136_s13  ;;  %897 = vrot.lane.b32.xlu1 %v3410_v30, %s3136_s13  ;;  %v344_v37 = vmax.f32 %v312_v26, 0.0 }
 0x102   :  { %2885 = vmatmul.msk.f32.gmra.mxu1 %vm406_vm2, %v3410_v30  ;;  %2917 = vmatmul.msk.f32.gmra.mxu2 %vm406_vm2, %v3410_v30 }
 0x103   :  { %v321_v39 = vadd.f32 0.5, %v289_v36  ;;  %2870 = vmatmul.msk.f32.gmra.mxu0 %vm60_vm1, %v54_v34 }
 0x105   :  { %v353_v40 = vmax.f32 %v321_v39, 0.0 }
 0x107   :  { %v3425_v42 = vmin.f32 %v353_v40, 1.0  ;;  %v3512_v40 = vmin.f32 %v344_v37, 1.0 }
 0x108   :  { %v226_v43 = vpop.f32.mrf.mxu0 }
 0x109   :  { %v290_v45 = vmul.f32 0.5, %v226_v43  ;;  %899 = vrot.lane.b32.xlu2 %v3425_v42, %s3136_s13 }
 0x10a   :  { %2886 = vmatmul.msk.f32.gmra.mxu1 %vm406_vm2, %v3425_v42  ;;  %2918 = vmatmul.msk.f32.gmra.mxu2 %vm406_vm2, %v3425_v42 }
 0x10b   :  { %v322_v47 = vadd.f32 0.5, %v290_v45  ;;  %2871 = vmatmul.msk.f32.vlgmr.msrb.gmra.mxu0 %vm406_vm2, %v3408_v28 }
 0x10c   :  { %1011 = vmatpush.msrb.mxu0 %v3280_v29 }
 0x10d   :  { %v354_v48 = vmax.f32 %v322_v47, 0.0 }
 0x10e   :  { %1012 = vmatpush.msrb.mxu0 %v3289_v31 }
 0x10f   :  { %v3440_v52 = vmin.f32 %v354_v48, 1.0 }
 0x110   :  { %v229_v53 = vpop.f32.mrf.mxu0 }
 0x111   :  { %v291_v54 = vmul.f32 0.5, %v229_v53  ;;  %871 = vrot.lane.b32.xlu2 %v3438_v49, %s3136_s13  ;;  %901 = vrot.lane.b32.xlu1 %v3440_v52, %s3136_s13 }
 0x112   :  { %2887 = vmatmul.msk.f32.gmra.mxu1 %vm406_vm2, %v3440_v52  ;;  %2919 = vmatmul.msk.f32.gmra.mxu2 %vm406_vm2, %v3440_v52 }
 0x113   :  { %v323_v57 = vadd.f32 0.5, %v291_v54  ;;  %2872 = vmatmul.msk.f32.gmra.mxu0 %vm406_vm2, %v3438_v49 }
 0x115   :  { %v355_v58 = vmax.f32 %v323_v57, 0.0 }
 0x117   :  { %v3455_v61 = vmin.f32 %v355_v58, 1.0 }
 0x118   :  { %v232_v63 = vpop.f32.mrf.mxu0 }
 0x119   :  { %v292_v0 = vmul.f32 0.5, %v232_v63  ;;  %873 = vrot.lane.b32.xlu1 %v3453_v59, %s3136_s13  ;;  %903 = vrot.lane.b32.xlu0 %v3455_v61, %s3136_s13 }
 0x11a   :  { %2888 = vmatmul.msk.f32.gmra.mxu1 %vm406_vm2, %v3455_v61  ;;  %2920 = vmatmul.msk.f32.gmra.mxu2 %vm406_vm2, %v3455_v61 }
 0x11b   :  { %v324_v2 = vadd.f32 0.5, %v292_v0  ;;  %2873 = vmatmul.msk.f32.gmra.mxu0 %vm406_vm2, %v3453_v59 }
 0x11d   :  { %v356_v3 = vmax.f32 %v324_v2, 0.0 }
 0x11f   :  { %v3470_v7 = vmin.f32 %v356_v3, 1.0 }
 0x120   :  { %v235_v8 = vpop.f32.mrf.mxu0 }
 0x121   :  { %v293_v9 = vmul.f32 0.5, %v235_v8  ;;  %875 = vrot.lane.b32.xlu0 %v3468_v5, %s3136_s13  ;;  %905 = vrot.lane.b32.xlu2 %v3470_v7, %s3136_s13 }
 0x122   :  { %2889 = vmatmul.msk.f32.gmra.mxu1 %vm406_vm2, %v3470_v7  ;;  %2921 = vmatmul.msk.f32.gmra.mxu2 %vm406_vm2, %v3470_v7 }
 0x123   :  { %v325_v12 = vadd.f32 0.5, %v293_v9  ;;  %2874 = vmatmul.msk.f32.gmra.mxu0 %vm406_vm2, %v3468_v5 }
 0x125   :  { %v357_v13 = vmax.f32 %v325_v12, 0.0 }
 0x127   :  { %v3485_v16 = vmin.f32 %v357_v13, 1.0 }
 0x128   :  { %v238_v17 = vpop.f32.mrf.mxu0 }
 0x129   :  { %v294_v19 = vmul.f32 0.5, %v238_v17  ;;  %877 = vrot.lane.b32.xlu2 %v3483_v14, %s3136_s13  ;;  %907 = vrot.lane.b32.xlu1 %v3485_v16, %s3136_s13 }
 0x12a   :  { %2890 = vmatmul.msk.f32.gmra.mxu1 %vm406_vm2, %v3485_v16  ;;  %2922 = vmatmul.msk.f32.gmra.mxu2 %vm406_vm2, %v3485_v16 }
 0x12b   :  { %v326_v22 = vadd.f32 0.5, %v294_v19  ;;  %2875 = vmatmul.msk.f32.gmra.mxu0 %vm406_vm2, %v3483_v14 }
 0x12d   :  { %v358_v21 = vmax.f32 %v326_v22, 0.0 }
 0x12f   :  { %v3500_v32 = vmin.f32 %v358_v21, 1.0 }
 0x130   :  { %v241_v34 = vpop.f32.mrf.mxu0 }
 0x131   :  { %v295_v36 = vmul.f32 0.5, %v241_v34  ;;  %879 = vrot.lane.b32.xlu1 %v3498_v24, %s3136_s13  ;;  %909 = vrot.lane.b32.xlu0 %v3500_v32, %s3136_s13 }
 0x132   :  { %2891 = vmatmul.msk.f32.gmra.mxu1 %vm406_vm2, %v3500_v32  ;;  %2923 = vmatmul.msk.f32.gmra.mxu2 %vm406_vm2, %v3500_v32 }
 0x133   :  { %v327_v38 = vadd.f32 0.5, %v295_v36  ;;  %2876 = vmatmul.msk.f32.gmra.mxu0 %vm406_vm2, %v3498_v24 }
 0x135   :  { %v359_v39 = vmax.f32 %v327_v38, 0.0 }
 0x137   :  { %v3514_v41 = vmin.f32 %v359_v39, 1.0 }
 0x138   :  { %v244_v43 = vpop.f32.mrf.mxu0 }
 0x139   :  { %v296_v45 = vmul.f32 0.5, %v244_v43  ;;  %881 = vrot.lane.b32.xlu0 %v3512_v40, %s3136_s13  ;;  %911 = vrot.lane.b32.xlu2 %v3514_v41, %s3136_s13 }
 0x13a   :  { %2892 = vmatmul.msk.f32.gmra.mxu1 %vm406_vm2, %v3514_v41  ;;  %2924 = vmatmul.msk.f32.gmra.mxu2 %vm406_vm2, %v3514_v41 }
 0x13b   :  { %v328_v46 = vadd.f32 0.5, %v296_v45  ;;  %v3524_v23 = vpop.permute.xlu0 %883  ;;  %2877 = vmatmul.msk.f32.gmra.mxu0 %vm406_vm2, %v3512_v40 }
 0x13c   :  { %2942 = vmatmul.msk.f32.vlgmr.msra.gmra.mxu3 %vm406_vm2, %v3524_v23 }
 0x13d   :  { %v360_v47 = vmax.f32 %v328_v46, 0.0 }
 0x13f   :  { %v3530_v48 = vmin.f32 %v360_v47, 1.0 }
 0x140   :  { %v247_v51 = vpop.f32.mrf.mxu0 }
 0x141   :  { %v297_v53 = vmul.f32 0.5, %v247_v51  ;;  %913 = vrot.lane.b32.xlu1 %v3530_v48, %s3136_s13 }
 0x142   :  { %2893 = vmatmul.msk.f32.gmra.mxu1 %vm406_vm2, %v3530_v48  ;;  %2925 = vmatmul.msk.f32.gmra.mxu2 %vm406_vm2, %v3530_v48 }
 0x143   :  { %v329_v54 = vadd.f32 0.5, %v297_v53  ;;  %v3538_v25 = vpop.permute.xlu0 %885  ;;  %2903 = vmatmul.msk.f32.vlgmr.msra.gmra.mxu0 %vm406_vm2, %v3408_v28  ;;  %v3582_v13 = vpop.permute.xlu2 %891 }
 0x144   :  { %2943 = vmatmul.msk.f32.gmra.mxu3 %vm406_vm2, %v3538_v25  ;;  %2127 = vmatpush.msra.mxu0 %v3280_v29 }
 0x145   :  { %v361_v55 = vmax.f32 %v329_v54, 0.0 }
 0x146   :  { %v3545_v57 = vpop.f32.mrf.mxu1  ;;  %2128 = vmatpush.msra.mxu0 %v3289_v31 }
 0x147   :  { %v3548_v58 = vmin.f32 %v361_v55, 1.0 }
 0x148   :  { %v250_v60 = vpop.f32.mrf.mxu0 }
 0x149   :  { %v298_v63 = vmul.f32 0.5, %v250_v60  ;;  %915 = vrot.lane.b32.xlu2 %v3548_v58, %s3136_s13 }
 0x14a   :  { %2894 = vmatmul.msk.f32.gmra.mxu1 %vm406_vm2, %v3548_v58  ;;  %2926 = vmatmul.msk.f32.gmra.mxu2 %vm406_vm2, %v3548_v58 }
 0x14b   :  { %v330_v0 = vadd.f32 0.5, %v298_v63  ;;  %v3556_v29 = vpop.permute.xlu1 %887  ;;  %2904 = vmatmul.msk.f32.gmra.mxu0 %vm406_vm2, %v3438_v49  ;;  %v3604_v26 = vpop.permute.xlu2 %893 }
 0x14c   :  { %2944 = vmatmul.msk.f32.gmra.mxu3 %vm406_vm2, %v3556_v29 }
 0x14d   :  { %v362_v31 = vmax.f32 %v330_v0, 0.0 }
 0x14e   :  { %v3562_v27 = vpop.f32.mrf.mxu1 }
 0x14f   :  { %v3564_v1 = vmin.f32 %v362_v31, 1.0 }
 0x150   :  { %v253_v2 = vpop.f32.mrf.mxu0 }
 0x151   :  { %v299_v3 = vmul.f32 0.5, %v253_v2  ;;  %917 = vrot.lane.b32.xlu0 %v3564_v1, %s3136_s13 }
 0x152   :  { %2895 = vmatmul.msk.f32.gmra.mxu1 %vm406_vm2, %v3564_v1  ;;  %2927 = vmatmul.msk.f32.gmra.mxu2 %vm406_vm2, %v3564_v1 }
 0x153   :  { %v331_v6 = vadd.f32 0.5, %v299_v3  ;;  %v3572_v8 = vpop.permute.xlu1 %889  ;;  %2905 = vmatmul.msk.f32.gmra.mxu0 %vm406_vm2, %v3453_v59 }
 0x154   :  { %2945 = vmatmul.msk.f32.gmra.mxu3 %vm406_vm2, %v3572_v8 }
 0x155   :  { %v363_v9 = vmax.f32 %v331_v6, 0.0 }
 0x156   :  { %v3578_v33 = vpop.f32.mrf.mxu1 }
 0x157   :  { %v3580_v11 = vmin.f32 %v363_v9, 1.0 }
 0x158   :  { %v256_v12 = vpop.f32.mrf.mxu0 }
 0x159   :  { %v300_v15 = vmul.f32 0.5, %v256_v12  ;;  %919 = vrot.lane.b32.xlu1 %v3580_v11, %s3136_s13 }
 0x15a   :  { %2896 = vmatmul.msk.f32.gmra.mxu1 %vm406_vm2, %v3580_v11  ;;  %2928 = vmatmul.msk.f32.gmra.mxu2 %vm406_vm2, %v3580_v11 }
 0x15b   :  { %v332_v17 = vadd.f32 0.5, %v300_v15  ;;  %2906 = vmatmul.msk.f32.gmra.mxu0 %vm406_vm2, %v3468_v5 }
 0x15c   :  { %2946 = vmatmul.msk.f32.gmra.mxu3 %vm406_vm2, %v3582_v13 }
 0x15d   :  { %v364_v19 = vmax.f32 %v332_v17, 0.0 }
 0x15e   :  { %v3594_v35 = vpop.f32.mrf.mxu1 }
 0x15f   :  { %v3596_v20 = vmin.f32 %v364_v19, 1.0  ;;  %v3657_v19 = vpop.f32.mrf.mxu2 }
 0x160   :  { %v259_v22 = vpop.f32.mrf.mxu0 }
 0x161   :  { %v301_v21 = vmul.f32 0.5, %v259_v22  ;;  %921 = vrot.lane.b32.xlu2 %v3596_v20, %s3136_s13 }
 0x162   :  { %2897 = vmatmul.msk.f32.gmra.mxu1 %vm406_vm2, %v3596_v20  ;;  %2929 = vmatmul.msk.f32.gmra.mxu2 %vm406_vm2, %v3596_v20 }
 0x163   :  { %v333_v34 = vadd.f32 0.5, %v301_v21  ;;  %2907 = vmatmul.msk.f32.gmra.mxu0 %vm406_vm2, %v3483_v14  ;;  %v3646_v3 = vpop.permute.xlu2 %899 }
 0x164   :  { %2947 = vmatmul.msk.f32.gmra.mxu3 %vm406_vm2, %v3604_v26 }
 0x165   :  { %v365_v36 = vmax.f32 %v333_v34, 0.0 }
 0x166   :  { %v3610_v37 = vpop.f32.mrf.mxu1 }
 0x167   :  { %v3612_v38 = vmin.f32 %v365_v36, 1.0 }
 0x168   :  { %v262_v39 = vpop.f32.mrf.mxu0 }
 0x169   :  { %v302_v43 = vmul.f32 0.5, %v262_v39  ;;  %923 = vrot.lane.b32.xlu0 %v3612_v38, %s3136_s13 }
 0x16a   :  { %2898 = vmatmul.msk.f32.gmra.mxu1 %vm406_vm2, %v3612_v38  ;;  %2930 = vmatmul.msk.f32.gmra.mxu2 %vm406_vm2, %v3612_v38 }
 0x16b   :  { %v334_v45 = vadd.f32 0.5, %v302_v43  ;;  %v3620_v46 = vpop.permute.xlu0 %895  ;;  %2908 = vmatmul.msk.f32.gmra.mxu0 %vm406_vm2, %v3498_v24  ;;  %v872_v39 = vpop.permute.xlu2 %871 }
 0x16c   :  { %2948 = vmatmul.msk.f32.gmra.mxu3 %vm406_vm2, %v3620_v46 }
 0x16d   :  { %v366_v47 = vmax.f32 %v334_v45, 0.0 }
 0x16e   :  { %v3626_v51 = vpop.f32.mrf.mxu1 }
 0x16f   :  { %v3628_v53 = vmin.f32 %v366_v47, 1.0 }
 0x170   :  { %v265_v54 = vpop.f32.mrf.mxu0 }
 0x171   :  { %v303_v55 = vmul.f32 0.5, %v265_v54  ;;  %925 = vrot.lane.b32.xlu1 %v3628_v53, %s3136_s13 }
 0x172   :  { %2899 = vmatmul.msk.f32.gmra.mxu1 %vm406_vm2, %v3628_v53  ;;  %2931 = vmatmul.msk.f32.gmra.mxu2 %vm406_vm2, %v3628_v53 }
 0x173   :  { %v335_v60 = vadd.f32 0.5, %v303_v55  ;;  %v3636_v63 = vpop.permute.xlu1 %897  ;;  %2909 = vmatmul.msk.f32.gmra.mxu0 %vm406_vm2, %v3512_v40  ;;  %v870_v12 = vpop.permute.xlu0 %869 }
 0x174   :  { %2949 = vmatmul.msk.f32.gmra.mxu3 %vm406_vm2, %v3636_v63 }
 0x175   :  { %v367_v0 = vmax.f32 %v335_v60, 0.0  ;;  %v3680_v60 = vpop.f32.mrf.mxu2 }
 0x176   :  { %v3642_v31 = vpop.f32.mrf.mxu1  ;;  %5780 = vst [vmem:[#allocation2_spill] sm:$0xff] %v3680_v60 }
 0x177   :  { %v3644_v2 = vmin.f32 %v367_v0, 1.0 }
 0x178   :  { %v268_v6 = vpop.f32.mrf.mxu0 }
 0x179   :  { %v304_v9 = vmul.f32 0.5, %v268_v6  ;;  %927 = vrot.lane.b32.xlu2 %v3644_v2, %s3136_s13 }
 0x17a   :  { %2900 = vmatmul.msk.f32.gmra.mxu1 %vm406_vm2, %v3644_v2  ;;  %2932 = vmatmul.msk.f32.gmra.mxu2 %vm406_vm2, %v3644_v2 }
 0x17b   :  { %v336_v15 = vadd.f32 0.5, %v304_v9  ;;  %2935 = vmatmul.msk.f32.vlgmr.msrb.gmra.mxu0 %vm406_vm2, %v870_v12 }
 0x17c   :  { %2950 = vmatmul.msk.f32.gmra.mxu3 %vm406_vm2, %v3646_v3 }
 0x17d   :  { %v368_v17 = vmax.f32 %v336_v15, 0.0  ;;  %v3699_v15 = vpop.permute.xlu2 %905 }
 0x17f   :  { %v3659_v22 = vmin.f32 %v368_v17, 1.0  ;;  %v3661_v21 = vpop.f32.mrf.mxu1  ;;  %v3705_v17 = vpop.f32.mrf.mxu2 }
 0x180   :  { %v271_v34 = vpop.f32.mrf.mxu0  ;;  %5782 = vst [vmem:[#allocation4_spill] sm:$0xff] %v3705_v17 }
 0x181   :  { %v305_v36 = vmul.f32 0.5, %v271_v34  ;;  %1427 = vrot.lane.b32.xlu2 %v3408_v28, %s3137_s0  ;;  %929 = vrot.lane.b32.xlu0 %v3659_v22, %s3136_s13 }
 0x182   :  { %2901 = vmatmul.msk.f32.gmra.mxu1 %vm406_vm2, %v3659_v22  ;;  %2933 = vmatmul.msk.f32.gmra.mxu2 %vm406_vm2, %v3659_v22 }
 0x183   :  { %v337_v43 = vadd.f32 0.5, %v305_v36  ;;  %v3671_v45 = vpop.permute.xlu1 %901  ;;  %2936 = vmatmul.msk.f32.gmra.mxu0 %vm406_vm2, %v872_v39 }
 0x184   :  { %2951 = vmatmul.msk.f32.gmra.mxu3 %vm406_vm2, %v3671_v45 }
 0x185   :  { %v369_v47 = vmax.f32 %v337_v43, 0.0 }
 0x187   :  { %v3676_v54 = vmin.f32 %v369_v47, 1.0  ;;  %v3678_v55 = vpop.f32.mrf.mxu1  ;;  %v3724_v47 = vpop.f32.mrf.mxu2 }
 0x188   :  { %5784 = vst [vmem:[#allocation6_spill] sm:$0xff] %v3724_v47 }
 0x189   :  { %1433 = vrot.lane.b32.xlu2 %v3468_v5, %s3137_s0  ;;  %1429 = vrot.lane.b32.xlu0 %v3438_v49, %s3137_s0 }
 0x18a   :  { %931 = vrot.lane.b32.xlu1 %v3676_v54, %s3136_s13  ;;  %2902 = vmatmul.msk.f32.gmra.mxu1 %vm406_vm2, %v3676_v54 }
 0x18b   :  { %2934 = vmatmul.msk.f32.gmra.mxu2 %vm406_vm2, %v3676_v54  ;;  %v874_v0 = vpop.permute.xlu1 %873  ;;  %v3692_v6 = vpop.permute.xlu0 %903 }
 0x18c   :  { %2937 = vmatmul.msk.f32.gmra.mxu0 %vm406_vm2, %v874_v0  ;;  %2952 = vmatmul.msk.f32.gmra.mxu3 %vm406_vm2, %v3692_v6 }
 0x18f   :  { %v3697_v9 = vpop.f32.mrf.mxu1  ;;  %v3743_v60 = vpop.f32.mrf.mxu2 }
 0x190   :  { %5781 = vst [vmem:[#allocation3_spill] sm:$0xff] %v3697_v9 }
 0x191   :  { %1439 = vrot.lane.b32.xlu2 %v3512_v40, %s3137_s0  ;;  %1435 = vrot.lane.b32.xlu0 %v3483_v14, %s3137_s0  ;;  %5786 = vst [vmem:[#allocation8_spill] sm:$0xff] %v3743_v60 }
 0x192   :  { %1431 = vrot.lane.b32.xlu1 %v3453_v59, %s3137_s0  ;;  %2967 = vmatmul.msk.f32.vlgmr.msrb.gmra.mxu1 %vm406_vm2, %v870_v12  ;;  %v878_v12 = vpop.permute.xlu2 %877 }
 0x193   :  { %v876_v34 = vpop.permute.xlu0 %875 }
 0x194   :  { %2938 = vmatmul.msk.f32.gmra.mxu0 %vm406_vm2, %v876_v34  ;;  %2953 = vmatmul.msk.f32.gmra.mxu3 %vm406_vm2, %v3699_v15 }
 0x197   :  { %v3713_v36 = vpop.f32.mrf.mxu1 }
 0x198   :  { %5783 = vst [vmem:[#allocation5_spill] sm:$0xff] %v3713_v36 }
 0x199   :  { %1445 = vrot.lane.b32.xlu2 %v3347_v56, %s3137_s0  ;;  %1441 = vrot.lane.b32.xlu0 %v3323_v44, %s3137_s0 }
 0x19a   :  { %1437 = vrot.lane.b32.xlu1 %v3498_v24, %s3137_s0  ;;  %2968 = vmatmul.msk.f32.gmra.mxu1 %vm406_vm2, %v872_v39 }
 0x19b   :  { %v3722_v43 = vpop.permute.xlu1 %907 }
 0x19c   :  { %2939 = vmatmul.msk.f32.gmra.mxu0 %vm406_vm2, %v878_v12  ;;  %2954 = vmatmul.msk.f32.gmra.mxu3 %vm406_vm2, %v3722_v43 }
 0x19f   :  { %v3729_v17 = vpop.f32.mrf.mxu1 }
 0x1a0   :  { %5785 = vst [vmem:[#allocation7_spill] sm:$0xff] %v3729_v17 }
 0x1a1   :  { %1451 = vrot.lane.b32.xlu2 %v3383_v10, %s3137_s0  ;;  %1447 = vrot.lane.b32.xlu0 %v3359_v62, %s3137_s0 }
 0x1a2   :  { %1443 = vrot.lane.b32.xlu1 %v3335_v50, %s3137_s0  ;;  %2969 = vmatmul.msk.f32.gmra.mxu1 %vm406_vm2, %v874_v0  ;;  %v3754_v0 = vpop.permute.xlu2 %911 }
 0x1a3   :  { %v880_v39 = vpop.permute.xlu1 %879  ;;  %v3738_v47 = vpop.permute.xlu0 %909 }
 0x1a4   :  { %2940 = vmatmul.msk.f32.gmra.mxu0 %vm406_vm2, %v880_v39  ;;  %2955 = vmatmul.msk.f32.gmra.mxu3 %vm406_vm2, %v3738_v47 }
 0x1a7   :  { %v3745_v17 = vpop.f32.mrf.mxu1 }
 0x1a8   :  { %5787 = vst [vmem:[#allocation9_spill] sm:$0xff] %v3745_v17  ;;  %v3761_v17 = vpop.f32.mrf.mxu2 }
 0x1a9   :  { %1457 = vrot.lane.b32.xlu2 %v3425_v42, %s3137_s0  ;;  %1453 = vrot.lane.b32.xlu0 %v3396_v18, %s3137_s0  ;;  %5789 = vst [vmem:[#allocation11_spill] sm:$0xff] %v3761_v17 }
 0x1aa   :  { %1449 = vrot.lane.b32.xlu1 %v3371_v4, %s3137_s0  ;;  %2970 = vmatmul.msk.f32.gmra.mxu1 %vm406_vm2, %v876_v34 }
 0x1ab   :  { %v882_v36 = vpop.permute.xlu0 %881 }
 0x1ac   :  { %2941 = vmatmul.msk.f32.gmra.mxu0 %vm406_vm2, %v882_v36  ;;  %2956 = vmatmul.msk.f32.gmra.mxu3 %vm406_vm2, %v3754_v0 }
 0x1af   :  { %v3759_v60 = vpop.f32.mrf.mxu1 }
 0x1b0   :  { %5788 = vst [vmem:[#allocation10_spill] sm:$0xff] %v3759_v60 }
 0x1b1   :  { %1987 = vrot.lane.b32.xlu2 %v3438_v49, %s3138_s28  ;;  %1985 = vrot.lane.b32.xlu0 %v3408_v28, %s3138_s28  ;;  %v3780_v49 = vpop.f32.mrf.mxu2  ;;  %v3785_v28 = vpop.permute.xlu2 %915 }
 0x1b2   :  { %1455 = vrot.lane.b32.xlu1 %v3410_v30, %s3137_s0  ;;  %2971 = vmatmul.msk.f32.gmra.mxu1 %vm406_vm2, %v878_v12  ;;  %5791 = vst [vmem:[#allocation13_spill] sm:$0xff] %v3780_v49 }
 0x1b3   :  { %v3770_v34 = vpop.permute.xlu1 %913 }
 0x1b4   :  { %2957 = vmatmul.msk.f32.gmra.mxu3 %vm406_vm2, %v3770_v34 }
 0x1b7   :  { %v3774_v60 = vpop.f32.mrf.mxu1 }
 0x1b8   :  { %5790 = vst [vmem:[#allocation12_spill] sm:$0xff] %v3774_v60 }
 0x1b9   :  { %1463 = vrot.lane.b32.xlu2 %v3470_v7, %s3137_s0  ;;  %1461 = vrot.lane.b32.xlu0 %v3455_v61, %s3137_s0  ;;  %v3802_v49 = vpop.f32.mrf.mxu2 }
 0x1ba   :  { %1459 = vrot.lane.b32.xlu1 %v3440_v52, %s3137_s0  ;;  %2972 = vmatmul.msk.f32.gmra.mxu1 %vm406_vm2, %v880_v39  ;;  %5793 = vst [vmem:[#allocation15_spill] sm:$0xff] %v3802_v49 }
 0x1bc   :  { %2958 = vmatmul.msk.f32.gmra.mxu3 %vm406_vm2, %v3785_v28 }
 0x1bf   :  { %v3789_v12 = vpop.f32.mrf.mxu1  ;;  %v3791_v17 = vpop.f32.mrf.mxu3 }
 0x1c0   :  { %5792 = vst [vmem:[#allocation14_spill] sm:$0xff] %v3789_v12 }
 0x1c1   :  { %1993 = vrot.lane.b32.xlu2 %v3483_v14, %s3138_s28  ;;  %1991 = vrot.lane.b32.xlu0 %v3468_v5, %s3138_s28  ;;  %v3824_v14 = vpop.f32.mrf.mxu2 }
 0x1c2   :  { %1989 = vrot.lane.b32.xlu1 %v3453_v59, %s3138_s28  ;;  %2973 = vmatmul.msk.f32.gmra.mxu1 %vm406_vm2, %v882_v36  ;;  %v3818_v59 = vpop.permute.xlu2 %921  ;;  %5795 = vst [vmem:[#allocation17_spill] sm:$0xff] %v3824_v14  ;;  %v3842_v14 = vpop.f32.mrf.mxu0 }
 0x1c3   :  { %v3800_v39 = vpop.permute.xlu0 %917 }
 0x1c4   :  { %2959 = vmatmul.msk.f32.gmra.mxu3 %vm406_vm2, %v3800_v39 }
 0x1c7   :  { %v3806_v12 = vpop.f32.mrf.mxu1  ;;  %v3808_v60 = vpop.f32.mrf.mxu3 }
 0x1c8   :  { %5794 = vst [vmem:[#allocation16_spill] sm:$0xff] %v3806_v12 }
 0x1c9   :  { %1469 = vrot.lane.b32.xlu2 %v3514_v41, %s3137_s0  ;;  %1467 = vrot.lane.b32.xlu0 %v3500_v32, %s3137_s0 }
 0x1ca   :  { %1465 = vrot.lane.b32.xlu1 %v3485_v16, %s3137_s0  ;;  %2974 = vmatmul.msk.f32.gmra.mxu1 %vm406_vm2, %v3524_v23 }
 0x1cb   :  { %v3820_v5 = vpop.permute.xlu1 %919 }
 0x1cc   :  { %2960 = vmatmul.msk.f32.gmra.mxu3 %vm406_vm2, %v3820_v5 }
 0x1cf   :  { %v3826_v36 = vpop.f32.mrf.mxu1  ;;  %v3828_v49 = vpop.f32.mrf.mxu3 }
 0x1d0   :  { %5796 = vst [vmem:[#allocation18_spill] sm:$0xff] %v3826_v36 }
 0x1d1   :  { %1999 = vrot.lane.b32.xlu2 %v3323_v44, %s3138_s28  ;;  %1997 = vrot.lane.b32.xlu0 %v3512_v40, %s3138_s28  ;;  %v3848_v44 = vpop.f32.mrf.mxu2 }
 0x1d2   :  { %1995 = vrot.lane.b32.xlu1 %v3498_v24, %s3138_s28  ;;  %2975 = vmatmul.msk.f32.gmra.mxu1 %vm406_vm2, %v3538_v25  ;;  %5798 = vst [vmem:[#allocation20_spill] sm:$0xff] %v3848_v44 }
 0x1d3   :  { %v3838_v23 = vpop.permute.xlu2 %927 }
 0x1d4   :  { %2961 = vmatmul.msk.f32.gmra.mxu3 %vm406_vm2, %v3818_v59 }
 0x1d7   :  { %v3844_v36 = vpop.f32.mrf.mxu1  ;;  %v3846_v12 = vpop.f32.mrf.mxu3 }
 0x1d8   :  { %5797 = vst [vmem:[#allocation19_spill] sm:$0xff] %v3844_v36  ;;  %v3867_v36 = vpop.f32.mrf.mxu0 }
 0x1d9   :  { %1475 = vrot.lane.b32.xlu2 %v3564_v1, %s3137_s0  ;;  %1473 = vrot.lane.b32.xlu0 %v3548_v58, %s3137_s0  ;;  %5800 = vst [vmem:[#allocation22_spill] sm:$0xff] %v3867_v36 }
 0x1da   :  { %1471 = vrot.lane.b32.xlu1 %v3530_v48, %s3137_s0  ;;  %2976 = vmatmul.msk.f32.gmra.mxu1 %vm406_vm2, %v3556_v29  ;;  %v3873_v29 = vpop.f32.mrf.mxu2 }
 0x1db   :  { %v3858_v24 = vpop.permute.xlu0 %923  ;;  %v1428_v40 = vpop.permute.xlu2 %1427  ;;  %5801 = vst [vmem:[#allocation23_spill] sm:$0xff] %v3873_v29 }
 0x1dc   :  { %2962 = vmatmul.msk.f32.gmra.mxu3 %vm406_vm2, %v3858_v24  ;;  %2999 = vmatmul.msk.f32.vlgmr.msrb.gmra.mxu2 %vm406_vm2, %v1428_v40 }
 0x1df   :  { %v3863_v25 = vpop.f32.mrf.mxu1  ;;  %v3865_v44 = vpop.f32.mrf.mxu3 }
 0x1e0   :  { %5799 = vst [vmem:[#allocation21_spill] sm:$0xff] %v3863_v25 }
 0x1e1   :  { %2005 = vrot.lane.b32.xlu2 %v3359_v62, %s3138_s28  ;;  %2003 = vrot.lane.b32.xlu0 %v3347_v56, %s3138_s28  ;;  %v3891_v56 = vpop.f32.mrf.mxu0 }
 0x1e2   :  { %2001 = vrot.lane.b32.xlu1 %v3335_v50, %s3138_s28  ;;  %2977 = vmatmul.msk.f32.gmra.mxu1 %vm406_vm2, %v3572_v8  ;;  %5803 = vst [vmem:[#allocation25_spill] sm:$0xff] %v3891_v56  ;;  %v3897_v50 = vpop.f32.mrf.mxu2 }
 0x1e3   :  { %v3879_v9 = vpop.permute.xlu1 %925  ;;  %5804 = vst [vmem:[#allocation26_spill] sm:$0xff] %v3897_v50 }
 0x1e4   :  { %2963 = vmatmul.msk.f32.gmra.mxu3 %vm406_vm2, %v3879_v9 }
 0x1e7   :  { %v3883_v25 = vpop.f32.mrf.mxu1  ;;  %v3885_v36 = vpop.f32.mrf.mxu3 }
 0x1e8   :  { %5802 = vst [vmem:[#allocation24_spill] sm:$0xff] %v3883_v25 }
 0x1e9   :  { %1481 = vrot.lane.b32.xlu2 %v3612_v38, %s3137_s0  ;;  %1479 = vrot.lane.b32.xlu0 %v3596_v20, %s3137_s0  ;;  %v3915_v50 = vpop.f32.mrf.mxu0 }
 0x1ea   :  { %1477 = vrot.lane.b32.xlu1 %v3580_v11, %s3137_s0  ;;  %2978 = vmatmul.msk.f32.gmra.mxu1 %vm406_vm2, %v3582_v13  ;;  %5806 = vst [vmem:[#allocation28_spill] sm:$0xff] %v3915_v50  ;;  %v3919_v29 = vpop.f32.mrf.mxu2 }
 0x1eb   :  { %5807 = vst [vmem:[#allocation29_spill] sm:$0xff] %v3919_v29 }
 0x1ec   :  { %2964 = vmatmul.msk.f32.gmra.mxu3 %vm406_vm2, %v3838_v23 }
 0x1ef   :  { %v3901_v62 = vpop.f32.mrf.mxu1  ;;  %v3903_v8 = vpop.f32.mrf.mxu3 }
 0x1f0   :  { %5805 = vst [vmem:[#allocation27_spill] sm:$0xff] %v3901_v62  ;;  %v3931_v62 = vpop.permute.xlu2 %1433 }
 0x1f1   :  { %2011 = vrot.lane.b32.xlu2 %v3396_v18, %s3138_s28  ;;  %2009 = vrot.lane.b32.xlu0 %v3383_v10, %s3138_s28  ;;  %v2558_v18 = vld [vmem:[%s5765_s5 + $0x78] sm:$0xff] }
 0x1f2   :  { %2007 = vrot.lane.b32.xlu1 %v3371_v4, %s3138_s28  ;;  %2979 = vmatmul.msk.f32.gmra.mxu1 %vm406_vm2, %v3604_v26  ;;  %v2574_v4 = vld [vmem:[%s5765_s5 + $0xf8] sm:$0xff]  ;;  %v3952_v50 = vpop.f32.mrf.mxu2 }
 0x1f3   :  { %v3913_v13 = vpop.permute.xlu0 %929  ;;  %2575 = vmatpush.msra.mxu2 %v2558_v18  ;;  %2688 = vmatpush.msra.mxu3 %v2574_v4  ;;  %v3946_v18 = vpop.f32.mrf.mxu0  ;;  %5811 = vst [vmem:[#allocation33_spill] sm:$0xff] %v3952_v50 }
 0x1f4   :  { %2965 = vmatmul.msk.f32.gmra.mxu3 %vm406_vm2, %v3913_v13  ;;  %5809 = vst [vmem:[#allocation31_spill] sm:$0xff] %v3946_v18 }
 0x1f7   :  { %v3927_v10 = vpop.f32.mrf.mxu1  ;;  %v3929_v26 = vpop.f32.mrf.mxu3 }
 0x1f8   :  { %5808 = vst [vmem:[#allocation30_spill] sm:$0xff] %v3927_v10 }
 0x1f9   :  { %1487 = vrot.lane.b32.xlu2 %v3659_v22, %s3137_s0  ;;  %1485 = vrot.lane.b32.xlu0 %v3644_v2, %s3137_s0 }
 0x1fa   :  { %1483 = vrot.lane.b32.xlu1 %v3628_v53, %s3137_s0  ;;  %2980 = vmatmul.msk.f32.gmra.mxu1 %vm406_vm2, %v3620_v46  ;;  %v3958_v46 = vpop.permute.xlu2 %1439 }
 0x1fb   :  { %v1430_v29 = vpop.permute.xlu0 %1429 }
 0x1fc   :  { %v3941_v10 = vpop.permute.xlu1 %931  ;;  %3000 = vmatmul.msk.f32.gmra.mxu2 %vm406_vm2, %v1430_v29 }
 0x1fd   :  { %2966 = vmatmul.msk.f32.gmra.mxu3 %vm406_vm2, %v3941_v10 }
 0x1ff   :  { %v3948_v4 = vpop.f32.mrf.mxu1  ;;  %v3950_v25 = vpop.f32.mrf.mxu3 }
 0x200   :  { %5810 = vst [vmem:[#allocation32_spill] sm:$0xff] %v3948_v4 }
 0x201   :  { %2017 = vrot.lane.b32.xlu2 %v3440_v52, %s3138_s28  ;;  %2015 = vrot.lane.b32.xlu0 %v3425_v42, %s3138_s28  ;;  %v2557_v52 = vld [vmem:[%s5765_s5 + $0x70] sm:$0xff] }
 0x202   :  { %2013 = vrot.lane.b32.xlu1 %v3410_v30, %s3138_s28  ;;  %2981 = vmatmul.msk.f32.gmra.mxu1 %vm406_vm2, %v3636_v63  ;;  %v2573_v42 = vld [vmem:[%s5765_s5 + $0xf0] sm:$0xff]  ;;  %v3976_v63 = vpop.f32.mrf.mxu0 }
 0x203   :  { %v1436_v18 = vpop.permute.xlu0 %1435  ;;  %2576 = vmatpush.msra.mxu2 %v2557_v52  ;;  %2689 = vmatpush.msra.mxu3 %v2573_v42  ;;  %5814 = vst [vmem:[#allocation36_spill] sm:$0xff] %v3976_v63  ;;  %v3990_v52 = vpop.permute.xlu2 %1445 }
 0x204   :  { %v1432_v4 = vpop.permute.xlu1 %1431 }
 0x205   :  { %3001 = vmatmul.msk.f32.gmra.mxu2 %vm406_vm2, %v1432_v4  ;;  %3031 = vmatmul.msk.f32.vlgmr.msrb.gmra.mxu3 %vm406_vm2, %v1428_v40  ;;  %v3982_v40 = vpop.f32.mrf.mxu2 }
 0x206   :  { %5815 = vst [vmem:[#allocation37_spill] sm:$0xff] %v3982_v40 }
 0x207   :  { %v3972_v50 = vpop.f32.mrf.mxu1  ;;  %v3974_v30 = vpop.f32.mrf.mxu3 }
 0x208   :  { %5812 = vst [vmem:[#allocation34_spill] sm:$0xff] %v3972_v50 }
 0x209   :  { %5813 = vst [vmem:[#allocation35_spill] sm:$0xff] %v3974_v30  ;;  %2023 = vrot.lane.b32.xlu2 %v3485_v16, %s3138_s28  ;;  %2019 = vrot.lane.b32.xlu0 %v3455_v61, %s3138_s28 }
 0x20a   :  { %1489 = vrot.lane.b32.xlu1 %v3676_v54, %s3137_s0  ;;  %2982 = vmatmul.msk.f32.gmra.mxu1 %vm406_vm2, %v3646_v3  ;;  %v4007_v3 = vpop.f32.mrf.mxu0 }
 0x20b   :  { %v3988_v50 = vpop.permute.xlu0 %1441  ;;  %5818 = vst [vmem:[#allocation40_spill] sm:$0xff] %v4007_v3 }
 0x20c   :  { %v1438_v42 = vpop.permute.xlu1 %1437 }
 0x20d   :  { %3002 = vmatmul.msk.f32.gmra.mxu2 %vm406_vm2, %v3931_v62  ;;  %3032 = vmatmul.msk.f32.gmra.mxu3 %vm406_vm2, %v1430_v29  ;;  %v4011_v29 = vpop.f32.mrf.mxu2 }
 0x20e   :  { %5819 = vst [vmem:[#allocation41_spill] sm:$0xff] %v4011_v29 }
 0x20f   :  { %v3995_v16 = vpop.f32.mrf.mxu1  ;;  %v3997_v61 = vpop.f32.mrf.mxu3 }
 0x210   :  { %5816 = vst [vmem:[#allocation38_spill] sm:$0xff] %v3995_v16 }
 0x211   :  { %5817 = vst [vmem:[#allocation39_spill] sm:$0xff] %v3997_v61  ;;  %2029 = vrot.lane.b32.xlu2 %v3530_v48, %s3138_s28  ;;  %2025 = vrot.lane.b32.xlu0 %v3500_v32, %s3138_s28  ;;  %v4017_v48 = vpop.permute.xlu2 %1451  ;;  %v2572_v32 = vld [vmem:[%s5765_s5 + $0xe8] sm:$0xff] }
 0x212   :  { %2021 = vrot.lane.b32.xlu1 %v3470_v7, %s3138_s28  ;;  %2983 = vmatmul.msk.f32.gmra.mxu1 %vm406_vm2, %v3671_v45  ;;  %v2556_v7 = vld [vmem:[%s5765_s5 + $0x68] sm:$0xff] }
 0x213   :  { %v4009_v40 = vpop.permute.xlu0 %1447  ;;  %2577 = vmatpush.msra.mxu2 %v2556_v7  ;;  %2690 = vmatpush.msra.mxu3 %v2572_v32  ;;  %v4044_v7 = vpop.f32.mrf.mxu0 }
 0x214   :  { %v4013_v63 = vpop.permute.xlu1 %1443  ;;  %5822 = vst [vmem:[#allocation44_spill] sm:$0xff] %v4044_v7 }
 0x215   :  { %3003 = vmatmul.msk.f32.gmra.mxu2 %vm406_vm2, %v1436_v18  ;;  %3033 = vmatmul.msk.f32.gmra.mxu3 %vm406_vm2, %v1432_v4 }
 0x217   :  { %v4025_v45 = vpop.f32.mrf.mxu1  ;;  %v4027_v3 = vpop.f32.mrf.mxu3 }
 0x218   :  { %5820 = vst [vmem:[#allocation42_spill] sm:$0xff] %v4025_v45 }
 0x219   :  { %5821 = vst [vmem:[#allocation43_spill] sm:$0xff] %v4027_v3  ;;  %2035 = vrot.lane.b32.xlu2 %v3580_v11, %s3138_s28  ;;  %2031 = vrot.lane.b32.xlu0 %v3548_v58, %s3138_s28  ;;  %v4046_v11 = vpop.f32.mrf.mxu2 }
 0x21a   :  { %2027 = vrot.lane.b32.xlu1 %v3514_v41, %s3138_s28  ;;  %2984 = vmatmul.msk.f32.gmra.mxu1 %vm406_vm2, %v3692_v6  ;;  %5823 = vst [vmem:[#allocation45_spill] sm:$0xff] %v4046_v11  ;;  %v4052_v41 = vpop.permute.xlu2 %1457 }
 0x21b   :  { %v4037_v4 = vpop.permute.xlu0 %1453  ;;  %v4081_v11 = vpop.f32.mrf.mxu0 }
 0x21c   :  { %v4039_v29 = vpop.permute.xlu1 %1449  ;;  %5828 = vst [vmem:[#allocation50_spill] sm:$0xff] %v4081_v11 }
 0x21d   :  { %3004 = vmatmul.msk.f32.gmra.mxu2 %vm406_vm2, %v1438_v42  ;;  %3034 = vmatmul.msk.f32.gmra.mxu3 %vm406_vm2, %v3931_v62 }
 0x21f   :  { %v4048_v58 = vpop.f32.mrf.mxu1  ;;  %v4050_v32 = vpop.f32.mrf.mxu3 }
 0x220   :  { %5824 = vst [vmem:[#allocation46_spill] sm:$0xff] %v4048_v58 }
 0x221   :  { %5825 = vst [vmem:[#allocation47_spill] sm:$0xff] %v4050_v32  ;;  %2041 = vrot.lane.b32.xlu2 %v3628_v53, %s3138_s28  ;;  %2037 = vrot.lane.b32.xlu0 %v3596_v20, %s3138_s28  ;;  %v2555_v20 = vld [vmem:[%s5765_s5 + $0x60] sm:$0xff]  ;;  %v4083_v58 = vpop.f32.mrf.mxu2 }
 0x222   :  { %2033 = vrot.lane.b32.xlu1 %v3564_v1, %s3138_s28  ;;  %2985 = vmatmul.msk.f32.gmra.mxu1 %vm406_vm2, %v3699_v15  ;;  %v2571_v1 = vld [vmem:[%s5765_s5 + $0xe0] sm:$0xff]  ;;  %5829 = vst [vmem:[#allocation51_spill] sm:$0xff] %v4083_v58 }
 0x223   :  { %v4062_v6 = vpop.permute.xlu0 %1985  ;;  %2578 = vmatpush.msra.mxu2 %v2555_v20  ;;  %2691 = vmatpush.msra.mxu3 %v2571_v1 }
 0x224   :  { %v4064_v62 = vpop.permute.xlu1 %1455  ;;  %3063 = vmatmul.msk.f32.vlgmr.msra.gmra.mxu0 %vm406_vm2, %v4062_v6 }
 0x225   :  { %3005 = vmatmul.msk.f32.gmra.mxu2 %vm406_vm2, %v3958_v46  ;;  %3035 = vmatmul.msk.f32.gmra.mxu3 %vm406_vm2, %v1436_v18  ;;  %v4093_v18 = vpop.permute.xlu2 %1987 }
 0x227   :  { %v4077_v53 = vpop.f32.mrf.mxu1  ;;  %v4079_v15 = vpop.f32.mrf.mxu3 }
 0x228   :  { %5826 = vst [vmem:[#allocation48_spill] sm:$0xff] %v4077_v53 }
 0x229   :  { %5827 = vst [vmem:[#allocation49_spill] sm:$0xff] %v4079_v15  ;;  %2043 = vrot.lane.b32.xlu0 %v3644_v2, %s3138_s28  ;;  %2047 = vrot.lane.b32.xlu2 %v3676_v54, %s3138_s28  ;;  %v4108_v1 = vpop.f32.mrf.mxu2 }
 0x22a   :  { %2039 = vrot.lane.b32.xlu1 %v3612_v38, %s3138_s28  ;;  %2986 = vmatmul.msk.f32.gmra.mxu1 %vm406_vm2, %v3722_v43  ;;  %v4106_v38 = vpop.f32.mrf.mxu0  ;;  %5833 = vst [vmem:[#allocation55_spill] sm:$0xff] %v4108_v1 }
 0x22b   :  { %5832 = vst [vmem:[#allocation54_spill] sm:$0xff] %v4106_v38  ;;  %v4114_v43 = vpop.permute.xlu0 %1461 }
 0x22c   :  { %v4095_v20 = vpop.permute.xlu1 %1459  ;;  %3064 = vmatmul.msk.f32.gmra.mxu0 %vm406_vm2, %v4093_v18 }
 0x22d   :  { %3006 = vmatmul.msk.f32.gmra.mxu2 %vm406_vm2, %v3988_v50  ;;  %3036 = vmatmul.msk.f32.gmra.mxu3 %vm406_vm2, %v1438_v42 }
 0x22f   :  { %v4102_v2 = vpop.f32.mrf.mxu1  ;;  %v4104_v54 = vpop.f32.mrf.mxu3 }
 0x230   :  { %5830 = vst [vmem:[#allocation52_spill] sm:$0xff] %v4102_v2 }
 0x231   :  { %5831 = vst [vmem:[#allocation53_spill] sm:$0xff] %v4104_v54  ;;  %v4140_v53 = vpop.f32.mrf.mxu2 }
 0x232   :  { %2045 = vrot.lane.b32.xlu1 %v3659_v22, %s3138_s28  ;;  %2987 = vmatmul.msk.f32.gmra.mxu1 %vm406_vm2, %v3738_v47  ;;  %v2554_v22 = vld [vmem:[%s5765_s5 + $0x58] sm:$0xff]  ;;  %v4138_v2 = vpop.f32.mrf.mxu0  ;;  %5837 = vst [vmem:[#allocation59_spill] sm:$0xff] %v4140_v53 }
 0x233   :  { %v2570_v47 = vld [vmem:[%s5765_s5 + $0xd8] sm:$0xff]  ;;  %2579 = vmatpush.msra.mxu2 %v2554_v22  ;;  %5836 = vst [vmem:[#allocation58_spill] sm:$0xff] %v4138_v2  ;;  %v4142_v54 = vpop.permute.xlu0 %1991 }
 0x234   :  { %v4116_v58 = vpop.permute.xlu1 %1989  ;;  %2692 = vmatpush.msra.mxu3 %v2570_v47 }
 0x235   :  { %3007 = vmatmul.msk.f32.gmra.mxu2 %vm406_vm2, %v4013_v63  ;;  %3037 = vmatmul.msk.f32.gmra.mxu3 %vm406_vm2, %v3958_v46  ;;  %v4136_v46 = vpop.permute.xlu2 %1463 }
 0x236   :  { %3065 = vmatmul.msk.f32.gmra.mxu0 %vm406_vm2, %v4116_v58 }
 0x237   :  { %v4130_v42 = vpop.f32.mrf.mxu1  ;;  %v4132_v1 = vpop.f32.mrf.mxu3 }
 0x238   :  { %5834 = vst [vmem:[#allocation56_spill] sm:$0xff] %v4130_v42 }
 0x239   :  { %5835 = vst [vmem:[#allocation57_spill] sm:$0xff] %v4132_v1  ;;  %v4166_v42 = vpop.f32.mrf.mxu2 }
 0x23a   :  { %2988 = vmatmul.msk.f32.gmra.mxu1 %vm406_vm2, %v3754_v0  ;;  %5841 = vst [vmem:[#allocation63_spill] sm:$0xff] %v4166_v42 }
 0x23c   :  { %v4156_v47 = vpop.permute.xlu1 %1465 }
 0x23d   :  { %3008 = vmatmul.msk.f32.gmra.mxu2 %vm406_vm2, %v3990_v52  ;;  %3038 = vmatmul.msk.f32.gmra.mxu3 %vm406_vm2, %v3988_v50  ;;  %v4158_v53 = vpop.permute.xlu2 %1993  ;;  %v4164_v50 = vpop.f32.mrf.mxu0 }
 0x23e   :  { %3066 = vmatmul.msk.f32.gmra.mxu0 %vm406_vm2, %v4142_v54  ;;  %5840 = vst [vmem:[#allocation62_spill] sm:$0xff] %v4164_v50 }
 0x23f   :  { %v4150_v22 = vpop.f32.mrf.mxu1  ;;  %v4152_v0 = vpop.f32.mrf.mxu3 }
 0x240   :  { %5838 = vst [vmem:[#allocation60_spill] sm:$0xff] %v4150_v22  ;;  %v2569_v22 = vld [vmem:[%s5765_s5 + $0xd0] sm:$0xff] }
 0x241   :  { %5839 = vst [vmem:[#allocation61_spill] sm:$0xff] %v4152_v0  ;;  %2693 = vmatpush.msra.mxu3 %v2569_v22 }
 0x242   :  { %2989 = vmatmul.msk.f32.gmra.mxu1 %vm406_vm2, %v3770_v34  ;;  %v2553_v34 = vld [vmem:[%s5765_s5 + $0x50] sm:$0xff] }
 0x243   :  { %2580 = vmatpush.msra.mxu2 %v2553_v34 }
 0x244   :  { %v4184_v42 = vpop.permute.xlu1 %1995 }
 0x245   :  { %3009 = vmatmul.msk.f32.gmra.mxu2 %vm406_vm2, %v4009_v40  ;;  %3039 = vmatmul.msk.f32.gmra.mxu3 %vm406_vm2, %v4013_v63  ;;  %v4182_v63 = vpop.permute.xlu0 %1467  ;;  %v4196_v22 = vpop.f32.mrf.mxu0 }
 0x246   :  { %3067 = vmatmul.msk.f32.gmra.mxu0 %vm406_vm2, %v4158_v53  ;;  %5845 = vst [vmem:[#allocation67_spill] sm:$0xff] %v4196_v22 }
 0x247   :  { %v4176_v0 = vpop.f32.mrf.mxu1  ;;  %v4178_v1 = vpop.f32.mrf.mxu3 }
 0x248   :  { %5842 = vst [vmem:[#allocation64_spill] sm:$0xff] %v4178_v1  ;;  %v4202_v1 = vpop.permute.xlu2 %1469 }
 0x24a   :  { %2990 = vmatmul.msk.f32.gmra.mxu1 %vm406_vm2, %v3785_v28  ;;  %v4198_v28 = vpop.f32.mrf.mxu2 }
 0x24b   :  { %5846 = vst [vmem:[#allocation68_spill] sm:$0xff] %v4198_v28 }
 0x24c   :  { %v4228_v22 = vpop.permute.xlu1 %1471 }
 0x24d   :  { %3010 = vmatmul.msk.f32.gmra.mxu2 %vm406_vm2, %v4039_v29  ;;  %3040 = vmatmul.msk.f32.gmra.mxu3 %vm406_vm2, %v3990_v52  ;;  %v4204_v2 = vpop.permute.xlu0 %1997  ;;  %v2552_v52 = vld [vmem:[%s5765_s5 + $0x48] sm:$0xff] }
 0x24e   :  { %3068 = vmatmul.msk.f32.gmra.mxu0 %vm406_vm2, %v4184_v42  ;;  %2581 = vmatpush.msra.mxu2 %v2552_v52 }
 0x24f   :  { %v4192_v50 = vpop.f32.mrf.mxu1  ;;  %v4194_v34 = vpop.f32.mrf.mxu3 }
 0x250   :  { %5843 = vst [vmem:[#allocation65_spill] sm:$0xff] %v4192_v50  ;;  %v4230_v38 = vpop.permute.xlu2 %1999 }
 0x251   :  { %5844 = vst [vmem:[#allocation66_spill] sm:$0xff] %v4194_v34  ;;  %v4222_v34 = vpop.f32.mrf.mxu0 }
 0x252   :  { %2991 = vmatmul.msk.f32.gmra.mxu1 %vm406_vm2, %v3800_v39  ;;  %v2568_v39 = vld [vmem:[%s5765_s5 + $0xc8] sm:$0xff]  ;;  %5849 = vst [vmem:[#allocation71_spill] sm:$0xff] %v4222_v34 }
 0x253   :  { %2694 = vmatpush.msra.mxu3 %v2568_v39 }
 0x255   :  { %3011 = vmatmul.msk.f32.gmra.mxu2 %vm406_vm2, %v4017_v48  ;;  %3041 = vmatmul.msk.f32.gmra.mxu3 %vm406_vm2, %v4009_v40  ;;  %v4224_v40 = vpop.f32.mrf.mxu2 }
 0x256   :  { %3069 = vmatmul.msk.f32.gmra.mxu0 %vm406_vm2, %v4204_v2  ;;  %5850 = vst [vmem:[#allocation72_spill] sm:$0xff] %v4224_v40 }
 0x257   :  { %v4218_v28 = vpop.f32.mrf.mxu1  ;;  %v4220_v50 = vpop.f32.mrf.mxu3 }
 0x258   :  { %5847 = vst [vmem:[#allocation69_spill] sm:$0xff] %v4218_v28 }
 0x259   :  { %5848 = vst [vmem:[#allocation70_spill] sm:$0xff] %v4220_v50  ;;  %v4246_v40 = vpop.f32.mrf.mxu0  ;;  %v4250_v50 = vpop.permute.xlu1 %2001 }
 0x25a   :  { %2992 = vmatmul.msk.f32.gmra.mxu1 %vm406_vm2, %v3820_v5  ;;  %v4244_v5 = vpop.permute.xlu0 %1473 }
 0x25d   :  { %3012 = vmatmul.msk.f32.gmra.mxu2 %vm406_vm2, %v4037_v4  ;;  %3042 = vmatmul.msk.f32.gmra.mxu3 %vm406_vm2, %v4039_v29  ;;  %v4248_v28 = vpop.f32.mrf.mxu2  ;;  %v2567_v29 = vld [vmem:[%s5765_s5 + $0xc0] sm:$0xff] }
 0x25e   :  { %3070 = vmatmul.msk.f32.gmra.mxu0 %vm406_vm2, %v4230_v38  ;;  %5853 = vst [vmem:[#allocation75_spill] sm:$0xff] %v4248_v28  ;;  %2695 = vmatpush.msra.mxu3 %v2567_v29 }
 0x25f   :  { %v4238_v52 = vpop.f32.mrf.mxu1  ;;  %v4240_v39 = vpop.f32.mrf.mxu3 }
 0x260   :  { %5851 = vst [vmem:[#allocation73_spill] sm:$0xff] %v4238_v52 }
 0x261   :  { %5852 = vst [vmem:[#allocation74_spill] sm:$0xff] %v4240_v39  ;;  %v4278_v34 = vpop.f32.mrf.mxu0  ;;  %v4290_v29 = vpop.permute.xlu1 %1477 }
 0x262   :  { %2993 = vmatmul.msk.f32.gmra.mxu1 %vm406_vm2, %v3818_v59  ;;  %v2551_v59 = vld [vmem:[%s5765_s5 + $0x40] sm:$0xff]  ;;  %v4272_v39 = vpop.permute.xlu0 %2003 }
 0x263   :  { %2582 = vmatpush.msra.mxu2 %v2551_v59 }
 0x265   :  { %3013 = vmatmul.msk.f32.gmra.mxu2 %vm406_vm2, %v4064_v62  ;;  %3043 = vmatmul.msk.f32.gmra.mxu3 %vm406_vm2, %v4017_v48  ;;  %v4270_v48 = vpop.permute.xlu2 %1475 }
 0x266   :  { %3071 = vmatmul.msk.f32.gmra.mxu0 %vm406_vm2, %v4250_v50 }
 0x267   :  { %v4264_v28 = vpop.f32.mrf.mxu1  ;;  %v4266_v52 = vpop.f32.mrf.mxu3 }
 0x268   :  { %5854 = vst [vmem:[#allocation76_spill] sm:$0xff] %v4264_v28  ;;  %v4280_v28 = vpop.f32.mrf.mxu2 }
 0x269   :  { %5855 = vst [vmem:[#allocation77_spill] sm:$0xff] %v4266_v52  ;;  %v4318_v45 = vpop.permute.xlu1 %2007 }
 0x26a   :  { %2994 = vmatmul.msk.f32.gmra.mxu1 %vm406_vm2, %v3858_v24  ;;  %5856 = vst [vmem:[#allocation78_spill] sm:$0xff] %v4280_v28  ;;  %v2550_v28 = vld [vmem:[%s5765_s5 + $0x38] sm:$0xff]  ;;  %v4316_v15 = vpop.permute.xlu0 %1479 }
 0x26b   :  { %2583 = vmatpush.msra.mxu2 %v2550_v28 }
 0x26d   :  { %3014 = vmatmul.msk.f32.gmra.mxu2 %vm406_vm2, %v4052_v41  ;;  %3044 = vmatmul.msk.f32.gmra.mxu3 %vm406_vm2, %v4037_v4  ;;  %v4292_v52 = vpop.permute.xlu2 %2005 }
 0x26e   :  { %3072 = vmatmul.msk.f32.gmra.mxu0 %vm406_vm2, %v4272_v39 }
 0x26f   :  { %v4284_v59 = vpop.f32.mrf.mxu1  ;;  %v4286_v24 = vpop.f32.mrf.mxu3 }
 0x270   :  { %5857 = vst [vmem:[#allocation79_spill] sm:$0xff] %v4284_v59  ;;  %v4298_v4 = vpop.f32.mrf.mxu2 }
 0x271   :  { %5858 = vst [vmem:[#allocation80_spill] sm:$0xff] %v4286_v24 }
 0x272   :  { %2995 = vmatmul.msk.f32.gmra.mxu1 %vm406_vm2, %v3879_v9  ;;  %v2566_v9 = vld [vmem:[%s5765_s5 + $0xb8] sm:$0xff]  ;;  %v4338_v11 = vpop.permute.xlu0 %2009 }
 0x273   :  { %2696 = vmatpush.msra.mxu3 %v2566_v9  ;;  %5866 = vst [vmem:[#allocation88_spill] sm:$0xff] %v4338_v11 }
 0x275   :  { %3015 = vmatmul.msk.f32.gmra.mxu2 %vm406_vm2, %v4095_v20  ;;  %3045 = vmatmul.msk.f32.gmra.mxu3 %vm406_vm2, %v4064_v62  ;;  %v4312_v62 = vpop.f32.mrf.mxu0 }
 0x276   :  { %3073 = vmatmul.msk.f32.gmra.mxu0 %vm406_vm2, %v4292_v52  ;;  %5861 = vst [vmem:[#allocation83_spill] sm:$0xff] %v4312_v62 }
 0x277   :  { %v4308_v59 = vpop.f32.mrf.mxu1  ;;  %v4310_v24 = vpop.f32.mrf.mxu3 }
 0x278   :  { %5859 = vst [vmem:[#allocation81_spill] sm:$0xff] %v4308_v59 }
 0x279   :  { %5860 = vst [vmem:[#allocation82_spill] sm:$0xff] %v4310_v24  ;;  %v4336_v24 = vpop.permute.xlu2 %1481 }
 0x27a   :  { %2996 = vmatmul.msk.f32.gmra.mxu1 %vm406_vm2, %v3838_v23 }
 0x27d   :  { %3016 = vmatmul.msk.f32.gmra.mxu2 %vm406_vm2, %v4114_v43  ;;  %3046 = vmatmul.msk.f32.gmra.mxu3 %vm406_vm2, %v4052_v41  ;;  %v4334_v23 = vpop.f32.mrf.mxu0  ;;  %v2549_v41 = vld [vmem:[%s5765_s5 + $0x30] sm:$0xff] }
 0x27e   :  { %3074 = vmatmul.msk.f32.gmra.mxu0 %vm406_vm2, %v4318_v45  ;;  %5865 = vst [vmem:[#allocation87_spill] sm:$0xff] %v4334_v23  ;;  %2584 = vmatpush.msra.mxu2 %v2549_v41 }
 0x27f   :  { %v4326_v28 = vpop.f32.mrf.mxu1  ;;  %v4328_v9 = vpop.f32.mrf.mxu2 }
 0x280   :  { %5862 = vst [vmem:[#allocation84_spill] sm:$0xff] %v4326_v28  ;;  %v4330_v59 = vpop.f32.mrf.mxu3 }
 0x281   :  { %5863 = vst [vmem:[#allocation85_spill] sm:$0xff] %v4328_v9  ;;  %v4364_v16 = vpop.permute.xlu2 %2011 }
 0x282   :  { %5864 = vst [vmem:[#allocation86_spill] sm:$0xff] %v4330_v59  ;;  %2997 = vmatmul.msk.f32.gmra.mxu1 %vm406_vm2, %v3913_v13  ;;  %v2565_v13 = vld [vmem:[%s5765_s5 + $0xb0] sm:$0xff] }
 0x283   :  { %2697 = vmatpush.msra.mxu3 %v2565_v13  ;;  %5871 = vst [vmem:[#allocation93_spill] sm:$0xff] %v4364_v16 }
 0x285   :  { %3017 = vmatmul.msk.f32.gmra.mxu2 %vm406_vm2, %v4136_v46  ;;  %3047 = vmatmul.msk.f32.gmra.mxu3 %vm406_vm2, %v4095_v20  ;;  %v4360_v20 = vpop.permute.xlu1 %1483  ;;  %v4362_v7 = vpop.f32.mrf.mxu0 }
 0x286   :  { %3075 = vmatmul.msk.f32.gmra.mxu0 %vm406_vm2, %v4338_v11  ;;  %5870 = vst [vmem:[#allocation92_spill] sm:$0xff] %v4362_v7 }
 0x287   :  { %v4352_v28 = vpop.f32.mrf.mxu1 }
 0x288   :  { %5867 = vst [vmem:[#allocation89_spill] sm:$0xff] %v4352_v28  ;;  %v4354_v59 = vpop.f32.mrf.mxu2  ;;  %v4356_v32 = vpop.f32.mrf.mxu3 }
 0x289   :  { %5868 = vst [vmem:[#allocation90_spill] sm:$0xff] %v4354_v59  ;;  %v4380_v28 = vpop.permute.xlu0 %1485 }
 0x28a   :  { %5869 = vst [vmem:[#allocation91_spill] sm:$0xff] %v4356_v32  ;;  %2998 = vmatmul.msk.f32.gmra.mxu1 %vm406_vm2, %v3941_v10 }
 0x28d   :  { %3018 = vmatmul.msk.f32.gmra.mxu2 %vm406_vm2, %v4156_v47  ;;  %3048 = vmatmul.msk.f32.gmra.mxu3 %vm406_vm2, %v4114_v43  ;;  %v4382_v32 = vpop.permute.xlu1 %2013  ;;  %v2548_v43 = vld [vmem:[%s5765_s5 + $0x28] sm:$0xff] }
 0x28e   :  { %3076 = vmatmul.msk.f32.gmra.mxu0 %vm406_vm2, %v4364_v16  ;;  %5875 = vst [vmem:[#allocation97_spill] sm:$0xff] %v4382_v32  ;;  %2585 = vmatpush.msra.mxu2 %v2548_v43 }
 0x28f   :  { %v4372_v41 = vpop.f32.mrf.mxu1 }
 0x290   :  { %5872 = vst [vmem:[#allocation94_spill] sm:$0xff] %v4372_v41  ;;  %v4374_v13 = vpop.f32.mrf.mxu2  ;;  %v4376_v10 = vpop.f32.mrf.mxu3 }
 0x291   :  { %5873 = vst [vmem:[#allocation95_spill] sm:$0xff] %v4374_v13  ;;  %v4396_v41 = vpop.f32.mrf.mxu0  ;;  %v4408_v3 = vpop.permute.xlu0 %2015  ;;  %v729_v13 = vld [vmem:[%s5767_s3] sm:$0x3] }
 0x292   :  { %5874 = vst [vmem:[#allocation96_spill] sm:$0xff] %v4376_v10  ;;  %3095 = vmatmul.msk.f32.vlgmr.msra.gmra.mxu1 %vm406_vm2, %v4062_v6  ;;  %v2564_v6 = vld [vmem:[%s5765_s5 + $0xa8] sm:$0xff]  ;;  %v4477_v23 = vperm.slane %v729_v13, 0 }
 0x293   :  { %5876 = vst [vmem:[#allocation98_spill] sm:$0xff] %v4396_v41  ;;  %2698 = vmatpush.msra.mxu3 %v2564_v6 }
 0x294   :  { %5880 = vst [vmem:[#allocation102_spill] sm:$0xff] %v4408_v3 }
 0x295   :  { %3019 = vmatmul.msk.f32.gmra.mxu2 %vm406_vm2, %v4182_v63  ;;  %3049 = vmatmul.msk.f32.gmra.mxu3 %vm406_vm2, %v4136_v46 }
 0x296   :  { %3077 = vmatmul.msk.f32.gmra.mxu0 %vm406_vm2, %v4382_v32  ;;  %v4406_v32 = vpop.permute.xlu2 %1487 }
 0x297   :  { %v4398_v10 = vpop.f32.mrf.mxu1 }
 0x298   :  { %5877 = vst [vmem:[#allocation99_spill] sm:$0xff] %v4398_v10  ;;  %v4400_v7 = vpop.f32.mrf.mxu2  ;;  %v4402_v46 = vpop.f32.mrf.mxu3 }
 0x299   :  { %5878 = vst [vmem:[#allocation100_spill] sm:$0xff] %v4400_v7  ;;  %v4479_v16 = vpop.permute.xlu0 %2019 }
 0x29a   :  { %5879 = vst [vmem:[#allocation101_spill] sm:$0xff] %v4402_v46  ;;  %3096 = vmatmul.msk.f32.gmra.mxu1 %vm406_vm2, %v4093_v18  ;;  %v4422_v18 = vpop.f32.mrf.mxu0  ;;  %v1224_v46 = vld [vmem:[%s5766_s4 + $0x2] sm:$0x3] }
 0x29b   :  { %5884 = vst [vmem:[#allocation106_spill] sm:$0xff] %v4422_v18 }
 0x29c   :  { %5889 = vst [vmem:[#allocation111_spill] sm:$0xff] %v4479_v16 }
 0x29d   :  { %3020 = vmatmul.msk.f32.gmra.mxu2 %vm406_vm2, %v4202_v1  ;;  %3050 = vmatmul.msk.f32.gmra.mxu3 %vm406_vm2, %v4156_v47  ;;  %v730_v47 = vld [vmem:[%s5766_s4] sm:$0x3] }
 0x29e   :  { %3078 = vmatmul.msk.f32.gmra.mxu0 %vm406_vm2, %v4408_v3  ;;  %v4429_v41 = vpop.permute.xlu2 %2017  ;;  %v4457_v3 = vperm.slane %v730_v47, 0 }
 0x29f   :  { %v4416_v43 = vpop.f32.mrf.mxu1  ;;  %5885 = vst [vmem:[#allocation107_spill] sm:$0xff] %v4429_v41 }
 0x2a0   :  { %5881 = vst [vmem:[#allocation103_spill] sm:$0xff] %v4416_v43  ;;  %v4418_v6 = vpop.f32.mrf.mxu2  ;;  %v4420_v10 = vpop.f32.mrf.mxu3  ;;  %v2563_v43 = vld [vmem:[%s5765_s5 + $0xa0] sm:$0xff] }
 0x2a1   :  { %5882 = vst [vmem:[#allocation104_spill] sm:$0xff] %v4418_v6  ;;  %2699 = vmatpush.msra.mxu3 %v2563_v43 }
 0x2a2   :  { %5883 = vst [vmem:[#allocation105_spill] sm:$0xff] %v4420_v10  ;;  %3097 = vmatmul.msk.f32.gmra.mxu1 %vm406_vm2, %v4116_v58  ;;  %v2547_v58 = vld [vmem:[%s5765_s5 + $0x20] sm:$0xff]  ;;  %v4446_v10 = vperm.slane %v1224_v46, 0  ;;  %v4459_v7 = vpop.f32.mrf.mxu0 }
 0x2a3   :  { %2586 = vmatpush.msra.mxu2 %v2547_v58 }
 0x2a4   :  { %v1244_v43 = vmul.f32 %v4446_v10, %v3791_v17  ;;  %v1781_v17 = vld [vmem:[%s5767_s3 + $0x4] sm:$0x3] }
 0x2a5   :  { %3021 = vmatmul.msk.f32.gmra.mxu2 %vm406_vm2, %v4228_v22  ;;  %3051 = vmatmul.msk.f32.gmra.mxu3 %vm406_vm2, %v4182_v63  ;;  %v1223_v63 = vld [vmem:[%s5767_s3 + $0x2] sm:$0x3]  ;;  %v4498_v11 = vperm.slane %v1781_v17, 0 }
 0x2a6   :  { %3079 = vmatmul.msk.f32.gmra.mxu0 %vm406_vm2, %v4429_v41  ;;  %v4468_v58 = vperm.slane %v1223_v63, 0 }
 0x2a7   :  { %v4448_v18 = vpop.f32.mrf.mxu1 }
 0x2a8   :  { %5886 = vst [vmem:[#allocation108_spill] sm:$0xff] %v4448_v18  ;;  %v4453_v6 = vpop.f32.mrf.mxu2  ;;  %v4455_v41 = vpop.f32.mrf.mxu3 }
 0x2a9   :  { %5887 = vst [vmem:[#allocation109_spill] sm:$0xff] %v4453_v6  ;;  %v4470_v18 = vpop.permute.xlu1 %1489  ;;  %v750_v6 = vmul.f32 %v4457_v3, %v3545_v57 }
 0x2aa   :  { %5888 = vst [vmem:[#allocation110_spill] sm:$0xff] %v4455_v41  ;;  %3098 = vmatmul.msk.f32.gmra.mxu1 %vm406_vm2, %v4142_v54  ;;  %v1782_v41 = vld [vmem:[%s5766_s4 + $0x4] sm:$0x3]  ;;  %v1313_v54 = vadd.f32 %v4468_v58, %v1244_v43  ;;  %v1246_v43 = vmul.f32 %v4446_v10, %v3808_v60  ;;  %v2546_v60 = vld [vmem:[%s5765_s5 + $0x18] sm:$0xff] }
 0x2ab   :  { %v4491_v57 = vperm.slane %v1782_v41, 0  ;;  %v819_v62 = vadd.f32 %v4477_v23, %v750_v6  ;;  %2587 = vmatpush.msra.mxu2 %v2546_v60 }
 0x2ad   :  { %3022 = vmatmul.msk.f32.gmra.mxu2 %vm406_vm2, %v4244_v5  ;;  %3052 = vmatmul.msk.f32.gmra.mxu3 %vm406_vm2, %v4202_v1  ;;  %v1377_v30 = vmul.f32 %v1313_v54, %v819_v62  ;;  %v4534_v54 = vperm.slane %v1224_v46, 1  ;;  %v4548_v46 = vperm.slane %v729_v13, 1 }
 0x2ae   :  { %3080 = vmatmul.msk.f32.gmra.mxu0 %vm406_vm2, %v4479_v16  ;;  %v4505_v16 = vpop.f32.mrf.mxu0 }
 0x2af   :  { %v4493_v61 = vpop.f32.mrf.mxu1  ;;  %v1245_v60 = vmul.f32 %v4534_v54, %v4176_v0  ;;  %v4566_v0 = vperm.slane %v1782_v41, 1  ;;  %v1250_v41 = vmul.f32 %v4446_v10, %v3846_v12  ;;  %v2545_v12 = vld [vmem:[%s5765_s5 + $0x10] sm:$0xff] }
 0x2b0   :  { %5890 = vst [vmem:[#allocation112_spill] sm:$0xff] %v4493_v61  ;;  %v1593_v59 = vpop.f32.mrf.mxu2  ;;  %v4495_v56 = vpop.f32.mrf.mxu3  ;;  %2588 = vmatpush.msra.mxu2 %v2545_v12 }
 0x2b1   :  { %5891 = vst [vmem:[#allocation113_spill] sm:$0xff] %v4495_v56  ;;  %v1802_v1 = vmul.f32 %v4491_v57, %v1593_v59  ;;  %v752_v56 = vmul.f32 %v4457_v3, %v3562_v27  ;;  %v4510_v9 = vpop.permute.xlu1 %2021  ;;  %v2562_v27 = vld [vmem:[%s5765_s5 + $0x98] sm:$0xff] }
 0x2b2   :  { %3099 = vmatmul.msk.f32.gmra.mxu1 %vm406_vm2, %v4158_v53  ;;  %2700 = vmatpush.msra.mxu3 %v2562_v27 }
 0x2b3   :  { %v1871_v61 = vadd.f32 %v4498_v11, %v1802_v1  ;;  %v821_v62 = vadd.f32 %v4477_v23, %v752_v56 }
 0x2b5   :  { %v4512_v6 = vmul.f32 %v1871_v61, %v1377_v30  ;;  %3023 = vmatmul.msk.f32.gmra.mxu2 %vm406_vm2, %v4270_v48  ;;  %3053 = vmatmul.msk.f32.gmra.mxu3 %vm406_vm2, %v4228_v22  ;;  %v1315_v30 = vadd.f32 %v4468_v58, %v1246_v43  ;;  %v4531_v22 = vperm.slane %v730_v47, 1  ;;  %v754_v47 = vmul.f32 %v4457_v3, %v3578_v33 }
 0x2b6   :  { %3081 = vmatmul.msk.f32.gmra.mxu0 %vm406_vm2, %v4510_v9 }
 0x2b7   :  { %5892 = vst [vmem:[#allocation114_spill] sm:$0xff] %v4512_v6  ;;  %v4527_v61 = vpop.f32.mrf.mxu1  ;;  %v1248_v6 = vmul.f32 %v4446_v10, %v3828_v49  ;;  %v1379_v43 = vmul.f32 %v1315_v30, %v821_v62  ;;  %v751_v56 = vmul.f32 %v4531_v22, %v3657_v19  ;;  %v4552_v49 = vpop.permute.xlu2 %2023 }
 0x2b8   :  { %5893 = vst [vmem:[#allocation115_spill] sm:$0xff] %v4527_v61  ;;  %v1596_v53 = vpop.f32.mrf.mxu2  ;;  %v4529_v59 = vpop.f32.mrf.mxu3 }
 0x2b9   :  { %v1804_v1 = vmul.f32 %v4491_v57, %v1596_v53  ;;  %v4550_v53 = vperm.slane %v1223_v63, 1  ;;  %v4554_v61 = vpop.f32.mrf.mxu0  ;;  %v1317_v33 = vadd.f32 %v4468_v58, %v1248_v6  ;;  %v823_v63 = vadd.f32 %v4477_v23, %v754_v47 }
 0x2ba   :  { %3100 = vmatmul.msk.f32.gmra.mxu1 %vm406_vm2, %v4184_v42 }
 0x2bb   :  { %v1873_v27 = vadd.f32 %v4498_v11, %v1804_v1  ;;  %v1314_v19 = vadd.f32 %v4550_v53, %v1245_v60  ;;  %v820_v1 = vadd.f32 %v4548_v46, %v751_v56  ;;  %v4584_v56 = vpop.permute.xlu0 %2025 }
 0x2bd   :  { %v4556_v42 = vmul.f32 %v1873_v27, %v1379_v43  ;;  %3024 = vmatmul.msk.f32.gmra.mxu2 %vm406_vm2, %v4290_v29  ;;  %3054 = vmatmul.msk.f32.gmra.mxu3 %vm406_vm2, %v4244_v5  ;;  %v4572_v43 = vperm.slane %v1781_v17, 1  ;;  %v1381_v27 = vmul.f32 %v1317_v33, %v823_v63  ;;  %v1378_v60 = vmul.f32 %v1314_v19, %v820_v1 }
 0x2be   :  { %3082 = vmatmul.msk.f32.gmra.mxu0 %vm406_vm2, %v4552_v49  ;;  %v756_v17 = vmul.f32 %v4457_v3, %v3594_v35  ;;  %v2561_v35 = vld [vmem:[%s5765_s5 + $0x90] sm:$0xff] }
 0x2bf   :  { %v4568_v13 = vpop.f32.mrf.mxu1  ;;  %2701 = vmatpush.msra.mxu3 %v2561_v35 }
 0x2c0   :  { %5894 = vst [vmem:[#allocation116_spill] sm:$0xff] %v4568_v13  ;;  %v1599_v30 = vpop.f32.mrf.mxu2  ;;  %v1706_v62 = vpop.f32.mrf.mxu3  ;;  %v825_v63 = vadd.f32 %v4477_v23, %v756_v17 }
 0x2c1   :  { %v1806_v5 = vmul.f32 %v4491_v57, %v1599_v30  ;;  %v1803_v6 = vmul.f32 %v4566_v0, %v1706_v62  ;;  %v4603_v33 = vpop.f32.mrf.mxu0 }
 0x2c2   :  { %3101 = vmatmul.msk.f32.gmra.mxu1 %vm406_vm2, %v4204_v2  ;;  %v1319_v2 = vadd.f32 %v4468_v58, %v1250_v41  ;;  %v758_v41 = vmul.f32 %v4457_v3, %v3610_v37 }
 0x2c3   :  { %v1875_v47 = vadd.f32 %v4498_v11, %v1806_v5  ;;  %v1872_v13 = vadd.f32 %v4572_v43, %v1803_v6  ;;  %v1252_v6 = vmul.f32 %v4446_v10, %v3865_v44 }
 0x2c4   :  { %v1383_v5 = vmul.f32 %v1319_v2, %v825_v63  ;;  %v827_v37 = vadd.f32 %v4477_v23, %v758_v41  ;;  %v1254_v63 = vmul.f32 %v4446_v10, %v3885_v36  ;;  %v2560_v36 = vld [vmem:[%s5765_s5 + $0x88] sm:$0xff] }
 0x2c5   :  { %v4586_v30 = vmul.f32 %v1875_v47, %v1381_v27  ;;  %v4588_v62 = vmul.f32 %v1872_v13, %v1378_v60  ;;  %3025 = vmatmul.msk.f32.gmra.mxu2 %vm406_vm2, %v4316_v15  ;;  %3055 = vmatmul.msk.f32.gmra.mxu3 %vm406_vm2, %v4270_v48  ;;  %v4618_v60 = vpop.permute.xlu1 %2027  ;;  %v1321_v44 = vadd.f32 %v4468_v58, %v1252_v6 }
 0x2c6   :  { %3083 = vmatmul.msk.f32.gmra.mxu0 %vm406_vm2, %v4584_v56  ;;  %v760_v6 = vmul.f32 %v4457_v3, %v3626_v51  ;;  %v1323_v51 = vadd.f32 %v4468_v58, %v1254_v63  ;;  %2702 = vmatpush.msra.mxu3 %v2560_v36 }
 0x2c7   :  { %v4605_v19 = vpop.f32.mrf.mxu1 }
 0x2c8   :  { %5895 = vst [vmem:[#allocation117_spill] sm:$0xff] %v4605_v19  ;;  %v1602_v48 = vpop.f32.mrf.mxu2  ;;  %v4607_v13 = vpop.f32.mrf.mxu3 }
 0x2c9   :  { %v1808_v1 = vmul.f32 %v4491_v57, %v1602_v48  ;;  %v4634_v35 = vpop.f32.mrf.mxu0  ;;  %v1385_v48 = vmul.f32 %v1321_v44, %v827_v37  ;;  %v829_v37 = vadd.f32 %v4477_v23, %v760_v6 }
 0x2ca   :  { %3102 = vmatmul.msk.f32.gmra.mxu1 %vm406_vm2, %v4230_v38 }
 0x2cb   :  { %v1877_v27 = vadd.f32 %v4498_v11, %v1808_v1 }
 0x2cd   :  { %v4620_v47 = vmul.f32 %v1877_v27, %v1383_v5  ;;  %3026 = vmatmul.msk.f32.gmra.mxu2 %vm406_vm2, %v4336_v24  ;;  %3056 = vmatmul.msk.f32.gmra.mxu3 %vm406_vm2, %v4290_v29  ;;  %v2544_v29 = vld [vmem:[%s5765_s5 + $0x8] sm:$0xff]  ;;  %v2543_v5 = vld [vmem:[%s5765_s5] sm:$0xff]  ;;  %v4650_v27 = vpop.permute.xlu2 %2029 }
 0x2ce   :  { %3084 = vmatmul.msk.f32.gmra.mxu0 %vm406_vm2, %v4618_v60  ;;  %2589 = vmatpush.msra.mxu2 %v2544_v29  ;;  %v1256_v29 = vmul.f32 %v4446_v10, %v3903_v8 }
 0x2cf   :  { %v4629_v38 = vpop.f32.mrf.mxu1 }
 0x2d0   :  { %5896 = vst [vmem:[#allocation118_spill] sm:$0xff] %v4629_v38  ;;  %v1605_v17 = vpop.f32.mrf.mxu2  ;;  %v4631_v12 = vpop.f32.mrf.mxu3  ;;  %2590 = vmatpush.msra.mxu2 %v2543_v5  ;;  %v1325_v8 = vadd.f32 %v4468_v58, %v1256_v29  ;;  %v4706_v29 = vld [vmem:[%s5766_s4 + $0x6] sm:$0x3] }
 0x2d1   :  { %v1810_v2 = vmul.f32 %v4491_v57, %v1605_v17  ;;  %v4679_v5 = vpop.permute.xlu0 %2031 }
 0x2d2   :  { %3103 = vmatmul.msk.f32.gmra.mxu1 %vm406_vm2, %v4250_v50 }
 0x2d3   :  { %v1879_v1 = vadd.f32 %v4498_v11, %v1810_v2  ;;  %v1387_v2 = vmul.f32 %v1323_v51, %v829_v37  ;;  %v1258_v37 = vmul.f32 %v4446_v10, %v3929_v26 }
 0x2d5   :  { %v4652_v50 = vmul.f32 %v1879_v1, %v1385_v48  ;;  %3027 = vmatmul.msk.f32.gmra.mxu2 %vm406_vm2, %v4360_v20  ;;  %3057 = vmatmul.msk.f32.gmra.mxu3 %vm406_vm2, %v4316_v15  ;;  %v4674_v48 = vpop.f32.mrf.mxu0  ;;  %v762_v1 = vmul.f32 %v4457_v3, %v3642_v31  ;;  %v1327_v26 = vadd.f32 %v4468_v58, %v1258_v37 }
 0x2d6   :  { %3085 = vmatmul.msk.f32.gmra.mxu0 %vm406_vm2, %v4650_v27 }
 0x2d7   :  { %v4664_v41 = vpop.f32.mrf.mxu1  ;;  %v831_v31 = vadd.f32 %v4477_v23, %v762_v1 }
 0x2d8   :  { %5897 = vst [vmem:[#allocation119_spill] sm:$0xff] %v4664_v41  ;;  %v1608_v44 = vpop.f32.mrf.mxu2  ;;  %v4666_v17 = vpop.f32.mrf.mxu3 }
 0x2d9   :  { %5898 = vst [vmem:[#allocation120_spill] sm:$0xff] %v4666_v17  ;;  %v1812_v15 = vmul.f32 %v4491_v57, %v1608_v44 }
 0x2da   :  { %3104 = vmatmul.msk.f32.gmra.mxu1 %vm406_vm2, %v4272_v39 }
 0x2db   :  { %v1881_v63 = vadd.f32 %v4498_v11, %v1812_v15 }
 0x2dd   :  { %v4681_v36 = vmul.f32 %v1881_v63, %v1387_v2  ;;  %3028 = vmatmul.msk.f32.gmra.mxu2 %vm406_vm2, %v4380_v28  ;;  %3058 = vmatmul.msk.f32.gmra.mxu3 %vm406_vm2, %v4336_v24  ;;  %v1389_v24 = vmul.f32 %v1325_v8, %v831_v31  ;;  %v764_v2 = vmul.f32 %v4457_v3, %v3661_v21  ;;  %v4708_v63 = vpop.permute.xlu1 %2033  ;;  %v4710_v1 = vpop.f32.mrf.mxu0  ;;  %v4727_v8 = vperm.slane %v4706_v29, 0 }
 0x2de   :  { %3086 = vmatmul.msk.f32.gmra.mxu0 %vm406_vm2, %v4679_v5  ;;  %v1230_v21 = vmul.f32 %v4446_v10, %v4246_v40 }
 0x2df   :  { %5899 = vst [vmem:[#allocation121_spill] sm:$0xff] %v4681_v36  ;;  %v4690_v39 = vpop.f32.mrf.mxu1  ;;  %v2346_v41 = vmul.f32 %v4727_v8, %v4459_v7 }
 0x2e0   :  { %5900 = vst [vmem:[#allocation122_spill] sm:$0xff] %v4690_v39  ;;  %v1611_v6 = vpop.f32.mrf.mxu2  ;;  %v4692_v51 = vpop.f32.mrf.mxu3 }
 0x2e1   :  { %5901 = vst [vmem:[#allocation123_spill] sm:$0xff] %v4692_v51  ;;  %v1814_v44 = vmul.f32 %v4491_v57, %v1611_v6 }
 0x2e2   :  { %3105 = vmatmul.msk.f32.gmra.mxu1 %vm406_vm2, %v4292_v52  ;;  %v2559_v52 = vld [vmem:[%s5765_s5 + $0x80] sm:$0xff] }
 0x2e3   :  { %v1883_v15 = vadd.f32 %v4498_v11, %v1814_v44  ;;  %2703 = vmatpush.msra.mxu3 %v2559_v52  ;;  %v4735_v44 = vld [vmem:[%s5767_s3 + $0x6] sm:$0x3]  ;;  %v1299_v52 = vadd.f32 %v4468_v58, %v1230_v21 }
 0x2e4   :  { %v4752_v38 = vperm.slane %v4735_v44, 0 }
 0x2e5   :  { %v4712_v6 = vmul.f32 %v1883_v15, %v1389_v24  ;;  %3029 = vmatmul.msk.f32.gmra.mxu2 %vm406_vm2, %v4406_v32  ;;  %3059 = vmatmul.msk.f32.gmra.mxu3 %vm406_vm2, %v4360_v20  ;;  %v833_v20 = vadd.f32 %v4477_v23, %v764_v2  ;;  %v736_v24 = vmul.f32 %v4457_v3, %v3842_v14 }
 0x2e6   :  { %3087 = vmatmul.msk.f32.gmra.mxu0 %vm406_vm2, %v4708_v63  ;;  %v1788_v15 = vmul.f32 %v4491_v57, %v4298_v4  ;;  %v1260_v2 = vmul.f32 %v4446_v10, %v3950_v25  ;;  %v766_v4 = vmul.f32 %v4457_v3, %v3678_v55  ;;  %v1232_v25 = vmul.f32 %v4446_v10, %v4278_v34 }
 0x2e7   :  { %5902 = vst [vmem:[#allocation124_spill] sm:$0xff] %v4712_v6  ;;  %v4729_v31 = vpop.f32.mrf.mxu1 }
 0x2e8   :  { %5903 = vst [vmem:[#allocation125_spill] sm:$0xff] %v4729_v31  ;;  %v1614_v40 = vpop.f32.mrf.mxu2  ;;  %v4737_v37 = vpop.f32.mrf.mxu3  ;;  %v1391_v31 = vmul.f32 %v1327_v26, %v833_v20  ;;  %v805_v26 = vadd.f32 %v4477_v23, %v736_v24  ;;  %v1857_v21 = vadd.f32 %v4498_v11, %v1788_v15  ;;  %v1329_v7 = vadd.f32 %v4468_v58, %v1260_v2 }
 0x2e9   :  { %5904 = vst [vmem:[#allocation126_spill] sm:$0xff] %v4737_v37  ;;  %v1816_v39 = vmul.f32 %v4491_v57, %v1614_v40  ;;  %v4759_v20 = vpop.permute.xlu2 %2035  ;;  %v4773_v40 = vpop.f32.mrf.mxu0  ;;  %v835_v24 = vadd.f32 %v4477_v23, %v766_v4  ;;  %v5910_v37 = vld [vmem:[#allocation85_spill] sm:$0xff] }
 0x2ea   :  { %3106 = vmatmul.msk.f32.gmra.mxu1 %vm406_vm2, %v4318_v45  ;;  %5905 = vst [vmem:[#allocation127_spill] sm:$0xff] %v4759_v20  ;;  %v1363_v55 = vmul.f32 %v1299_v52, %v805_v26  ;;  %v1790_v52 = vmul.f32 %v4491_v57, %v5910_v37  ;;  %v5911_v26 = vld [vmem:[#allocation35_spill] sm:$0xff] }
 0x2eb   :  { %v1885_v14 = vadd.f32 %v4498_v11, %v1816_v39  ;;  %v2415_v39 = vadd.f32 %v4752_v38, %v2346_v41  ;;  %v1301_v41 = vadd.f32 %v4468_v58, %v1232_v25  ;;  %v1393_v4 = vmul.f32 %v1329_v7, %v835_v24  ;;  %v5916_v7 = vld [vmem:[#allocation83_spill] sm:$0xff] }
 0x2ec   :  { %v1921_v19 = vmul.f32 %v1857_v21, %v1363_v55  ;;  %v5913_v55 = vld [vmem:[#allocation3_spill] sm:$0xff]  ;;  %v1859_v25 = vadd.f32 %v4498_v11, %v1790_v52 }
 0x2ed   :  { %v4761_v45 = vmul.f32 %v1885_v14, %v1391_v31  ;;  %3030 = vmatmul.msk.f32.gmra.mxu2 %vm406_vm2, %v4470_v18  ;;  %3060 = vmatmul.msk.f32.gmra.mxu3 %vm406_vm2, %v4380_v28  ;;  %v5909_v28 = vld [vmem:[#allocation22_spill] sm:$0xff]  ;;  %v768_v37 = vmul.f32 %v4457_v3, %v5913_v55 }
 0x2ee   :  { %3088 = vmatmul.msk.f32.gmra.mxu0 %vm406_vm2, %v4759_v20  ;;  %v738_v34 = vmul.f32 %v4457_v3, %v5909_v28  ;;  %v2479_v51 = vmul.f32 %v2415_v39, %v1921_v19  ;;  %v4797_v28 = vpop.permute.xlu0 %2037  ;;  %v1234_v39 = vmul.f32 %v4446_v10, %v5916_v7 }
 0x2ef   :  { %5906 = vst [vmem:[#allocation128_spill] sm:$0xff] %v4761_v45  ;;  %v4775_v31 = vpop.f32.mrf.mxu1  ;;  %v1262_v45 = vmul.f32 %v4446_v10, %v5911_v26 }
 0x2f0   :  { %5907 = vst [vmem:[#allocation129_spill] sm:$0xff] %v4775_v31  ;;  %v1617_v15 = vpop.f32.mrf.mxu2  ;;  %v4778_v14 = vpop.f32.mrf.mxu3  ;;  %v5912_v31 = vld [vmem:[#allocation88_spill] sm:$0xff] }
 0x2f1   :  { %5908 = vst [vmem:[#allocation130_spill] sm:$0xff] %v4778_v14  ;;  %v1818_v2 = vmul.f32 %v4491_v57, %v1617_v15  ;;  %v2348_v14 = vmul.f32 %v4727_v8, %v4505_v16  ;;  %v807_v15 = vadd.f32 %v4477_v23, %v738_v34  ;;  %v1331_v19 = vadd.f32 %v4468_v58, %v1262_v45 }
 0x2f2   :  { %3107 = vmatmul.msk.f32.gmra.mxu1 %vm406_vm2, %v5912_v31  ;;  %5914 = vst [vmem:[#allocation22_spill] sm:$0xff] %v4797_v28  ;;  %v837_v34 = vadd.f32 %v4477_v23, %v768_v37  ;;  %v1303_v37 = vadd.f32 %v4468_v58, %v1234_v39 }
 0x2f3   :  { %v1887_v21 = vadd.f32 %v4498_v11, %v1818_v2  ;;  %v1365_v16 = vmul.f32 %v1301_v41, %v807_v15  ;;  %v2417_v31 = vadd.f32 %v4752_v38, %v2348_v14  ;;  %v4818_v41 = vpop.f32.mrf.mxu0  ;;  %v5921_v14 = vld [vmem:[#allocation39_spill] sm:$0xff] }
 0x2f4   :  { %v1395_v15 = vmul.f32 %v1331_v19, %v837_v34  ;;  %v1264_v7 = vmul.f32 %v4446_v10, %v5921_v14  ;;  %v4833_v34 = vpop.permute.xlu1 %2039 }
 0x2f5   :  { %v4799_v26 = vmul.f32 %v1887_v21, %v1393_v4  ;;  %3061 = vmatmul.msk.f32.gmra.mxu3 %vm406_vm2, %v4406_v32  ;;  %2591 = vmatmul.f32.vlgmr.msra.gmra.mxu2 %v2479_v51  ;;  %v5919_v32 = vld [vmem:[#allocation25_spill] sm:$0xff]  ;;  %v1923_v45 = vmul.f32 %v1859_v25, %v1365_v16  ;;  %v5920_v4 = vld [vmem:[#allocation90_spill] sm:$0xff]  ;;  %5924 = vst [vmem:[#allocation3_spill] sm:$0xff] %v4833_v34 }
 0x2f6   :  { %3089 = vmatmul.msk.f32.gmra.mxu0 %vm406_vm2, %v4797_v28  ;;  %v740_v51 = vmul.f32 %v4457_v3, %v5919_v32  ;;  %v1792_v21 = vmul.f32 %v4491_v57, %v5920_v4  ;;  %v2350_v32 = vmul.f32 %v4727_v8, %v4554_v61  ;;  %v5923_v4 = vld [vmem:[#allocation5_spill] sm:$0xff]  ;;  %v1333_v61 = vadd.f32 %v4468_v58, %v1264_v7 }
 0x2f7   :  { %5915 = vst [vmem:[#allocation85_spill] sm:$0xff] %v4799_v26  ;;  %v4809_v24 = vpop.f32.mrf.mxu1  ;;  %v2481_v16 = vmul.f32 %v2417_v31, %v1923_v45  ;;  %v5926_v31 = vld [vmem:[#allocation87_spill] sm:$0xff] }
 0x2f8   :  { %5917 = vst [vmem:[#allocation35_spill] sm:$0xff] %v4809_v24  ;;  %v1620_v52 = vpop.f32.mrf.mxu2  ;;  %v4812_v2 = vpop.f32.mrf.mxu3  ;;  %v5922_v24 = vld [vmem:[#allocation93_spill] sm:$0xff]  ;;  %v1861_v19 = vadd.f32 %v4498_v11, %v1792_v21 }
 0x2f9   :  { %5918 = vst [vmem:[#allocation88_spill] sm:$0xff] %v4812_v2  ;;  %v1820_v55 = vmul.f32 %v4491_v57, %v1620_v52  ;;  %v770_v2 = vmul.f32 %v4457_v3, %v5923_v4  ;;  %v809_v52 = vadd.f32 %v4477_v23, %v740_v51  ;;  %v2419_v51 = vadd.f32 %v4752_v38, %v2350_v32 }
 0x2fa   :  { %3108 = vmatmul.msk.f32.gmra.mxu1 %vm406_vm2, %v5922_v24  ;;  %v1236_v24 = vmul.f32 %v4446_v10, %v5926_v31  ;;  %v5931_v31 = vld [vmem:[#allocation43_spill] sm:$0xff] }
 0x2fb   :  { %v1889_v25 = vadd.f32 %v4498_v11, %v1820_v55  ;;  %v1367_v39 = vmul.f32 %v1303_v37, %v809_v52  ;;  %v839_v21 = vadd.f32 %v4477_v23, %v770_v2  ;;  %v1266_v32 = vmul.f32 %v4446_v10, %v5931_v31 }
 0x2fc   :  { %v1305_v2 = vadd.f32 %v4468_v58, %v1236_v24 }
 0x2fd   :  { %v4835_v14 = vmul.f32 %v1889_v25, %v1395_v15  ;;  %3062 = vmatmul.msk.f32.gmra.mxu3 %vm406_vm2, %v4470_v18  ;;  %2594 = vmatmul.f32.gmra.mxu2 %v2481_v16  ;;  %v5929_v18 = vld [vmem:[#allocation28_spill] sm:$0xff]  ;;  %v1925_v7 = vmul.f32 %v1861_v19, %v1367_v39  ;;  %v5930_v16 = vld [vmem:[#allocation95_spill] sm:$0xff]  ;;  %v1397_v52 = vmul.f32 %v1333_v61, %v839_v21  ;;  %v4868_v21 = vpop.permute.xlu2 %2041 }
 0x2fe   :  { %3090 = vmatmul.msk.f32.gmra.mxu0 %vm406_vm2, %v4833_v34  ;;  %v742_v25 = vmul.f32 %v4457_v3, %v5929_v18  ;;  %v1794_v4 = vmul.f32 %v4491_v57, %v5930_v16  ;;  %v5933_v18 = vld [vmem:[#allocation7_spill] sm:$0xff]  ;;  %5934 = vst [vmem:[#allocation39_spill] sm:$0xff] %v4868_v21  ;;  %v1335_v24 = vadd.f32 %v4468_v58, %v1266_v32 }
 0x2ff   :  { %5925 = vst [vmem:[#allocation83_spill] sm:$0xff] %v4835_v14  ;;  %v4845_v45 = vpop.f32.mrf.mxu1  ;;  %v5932_v14 = vld [vmem:[#allocation97_spill] sm:$0xff]  ;;  %v2483_v39 = vmul.f32 %v2419_v51, %v1925_v7 }
 0x300   :  { %5927 = vst [vmem:[#allocation25_spill] sm:$0xff] %v4845_v45  ;;  %v1623_v55 = vpop.f32.mrf.mxu2  ;;  %v4848_v15 = vpop.f32.mrf.mxu3  ;;  %v2352_v45 = vmul.f32 %v4727_v8, %v4603_v33  ;;  %v811_v61 = vadd.f32 %v4477_v23, %v742_v25  ;;  %v1863_v16 = vadd.f32 %v4498_v11, %v1794_v4 }
 0x301   :  { %5928 = vst [vmem:[#allocation90_spill] sm:$0xff] %v4848_v15  ;;  %v1822_v37 = vmul.f32 %v4491_v57, %v1623_v55  ;;  %v4862_v15 = vpop.f32.mrf.mxu0  ;;  %v772_v55 = vmul.f32 %v4457_v3, %v5933_v18  ;;  %v5938_v18 = vld [vmem:[#allocation9_spill] sm:$0xff] }
 0x302   :  { %3109 = vmatmul.msk.f32.gmra.mxu1 %vm406_vm2, %v5932_v14  ;;  %v1369_v33 = vmul.f32 %v1305_v2, %v811_v61  ;;  %v2421_v7 = vadd.f32 %v4752_v38, %v2352_v45  ;;  %v774_v4 = vmul.f32 %v4457_v3, %v5938_v18  ;;  %v5944_v18 = vld [vmem:[#allocation47_spill] sm:$0xff] }
 0x303   :  { %v1891_v19 = vadd.f32 %v4498_v11, %v1822_v37  ;;  %v5936_v37 = vld [vmem:[#allocation92_spill] sm:$0xff]  ;;  %v841_v25 = vadd.f32 %v4477_v23, %v772_v55  ;;  %v1268_v34 = vmul.f32 %v4446_v10, %v5944_v18  ;;  %v5947_v18 = vld [vmem:[#allocation10_spill] sm:$0xff] }
 0x304   :  { %v1238_v51 = vmul.f32 %v4446_v10, %v5936_v37  ;;  %v1927_v61 = vmul.f32 %v1863_v16, %v1369_v33  ;;  %v5942_v37 = vld [vmem:[#allocation100_spill] sm:$0xff] }
 0x305   :  { %v4871_v14 = vmul.f32 %v1891_v19, %v1397_v52  ;;  %2597 = vmatmul.f32.gmra.mxu2 %v2483_v39  ;;  %v5939_v52 = vld [vmem:[#allocation38_spill] sm:$0xff]  ;;  %v1796_v45 = vmul.f32 %v4491_v57, %v5942_v37  ;;  %v1399_v26 = vmul.f32 %v1335_v24, %v841_v25  ;;  %v4908_v25 = vperm.slane %v4706_v29, 1 }
 0x306   :  { %3091 = vmatmul.msk.f32.gmra.mxu0 %vm406_vm2, %v4868_v21  ;;  %v1231_v19 = vmul.f32 %v4534_v54, %v5939_v52  ;;  %v5943_v21 = vld [vmem:[#allocation44_spill] sm:$0xff]  ;;  %v5945_v52 = vld [vmem:[#allocation91_spill] sm:$0xff]  ;;  %v1307_v16 = vadd.f32 %v4468_v58, %v1238_v51 }
 0x307   :  { %5935 = vst [vmem:[#allocation93_spill] sm:$0xff] %v4871_v14  ;;  %v4879_v31 = vpop.f32.mrf.mxu1  ;;  %v5941_v14 = vld [vmem:[#allocation31_spill] sm:$0xff]  ;;  %v737_v55 = vmul.f32 %v4531_v22, %v5943_v21  ;;  %v1789_v28 = vmul.f32 %v4566_v0, %v5945_v52  ;;  %v843_v21 = vadd.f32 %v4477_v23, %v774_v4  ;;  %v1865_v51 = vadd.f32 %v4498_v11, %v1796_v45  ;;  %v4914_v52 = vpop.permute.xlu0 %2043 }
 0x308   :  { %5937 = vst [vmem:[#allocation5_spill] sm:$0xff] %v4879_v31  ;;  %v1626_v32 = vpop.f32.mrf.mxu2  ;;  %v4886_v39 = vpop.f32.mrf.mxu3  ;;  %v744_v2 = vmul.f32 %v4457_v3, %v5941_v14  ;;  %v2354_v14 = vmul.f32 %v4727_v8, %v4634_v35  ;;  %v1300_v24 = vadd.f32 %v4550_v53, %v1231_v19  ;;  %v1337_v4 = vadd.f32 %v4468_v58, %v1268_v34 }
 0x309   :  { %5940 = vst [vmem:[#allocation87_spill] sm:$0xff] %v4886_v39  ;;  %v1824_v31 = vmul.f32 %v4491_v57, %v1626_v32  ;;  %v5946_v39 = vld [vmem:[#allocation102_spill] sm:$0xff]  ;;  %v2485_v32 = vmul.f32 %v2421_v7, %v1927_v61  ;;  %v4916_v35 = vpop.f32.mrf.mxu0  ;;  %v806_v7 = vadd.f32 %v4548_v46, %v737_v55  ;;  %v1858_v29 = vadd.f32 %v4572_v43, %v1789_v28 }
 0x30a   :  { %3110 = vmatmul.msk.f32.gmra.mxu1 %vm406_vm2, %v5946_v39  ;;  %v813_v37 = vadd.f32 %v4477_v23, %v744_v2  ;;  %v776_v39 = vmul.f32 %v4457_v3, %v5947_v18  ;;  %5948 = vst [vmem:[#allocation28_spill] sm:$0xff] %v4914_v52  ;;  %v4926_v19 = vperm.slane %v4735_v44, 1  ;;  %v5950_v2 = vld [vmem:[#allocation36_spill] sm:$0xff]  ;;  %v5951_v18 = vld [vmem:[#allocation98_spill] sm:$0xff]  ;;  %v1401_v36 = vmul.f32 %v1337_v4, %v843_v21 }
 0x30b   :  { %v1893_v33 = vadd.f32 %v4498_v11, %v1824_v31  ;;  %v746_v61 = vmul.f32 %v4457_v3, %v5950_v2  ;;  %v1364_v28 = vmul.f32 %v1300_v24, %v806_v7  ;;  %v5955_v2 = vld [vmem:[#allocation49_spill] sm:$0xff]  ;;  %v5957_v24 = vld [vmem:[#allocation96_spill] sm:$0xff] }
 0x30c   :  { %v1371_v45 = vmul.f32 %v1307_v16, %v813_v37  ;;  %v1270_v16 = vmul.f32 %v4446_v10, %v5955_v2  ;;  %v1791_v7 = vmul.f32 %v4566_v0, %v5957_v24 }
 0x30d   :  { %v4918_v31 = vmul.f32 %v1893_v33, %v1399_v26  ;;  %2600 = vmatmul.f32.gmra.mxu2 %v2485_v32  ;;  %v1240_v26 = vmul.f32 %v4446_v10, %v5951_v18  ;;  %v2423_v33 = vadd.f32 %v4752_v38, %v2354_v14  ;;  %v5952_v32 = vld [vmem:[#allocation50_spill] sm:$0xff]  ;;  %v5956_v18 = vld [vmem:[#allocation104_spill] sm:$0xff]  ;;  %v815_v4 = vadd.f32 %v4477_v23, %v746_v61 }
 0x30e   :  { %3092 = vmatmul.msk.f32.gmra.mxu0 %vm406_vm2, %v4914_v52  ;;  %v739_v34 = vmul.f32 %v4531_v22, %v5952_v32  ;;  %v1929_v37 = vmul.f32 %v1865_v51, %v1371_v45  ;;  %v1798_v14 = vmul.f32 %v4491_v57, %v5956_v18  ;;  %v1922_v32 = vmul.f32 %v1858_v29, %v1364_v28  ;;  %v5961_v61 = vld [vmem:[#allocation40_spill] sm:$0xff] }
 0x30f   :  { %5949 = vst [vmem:[#allocation95_spill] sm:$0xff] %v4918_v31  ;;  %v2243_v55 = vpop.f32.mrf.mxu1  ;;  %v5953_v31 = vld [vmem:[#allocation42_spill] sm:$0xff]  ;;  %v2356_v51 = vmul.f32 %v4727_v8, %v4674_v48  ;;  %v1339_v29 = vadd.f32 %v4468_v58, %v1270_v16  ;;  %v748_v16 = vmul.f32 %v4457_v3, %v5961_v61 }
 0x310   :  { %v1233_v52 = vmul.f32 %v4534_v54, %v5953_v31  ;;  %v2347_v44 = vmul.f32 %v4908_v25, %v2243_v55  ;;  %v1629_v6 = vpop.f32.mrf.mxu2  ;;  %v4938_v20 = vpop.f32.mrf.mxu3  ;;  %v5958_v55 = vld [vmem:[#allocation107_spill] sm:$0xff]  ;;  %v2487_v2 = vmul.f32 %v2423_v33, %v1929_v37  ;;  %v1867_v28 = vadd.f32 %v4498_v11, %v1798_v14  ;;  %v5960_v48 = vld [vmem:[#allocation106_spill] sm:$0xff] }
 0x311   :  { %5954 = vst [vmem:[#allocation43_spill] sm:$0xff] %v4938_v20  ;;  %v1826_v17 = vmul.f32 %v4491_v57, %v1629_v6  ;;  %v1309_v20 = vadd.f32 %v4468_v58, %v1240_v26  ;;  %v808_v26 = vadd.f32 %v4548_v46, %v739_v34  ;;  %v1860_v33 = vadd.f32 %v4572_v43, %v1791_v7  ;;  %v4972_v14 = vpop.f32.mrf.mxu0  ;;  %v5963_v7 = vld [vmem:[#allocation46_spill] sm:$0xff] }
 0x312   :  { %v2416_v31 = vadd.f32 %v4926_v19, %v2347_v44  ;;  %3111 = vmatmul.msk.f32.gmra.mxu1 %vm406_vm2, %v5958_v55  ;;  %v1302_v6 = vadd.f32 %v4550_v53, %v1233_v52  ;;  %v4958_v44 = vpop.permute.xlu1 %2045  ;;  %v845_v52 = vadd.f32 %v4477_v23, %v776_v39  ;;  %v1235_v55 = vmul.f32 %v4534_v54, %v5963_v7  ;;  %v5966_v7 = vld [vmem:[#allocation111_spill] sm:$0xff] }
 0x313   :  { %v1895_v45 = vadd.f32 %v4498_v11, %v1826_v17  ;;  %v1242_v17 = vmul.f32 %v4446_v10, %v5960_v48  ;;  %v1373_v37 = vmul.f32 %v1309_v20, %v815_v4  ;;  %v5964_v20 = vld [vmem:[#allocation109_spill] sm:$0xff] }
 0x314   :  { %v2480_v21 = vmul.f32 %v2416_v31, %v1922_v32  ;;  %v5962_v32 = vld [vmem:[#allocation54_spill] sm:$0xff]  ;;  %v1366_v31 = vmul.f32 %v1302_v6, %v808_v26 }
 0x315   :  { %v4960_v18 = vmul.f32 %v1895_v45, %v1401_v36  ;;  %2603 = vmatmul.f32.gmra.mxu2 %v2487_v2  ;;  %v2425_v36 = vadd.f32 %v4752_v38, %v2356_v51  ;;  %v741_v24 = vmul.f32 %v4531_v22, %v5962_v32  ;;  %v1931_v48 = vmul.f32 %v1867_v28, %v1373_v37  ;;  %v5965_v32 = vld [vmem:[#allocation101_spill] sm:$0xff] }
 0x316   :  { %3093 = vmatmul.msk.f32.gmra.mxu0 %vm406_vm2, %v4958_v44  ;;  %2704 = vmatmul.f32.vlgmr.msra.gmra.mxu3 %v2480_v21  ;;  %v1403_v21 = vmul.f32 %v1339_v29, %v845_v52  ;;  %v1800_v51 = vmul.f32 %v4491_v57, %v5964_v20  ;;  %v1311_v61 = vadd.f32 %v4468_v58, %v1242_v17  ;;  %v4999_v20 = vpop.permute.xlu2 %2047 }
 0x317   :  { %5959 = vst [vmem:[#allocation97_spill] sm:$0xff] %v4960_v18  ;;  %v2246_v34 = vpop.f32.mrf.mxu1  ;;  %v1924_v18 = vmul.f32 %v1860_v33, %v1366_v31  ;;  %v1793_v6 = vmul.f32 %v4566_v0, %v5965_v32  ;;  %v2358_v28 = vmul.f32 %v4727_v8, %v4710_v1  ;;  %v2489_v37 = vmul.f32 %v2425_v36, %v1931_v48  ;;  %v5968_v31 = vld [vmem:[#allocation12_spill] sm:$0xff] }
 0x318   :  { %v2349_v45 = vmul.f32 %v4908_v25, %v2246_v34  ;;  %v1632_v2 = vpop.f32.mrf.mxu2  ;;  %v4979_v39 = vpop.f32.mrf.mxu3  ;;  %v5967_v34 = vld [vmem:[#allocation53_spill] sm:$0xff]  ;;  %v1304_v17 = vadd.f32 %v4550_v53, %v1235_v55  ;;  %v1869_v32 = vadd.f32 %v4498_v11, %v1800_v51  ;;  %v810_v1 = vadd.f32 %v4548_v46, %v741_v24 }
 0x319   :  { %v1828_v4 = vmul.f32 %v4491_v57, %v1632_v2  ;;  %v1272_v29 = vmul.f32 %v4446_v10, %v5967_v34  ;;  %v778_v2 = vmul.f32 %v4457_v3, %v5968_v31  ;;  %v5972_v31 = vld [vmem:[#allocation105_spill] sm:$0xff] }
 0x31a   :  { %v2418_v26 = vadd.f32 %v4926_v19, %v2349_v45  ;;  %3112 = vmatmul.msk.f32.gmra.mxu1 %vm406_vm2, %v5966_v7  ;;  %v817_v45 = vadd.f32 %v4477_v23, %v748_v16  ;;  %v2427_v16 = vadd.f32 %v4752_v38, %v2358_v28  ;;  %v1368_v48 = vmul.f32 %v1304_v17, %v810_v1  ;;  %v5023_v1 = vpop.f32.mrf.mxu0 }
 0x31b   :  { %v1897_v52 = vadd.f32 %v4498_v11, %v1828_v4  ;;  %v1862_v4 = vadd.f32 %v4572_v43, %v1793_v6  ;;  %v1341_v36 = vadd.f32 %v4468_v58, %v1272_v29  ;;  %v847_v6 = vadd.f32 %v4477_v23, %v778_v2 }
 0x31c   :  { %v2482_v33 = vmul.f32 %v2418_v26, %v1924_v18  ;;  %v1375_v18 = vmul.f32 %v1311_v61, %v817_v45  ;;  %v5969_v26 = vld [vmem:[#allocation48_spill] sm:$0xff]  ;;  %v1795_v45 = vmul.f32 %v4566_v0, %v5972_v31 }
 0x31d   :  { %v5002_v7 = vmul.f32 %v1897_v52, %v1403_v21  ;;  %2606 = vmatmul.f32.gmra.mxu2 %v2489_v37  ;;  %v1237_v21 = vmul.f32 %v4534_v54, %v5969_v26  ;;  %v5970_v52 = vld [vmem:[#allocation58_spill] sm:$0xff]  ;;  %v1926_v17 = vmul.f32 %v1862_v4, %v1368_v48  ;;  %v1405_v2 = vmul.f32 %v1341_v36, %v847_v6 }
 0x31e   :  { %3094 = vmatmul.msk.f32.gmra.mxu0 %vm406_vm2, %v4999_v20  ;;  %2707 = vmatmul.f32.gmra.mxu3 %v2482_v33  ;;  %v743_v37 = vmul.f32 %v4531_v22, %v5970_v52  ;;  %v1933_v61 = vmul.f32 %v1869_v32, %v1375_v18  ;;  %v5971_v33 = vld [vmem:[#allocation57_spill] sm:$0xff]  ;;  %v2360_v32 = vmul.f32 %v4727_v8, %v4773_v40 }
 0x31f   :  { %v2249_v55 = vpop.f32.mrf.mxu1  ;;  %v1274_v28 = vmul.f32 %v4446_v10, %v5971_v33  ;;  %v1306_v48 = vadd.f32 %v4550_v53, %v1237_v21  ;;  %v1864_v36 = vadd.f32 %v4572_v43, %v1795_v45 }
 0x320   :  { %v2351_v51 = vmul.f32 %v4908_v25, %v2249_v55  ;;  %v1635_v34 = vpop.f32.mrf.mxu2  ;;  %v5013_v24 = vpop.f32.mrf.mxu3  ;;  %v2491_v26 = vmul.f32 %v2427_v16, %v1933_v61  ;;  %v2429_v40 = vadd.f32 %v4752_v38, %v2360_v32  ;;  %v5976_v32 = vld [vmem:[#allocation110_spill] sm:$0xff] }
 0x321   :  { %v1830_v29 = vmul.f32 %v4491_v57, %v1635_v34  ;;  %v5973_v34 = vld [vmem:[#allocation14_spill] sm:$0xff] }
 0x322   :  { %v2420_v55 = vadd.f32 %v4926_v19, %v2351_v51  ;;  %3113 = vmatmul.msk.f32.gmra.mxu1 %vm406_vm2, %v4510_v9  ;;  %v780_v4 = vmul.f32 %v4457_v3, %v5973_v34  ;;  %v812_v51 = vadd.f32 %v4548_v46, %v743_v37  ;;  %v1343_v9 = vadd.f32 %v4468_v58, %v1274_v28  ;;  %v5975_v37 = vld [vmem:[#allocation62_spill] sm:$0xff] }
 0x323   :  { %v1899_v18 = vadd.f32 %v4498_v11, %v1830_v29  ;;  %v5974_v29 = vld [vmem:[#allocation52_spill] sm:$0xff]  ;;  %v745_v28 = vmul.f32 %v4531_v22, %v5975_v37 }
 0x324   :  { %v2484_v52 = vmul.f32 %v2420_v55, %v1926_v17  ;;  %v849_v16 = vadd.f32 %v4477_v23, %v780_v4  ;;  %v1370_v61 = vmul.f32 %v1306_v48, %v812_v51  ;;  %v1239_v21 = vmul.f32 %v4534_v54, %v5974_v29  ;;  %v5977_v4 = vld [vmem:[#allocation61_spill] sm:$0xff] }
 0x325   :  { %v5034_v33 = vmul.f32 %v1899_v18, %v1405_v2  ;;  %2609 = vmatmul.f32.gmra.mxu2 %v2491_v26  ;;  %v1797_v26 = vmul.f32 %v4566_v0, %v5976_v32  ;;  %v1276_v48 = vmul.f32 %v4446_v10, %v5977_v4  ;;  %v5980_v32 = vld [vmem:[#allocation56_spill] sm:$0xff] }
 0x326   :  { %2710 = vmatmul.f32.gmra.mxu3 %v2484_v52  ;;  %v1407_v2 = vmul.f32 %v1343_v9, %v849_v16  ;;  %v1928_v18 = vmul.f32 %v1864_v36, %v1370_v61  ;;  %v2362_v52 = vmul.f32 %v4727_v8, %v4818_v41  ;;  %v1308_v9 = vadd.f32 %v4550_v53, %v1239_v21  ;;  %v5061_v36 = vpop.f32.mrf.mxu0  ;;  %v5979_v61 = vld [vmem:[#allocation16_spill] sm:$0xff] }
 0x327   :  { %v2252_v6 = vpop.f32.mrf.mxu1  ;;  %v1866_v37 = vadd.f32 %v4572_v43, %v1797_v26  ;;  %v1345_v41 = vadd.f32 %v4468_v58, %v1276_v48  ;;  %v5982_v48 = vld [vmem:[#allocation64_spill] sm:$0xff] }
 0x328   :  { %v2353_v17 = vmul.f32 %v4908_v25, %v2252_v6  ;;  %v1638_v31 = vpop.f32.mrf.mxu2  ;;  %v5044_v55 = vpop.f32.mrf.mxu3  ;;  %v5978_v6 = vld [vmem:[#allocation114_spill] sm:$0xff] }
 0x329   :  { %v1832_v45 = vmul.f32 %v4491_v57, %v1638_v31  ;;  %v2493_v29 = vmul.f32 %v2429_v40, %v5978_v6  ;;  %v2431_v40 = vadd.f32 %v4752_v38, %v2362_v52  ;;  %v1278_v52 = vmul.f32 %v4446_v10, %v5982_v48 }
 0x32a   :  { %v2422_v34 = vadd.f32 %v4926_v19, %v2353_v17  ;;  %3114 = vmatmul.msk.f32.gmra.mxu1 %vm406_vm2, %v4552_v49  ;;  %v782_v17 = vmul.f32 %v4457_v3, %v5979_v61  ;;  %v814_v49 = vadd.f32 %v4548_v46, %v745_v28  ;;  %v5981_v28 = vld [vmem:[#allocation67_spill] sm:$0xff] }
 0x32b   :  { %v1901_v51 = vadd.f32 %v4498_v11, %v1832_v45  ;;  %v747_v26 = vmul.f32 %v4531_v22, %v5981_v28 }
 0x32c   :  { %v2486_v16 = vmul.f32 %v2422_v34, %v1928_v18  ;;  %v1372_v21 = vmul.f32 %v1308_v9, %v814_v49  ;;  %v1241_v18 = vmul.f32 %v4534_v54, %v5980_v32  ;;  %v5983_v9 = vld [vmem:[#allocation113_spill] sm:$0xff]  ;;  %v2495_v32 = vmul.f32 %v2431_v40, %v4556_v42 }
 0x32d   :  { %v5065_v31 = vmul.f32 %v1901_v51, %v1407_v2  ;;  %2612 = vmatmul.f32.gmra.mxu2 %v2493_v29  ;;  %v851_v51 = vadd.f32 %v4477_v23, %v782_v17  ;;  %v2364_v17 = vmul.f32 %v4727_v8, %v4862_v15 }
 0x32e   :  { %2713 = vmatmul.f32.gmra.mxu3 %v2486_v16  ;;  %v1930_v29 = vmul.f32 %v1866_v37, %v1372_v21  ;;  %v1799_v16 = vmul.f32 %v4566_v0, %v5983_v9  ;;  %v1310_v37 = vadd.f32 %v4550_v53, %v1241_v18  ;;  %v5099_v15 = vpop.f32.mrf.mxu0  ;;  %v5985_v18 = vld [vmem:[#allocation60_spill] sm:$0xff] }
 0x32f   :  { %v2255_v45 = vpop.f32.mrf.mxu1  ;;  %v1409_v49 = vmul.f32 %v1345_v41, %v851_v51  ;;  %v2433_v42 = vadd.f32 %v4752_v38, %v2364_v17  ;;  %v1801_v17 = vmul.f32 %v4566_v0, %v4529_v59 }
 0x330   :  { %v2355_v34 = vmul.f32 %v4908_v25, %v2255_v45  ;;  %v1641_v4 = vpop.f32.mrf.mxu2  ;;  %v5074_v2 = vpop.f32.mrf.mxu3  ;;  %v1868_v41 = vadd.f32 %v4572_v43, %v1799_v16 }
 0x331   :  { %v1834_v6 = vmul.f32 %v4491_v57, %v1641_v4  ;;  %v5984_v4 = vld [vmem:[#allocation18_spill] sm:$0xff] }
 0x332   :  { %v2424_v61 = vadd.f32 %v4926_v19, %v2355_v34  ;;  %3115 = vmatmul.msk.f32.gmra.mxu1 %vm406_vm2, %v4584_v56  ;;  %v784_v28 = vmul.f32 %v4457_v3, %v5984_v4  ;;  %v816_v34 = vadd.f32 %v4548_v46, %v747_v26  ;;  %v1347_v56 = vadd.f32 %v4468_v58, %v1278_v52  ;;  %v5986_v52 = vld [vmem:[#allocation71_spill] sm:$0xff] }
 0x333   :  { %v1903_v45 = vadd.f32 %v4498_v11, %v1834_v6  ;;  %v749_v16 = vmul.f32 %v4531_v22, %v5986_v52 }
 0x334   :  { %v2488_v21 = vmul.f32 %v2424_v61, %v1930_v29  ;;  %v853_v51 = vadd.f32 %v4477_v23, %v784_v28  ;;  %v1374_v6 = vmul.f32 %v1310_v37, %v816_v34  ;;  %v1243_v29 = vmul.f32 %v4534_v54, %v5985_v18  ;;  %v5987_v28 = vld [vmem:[#allocation66_spill] sm:$0xff] }
 0x335   :  { %v5094_v48 = vmul.f32 %v1903_v45, %v1409_v49  ;;  %2615 = vmatmul.f32.gmra.mxu2 %v2495_v32  ;;  %v1280_v37 = vmul.f32 %v4446_v10, %v5987_v28  ;;  %v1870_v18 = vadd.f32 %v4572_v43, %v1801_v17 }
 0x336   :  { %2716 = vmatmul.f32.gmra.mxu3 %v2488_v21  ;;  %v1411_v45 = vmul.f32 %v1347_v56, %v853_v51  ;;  %v1932_v32 = vmul.f32 %v1868_v41, %v1374_v6  ;;  %v2366_v21 = vmul.f32 %v4727_v8, %v4916_v35  ;;  %v1312_v56 = vadd.f32 %v4550_v53, %v1243_v29  ;;  %v5988_v51 = vld [vmem:[#allocation19_spill] sm:$0xff] }
 0x337   :  { %v2258_v40 = vpop.f32.mrf.mxu1  ;;  %v786_v59 = vmul.f32 %v4457_v3, %v5988_v51  ;;  %v1349_v35 = vadd.f32 %v4468_v58, %v1280_v37 }
 0x338   :  { %v2357_v9 = vmul.f32 %v4908_v25, %v2258_v40  ;;  %v1644_v61 = vpop.f32.mrf.mxu2  ;;  %v5106_v26 = vpop.f32.mrf.mxu3  ;;  %v2497_v40 = vmul.f32 %v2433_v42, %v4586_v30 }
 0x339   :  { %v1836_v49 = vmul.f32 %v4491_v57, %v1644_v61  ;;  %v5131_v42 = vpop.f32.mrf.mxu0 }
 0x33a   :  { %v2426_v4 = vadd.f32 %v4926_v19, %v2357_v9  ;;  %3116 = vmatmul.msk.f32.gmra.mxu1 %vm406_vm2, %v4618_v60  ;;  %v818_v60 = vadd.f32 %v4548_v46, %v749_v16  ;;  %v2435_v9 = vadd.f32 %v4752_v38, %v2366_v21  ;;  %v5989_v16 = vld [vmem:[#allocation70_spill] sm:$0xff]  ;;  %v2368_v21 = vmul.f32 %v4727_v8, %v4972_v14  ;;  %v5991_v14 = vld [vmem:[#allocation65_spill] sm:$0xff] }
 0x33b   :  { %v1905_v34 = vadd.f32 %v4498_v11, %v1836_v49  ;;  %v855_v49 = vadd.f32 %v4477_v23, %v786_v59  ;;  %v1282_v17 = vmul.f32 %v4446_v10, %v5989_v16 }
 0x33c   :  { %v2490_v41 = vmul.f32 %v2426_v4, %v1932_v32  ;;  %v1376_v30 = vmul.f32 %v1312_v56, %v818_v60  ;;  %v5990_v56 = vld [vmem:[#allocation21_spill] sm:$0xff] }
 0x33d   :  { %v5125_v6 = vmul.f32 %v1905_v34, %v1411_v45  ;;  %2618 = vmatmul.f32.gmra.mxu2 %v2497_v40  ;;  %v1413_v37 = vmul.f32 %v1349_v35, %v855_v49  ;;  %v2499_v40 = vmul.f32 %v2435_v9, %v4620_v47  ;;  %v1351_v60 = vadd.f32 %v4468_v58, %v1282_v17 }
 0x33e   :  { %2719 = vmatmul.f32.gmra.mxu3 %v2490_v41  ;;  %v1934_v4 = vmul.f32 %v1870_v18, %v1376_v30  ;;  %v788_v41 = vmul.f32 %v4457_v3, %v5990_v56 }
 0x33f   :  { %v2261_v61 = vpop.f32.mrf.mxu1 }
 0x340   :  { %v2359_v29 = vmul.f32 %v4908_v25, %v2261_v61  ;;  %v1647_v52 = vpop.f32.mrf.mxu2  ;;  %v5136_v32 = vpop.f32.mrf.mxu3  ;;  %v857_v35 = vadd.f32 %v4477_v23, %v788_v41  ;;  %v1247_v61 = vmul.f32 %v4534_v54, %v5991_v14  ;;  %v5994_v41 = vld [vmem:[#allocation24_spill] sm:$0xff]  ;;  %v5995_v14 = vld [vmem:[#allocation69_spill] sm:$0xff] }
 0x341   :  { %v1838_v45 = vmul.f32 %v4491_v57, %v1647_v52  ;;  %v5162_v16 = vpop.f32.mrf.mxu0 }
 0x342   :  { %v2428_v28 = vadd.f32 %v4926_v19, %v2359_v29  ;;  %3117 = vmatmul.msk.f32.gmra.mxu1 %vm406_vm2, %v4650_v27  ;;  %v2437_v27 = vadd.f32 %v4752_v38, %v2368_v21  ;;  %v5992_v29 = vld [vmem:[#allocation2_spill] sm:$0xff]  ;;  %v1415_v49 = vmul.f32 %v1351_v60, %v857_v35 }
 0x343   :  { %v1907_v34 = vadd.f32 %v4498_v11, %v1838_v45  ;;  %v753_v52 = vmul.f32 %v4531_v22, %v5992_v29  ;;  %v1805_v45 = vmul.f32 %v4566_v0, %v4607_v13  ;;  %v1316_v13 = vadd.f32 %v4550_v53, %v1247_v61 }
 0x344   :  { %v2492_v51 = vmul.f32 %v2428_v28, %v1934_v4  ;;  %v5993_v4 = vld [vmem:[#allocation74_spill] sm:$0xff] }
 0x345   :  { %v5149_v59 = vmul.f32 %v1907_v34, %v1413_v37  ;;  %2621 = vmatmul.f32.gmra.mxu2 %v2499_v40  ;;  %v1284_v28 = vmul.f32 %v4446_v10, %v5993_v4  ;;  %v2370_v37 = vmul.f32 %v4727_v8, %v5023_v1  ;;  %v2501_v40 = vmul.f32 %v2437_v27, %v4652_v50 }
 0x346   :  { %2722 = vmatmul.f32.gmra.mxu3 %v2492_v51  ;;  %v790_v51 = vmul.f32 %v4457_v3, %v5994_v41  ;;  %v822_v60 = vadd.f32 %v4548_v46, %v753_v52  ;;  %v1874_v1 = vadd.f32 %v4572_v43, %v1805_v45  ;;  %v1807_v4 = vmul.f32 %v4566_v0, %v4631_v12  ;;  %v5999_v41 = vld [vmem:[#allocation27_spill] sm:$0xff] }
 0x347   :  { %v2264_v18 = vpop.f32.mrf.mxu1  ;;  %v2439_v35 = vadd.f32 %v4752_v38, %v2370_v37 }
 0x348   :  { %v2361_v47 = vmul.f32 %v4908_v25, %v2264_v18  ;;  %v1650_v9 = vpop.f32.mrf.mxu2  ;;  %v5172_v34 = vpop.f32.mrf.mxu3  ;;  %v1353_v18 = vadd.f32 %v4468_v58, %v1284_v28  ;;  %v1380_v27 = vmul.f32 %v1316_v13, %v822_v60  ;;  %v859_v29 = vadd.f32 %v4477_v23, %v790_v51  ;;  %v5998_v13 = vld [vmem:[#allocation121_spill] sm:$0xff] }
 0x349   :  { %v1840_v30 = vmul.f32 %v4491_v57, %v1650_v9  ;;  %v5996_v9 = vld [vmem:[#allocation4_spill] sm:$0xff]  ;;  %v792_v51 = vmul.f32 %v4457_v3, %v5999_v41  ;;  %v2374_v41 = vmul.f32 %v4727_v8, %v5099_v15 }
 0x34a   :  { %v2430_v17 = vadd.f32 %v4926_v19, %v2361_v47  ;;  %3118 = vmatmul.msk.f32.gmra.mxu1 %vm406_vm2, %v4679_v5  ;;  %v1417_v37 = vmul.f32 %v1353_v18, %v859_v29  ;;  %v1876_v18 = vadd.f32 %v4572_v43, %v1807_v4 }
 0x34b   :  { %v1909_v21 = vadd.f32 %v4498_v11, %v1840_v30  ;;  %v755_v30 = vmul.f32 %v4531_v22, %v5996_v9 }
 0x34c   :  { %v2494_v56 = vmul.f32 %v2430_v17, %v4588_v62  ;;  %v1249_v62 = vmul.f32 %v4534_v54, %v5995_v14  ;;  %v1938_v17 = vmul.f32 %v1874_v1, %v1380_v27  ;;  %v5206_v1 = vpop.f32.mrf.mxu0 }
 0x34d   :  { %v5179_v5 = vmul.f32 %v1909_v21, %v1415_v49  ;;  %2624 = vmatmul.f32.gmra.mxu2 %v2501_v40  ;;  %v5997_v49 = vld [vmem:[#allocation77_spill] sm:$0xff]  ;;  %v2372_v21 = vmul.f32 %v4727_v8, %v5061_v36 }
 0x34e   :  { %2725 = vmatmul.f32.gmra.mxu3 %v2494_v56  ;;  %v1286_v45 = vmul.f32 %v4446_v10, %v5997_v49  ;;  %v2503_v56 = vmul.f32 %v2439_v35, %v5998_v13  ;;  %v1318_v60 = vadd.f32 %v4550_v53, %v1249_v62  ;;  %v861_v62 = vadd.f32 %v4477_v23, %v792_v51  ;;  %v6001_v49 = vld [vmem:[#allocation6_spill] sm:$0xff]  ;;  %v6004_v13 = vld [vmem:[#allocation80_spill] sm:$0xff] }
 0x34f   :  { %v2267_v50 = vpop.f32.mrf.mxu1  ;;  %v2441_v35 = vadd.f32 %v4752_v38, %v2372_v21 }
 0x350   :  { %v2363_v61 = vmul.f32 %v4908_v25, %v2267_v50  ;;  %v1653_v47 = vpop.f32.mrf.mxu2  ;;  %v5210_v27 = vpop.f32.mrf.mxu3  ;;  %v1355_v36 = vadd.f32 %v4468_v58, %v1286_v45 }
 0x351   :  { %v1842_v52 = vmul.f32 %v4491_v57, %v1653_v47  ;;  %v6000_v47 = vld [vmem:[#allocation73_spill] sm:$0xff] }
 0x352   :  { %v2432_v28 = vadd.f32 %v4926_v19, %v2363_v61  ;;  %3119 = vmatmul.msk.f32.gmra.mxu1 %vm406_vm2, %v4708_v63  ;;  %v824_v63 = vadd.f32 %v4548_v46, %v755_v30  ;;  %v1251_v9 = vmul.f32 %v4534_v54, %v6000_v47  ;;  %v757_v30 = vmul.f32 %v4531_v22, %v6001_v49 }
 0x353   :  { %v1911_v40 = vadd.f32 %v4498_v11, %v1842_v52 }
 0x354   :  { %v2496_v12 = vmul.f32 %v2432_v28, %v1938_v17  ;;  %v1382_v61 = vmul.f32 %v1318_v60, %v824_v63  ;;  %v1419_v17 = vmul.f32 %v1355_v36, %v861_v62  ;;  %v6002_v28 = vld [vmem:[#allocation120_spill] sm:$0xff]  ;;  %v1320_v63 = vadd.f32 %v4550_v53, %v1251_v9 }
 0x355   :  { %v5208_v50 = vmul.f32 %v1911_v40, %v1417_v37  ;;  %2627 = vmatmul.f32.gmra.mxu2 %v2503_v56  ;;  %v1809_v37 = vmul.f32 %v4566_v0, %v6002_v28  ;;  %v6003_v40 = vld [vmem:[#allocation127_spill] sm:$0xff]  ;;  %v1288_v56 = vmul.f32 %v4446_v10, %v6004_v13  ;;  %v6005_v60 = vld [vmem:[#allocation124_spill] sm:$0xff]  ;;  %v6009_v13 = vld [vmem:[#allocation82_spill] sm:$0xff] }
 0x356   :  { %2728 = vmatmul.f32.gmra.mxu3 %v2496_v12  ;;  %v1940_v4 = vmul.f32 %v1876_v18, %v1382_v61  ;;  %v2505_v12 = vmul.f32 %v2441_v35, %v6005_v60  ;;  %v6006_v18 = vld [vmem:[#allocation30_spill] sm:$0xff]  ;;  %v826_v61 = vadd.f32 %v4548_v46, %v757_v30  ;;  %v2443_v35 = vadd.f32 %v4752_v38, %v2374_v41  ;;  %v6008_v30 = vld [vmem:[#allocation8_spill] sm:$0xff] }
 0x357   :  { %v2270_v14 = vpop.f32.mrf.mxu1  ;;  %v1878_v47 = vadd.f32 %v4572_v43, %v1809_v37  ;;  %v1357_v15 = vadd.f32 %v4468_v58, %v1288_v56  ;;  %v759_v37 = vmul.f32 %v4531_v22, %v6008_v30  ;;  %v1290_v56 = vmul.f32 %v4446_v10, %v6009_v13 }
 0x358   :  { %v2365_v29 = vmul.f32 %v4908_v25, %v2270_v14  ;;  %v1656_v52 = vpop.f32.mrf.mxu2  ;;  %v794_v14 = vmul.f32 %v4457_v3, %v6006_v18  ;;  %v1384_v49 = vmul.f32 %v1320_v63, %v826_v61  ;;  %v6011_v63 = vld [vmem:[#allocation22_spill] sm:$0xff]  ;;  %v2376_v18 = vmul.f32 %v4727_v8, %v5131_v42  ;;  %v6012_v61 = vld [vmem:[#allocation128_spill] sm:$0xff] }
 0x359   :  { %v1844_v45 = vmul.f32 %v4491_v57, %v1656_v52  ;;  %v5245_v52 = vpop.f32.mrf.mxu3 }
 0x35a   :  { %v2434_v21 = vadd.f32 %v4926_v19, %v2365_v29  ;;  %3120 = vmatmul.msk.f32.gmra.mxu1 %vm406_vm2, %v6003_v40  ;;  %v5241_v29 = vpop.f32.mrf.mxu0  ;;  %v1942_v41 = vmul.f32 %v1878_v47, %v1384_v49  ;;  %v2445_v42 = vadd.f32 %v4752_v38, %v2376_v18 }
 0x35b   :  { %v1913_v51 = vadd.f32 %v4498_v11, %v1844_v45  ;;  %v6007_v45 = vld [vmem:[#allocation76_spill] sm:$0xff] }
 0x35c   :  { %v2498_v36 = vmul.f32 %v2434_v21, %v1940_v4  ;;  %v863_v21 = vadd.f32 %v4477_v23, %v794_v14 }
 0x35d   :  { %v5237_v62 = vmul.f32 %v1913_v51, %v1419_v17  ;;  %2630 = vmatmul.f32.gmra.mxu2 %v2505_v12  ;;  %v1253_v17 = vmul.f32 %v4534_v54, %v6007_v45  ;;  %v6010_v51 = vld [vmem:[#allocation123_spill] sm:$0xff]  ;;  %v6013_v45 = vld [vmem:[#allocation32_spill] sm:$0xff] }
 0x35e   :  { %2731 = vmatmul.f32.gmra.mxu3 %v2498_v36  ;;  %v1811_v60 = vmul.f32 %v4566_v0, %v6010_v51  ;;  %v1421_v36 = vmul.f32 %v1357_v15, %v863_v21  ;;  %v1359_v15 = vadd.f32 %v4468_v58, %v1290_v56  ;;  %v6014_v51 = vld [vmem:[#allocation79_spill] sm:$0xff] }
 0x35f   :  { %v2273_v9 = vpop.f32.mrf.mxu1  ;;  %v1322_v47 = vadd.f32 %v4550_v53, %v1253_v17  ;;  %v1255_v17 = vmul.f32 %v4534_v54, %v6014_v51  ;;  %v6019_v51 = vld [vmem:[#allocation85_spill] sm:$0xff] }
 0x360   :  { %v2367_v4 = vmul.f32 %v4908_v25, %v2273_v9  ;;  %v1659_v28 = vpop.f32.mrf.mxu2  ;;  %v2507_v9 = vmul.f32 %v2443_v35, %v6012_v61  ;;  %v1880_v21 = vadd.f32 %v4572_v43, %v1811_v60  ;;  %v6016_v61 = vld [vmem:[#allocation126_spill] sm:$0xff] }
 0x361   :  { %v1846_v40 = vmul.f32 %v4491_v57, %v1659_v28  ;;  %v796_v28 = vmul.f32 %v4457_v3, %v6013_v45 }
 0x362   :  { %v2436_v12 = vadd.f32 %v4926_v19, %v2367_v4  ;;  %3121 = vmatmul.msk.f32.gmra.mxu1 %vm406_vm2, %v6011_v63  ;;  %v828_v4 = vadd.f32 %v4548_v46, %v759_v37  ;;  %v6015_v37 = vld [vmem:[#allocation11_spill] sm:$0xff] }
 0x363   :  { %v1915_v14 = vadd.f32 %v4498_v11, %v1846_v40  ;;  %v865_v35 = vadd.f32 %v4477_v23, %v796_v28  ;;  %v761_v56 = vmul.f32 %v4531_v22, %v6015_v37  ;;  %v6017_v28 = vld [vmem:[#allocation3_spill] sm:$0xff] }
 0x364   :  { %v2500_v49 = vmul.f32 %v2436_v12, %v1942_v41  ;;  %v1386_v13 = vmul.f32 %v1322_v47, %v828_v4  ;;  %v5277_v41 = vpop.f32.mrf.mxu0  ;;  %v6018_v47 = vld [vmem:[#allocation86_spill] sm:$0xff]  ;;  %v2378_v4 = vmul.f32 %v4727_v8, %v5162_v16 }
 0x365   :  { %v5268_v30 = vmul.f32 %v1915_v14, %v1421_v36  ;;  %2633 = vmatmul.f32.gmra.mxu2 %v2507_v9  ;;  %v5282_v36 = vpop.f32.mrf.mxu3  ;;  %v1423_v18 = vmul.f32 %v1359_v15, %v865_v35  ;;  %v1813_v9 = vmul.f32 %v4566_v0, %v6016_v61  ;;  %v1324_v15 = vadd.f32 %v4550_v53, %v1255_v17  ;;  %v6020_v35 = vld [vmem:[#allocation34_spill] sm:$0xff] }
 0x366   :  { %2734 = vmatmul.f32.gmra.mxu3 %v2500_v49  ;;  %v1944_v14 = vmul.f32 %v1880_v21, %v1386_v13  ;;  %v1292_v49 = vmul.f32 %v4446_v10, %v6018_v47  ;;  %v798_v13 = vmul.f32 %v4457_v3, %v6020_v35  ;;  %v830_v37 = vadd.f32 %v4548_v46, %v761_v56  ;;  %v6022_v56 = vld [vmem:[#allocation13_spill] sm:$0xff] }
 0x367   :  { %v2276_v40 = vpop.f32.mrf.mxu1  ;;  %v1882_v10 = vadd.f32 %v4572_v43, %v1813_v9  ;;  %v763_v9 = vmul.f32 %v4531_v22, %v6022_v56  ;;  %v6028_v56 = vld [vmem:[#allocation88_spill] sm:$0xff] }
 0x368   :  { %v2369_v12 = vmul.f32 %v4908_v25, %v2276_v40  ;;  %v1662_v63 = vpop.f32.mrf.mxu2  ;;  %v1361_v16 = vadd.f32 %v4468_v58, %v1292_v49 }
 0x369   :  { %v1848_v60 = vmul.f32 %v4491_v57, %v1662_v63  ;;  %v2509_v63 = vmul.f32 %v2445_v42, %v6019_v51  ;;  %v1388_v42 = vmul.f32 %v1324_v15, %v830_v37  ;;  %v6024_v51 = vld [vmem:[#allocation39_spill] sm:$0xff] }
 0x36a   :  { %v2438_v45 = vadd.f32 %v4926_v19, %v2369_v12  ;;  %3122 = vmatmul.msk.f32.gmra.mxu1 %vm406_vm2, %v6017_v28  ;;  %v6021_v28 = vld [vmem:[#allocation81_spill] sm:$0xff] }
 0x36b   :  { %v1917_v40 = vadd.f32 %v4498_v11, %v1848_v60  ;;  %v2447_v60 = vadd.f32 %v4752_v38, %v2378_v4  ;;  %v1257_v17 = vmul.f32 %v4534_v54, %v6021_v28  ;;  %v1946_v47 = vmul.f32 %v1882_v10, %v1388_v42 }
 0x36c   :  { %v2502_v21 = vmul.f32 %v2438_v45, %v1944_v14  ;;  %v5314_v49 = vpop.f32.mrf.mxu0 }
 0x36d   :  { %v5299_v12 = vmul.f32 %v1917_v40, %v1423_v18  ;;  %2636 = vmatmul.f32.gmra.mxu2 %v2509_v63  ;;  %v867_v18 = vadd.f32 %v4477_v23, %v798_v13  ;;  %v6023_v40 = vld [vmem:[#allocation130_spill] sm:$0xff]  ;;  %v2380_v23 = vmul.f32 %v4727_v8, %v5206_v1  ;;  %v5321_v15 = vpop.f32.mrf.mxu3  ;;  %v1326_v13 = vadd.f32 %v4550_v53, %v1257_v17  ;;  %v6027_v17 = vld [vmem:[#allocation15_spill] sm:$0xff] }
 0x36e   :  { %2737 = vmatmul.f32.gmra.mxu3 %v2502_v21  ;;  %v1815_v58 = vmul.f32 %v4566_v0, %v6023_v40  ;;  %v6025_v21 = vld [vmem:[#allocation83_spill] sm:$0xff]  ;;  %v6029_v40 = vld [vmem:[#allocation28_spill] sm:$0xff] }
 0x36f   :  { %v2279_v61 = vpop.f32.mrf.mxu1  ;;  %v1425_v63 = vmul.f32 %v1361_v16, %v867_v18  ;;  %v2511_v35 = vmul.f32 %v2447_v60, %v6025_v21  ;;  %v2449_v16 = vadd.f32 %v4752_v38, %v2380_v23  ;;  %v765_v18 = vmul.f32 %v4531_v22, %v6027_v17  ;;  %v6033_v17 = vld [vmem:[#allocation90_spill] sm:$0xff] }
 0x370   :  { %v2371_v14 = vmul.f32 %v4908_v25, %v2279_v61  ;;  %v1665_v3 = vpop.f32.mrf.mxu2  ;;  %v832_v61 = vadd.f32 %v4548_v46, %v763_v9  ;;  %v1884_v42 = vadd.f32 %v4572_v43, %v1815_v58  ;;  %v1817_v9 = vmul.f32 %v4566_v0, %v6028_v56 }
 0x371   :  { %v1850_v45 = vmul.f32 %v4491_v57, %v1665_v3  ;;  %v2382_v58 = vmul.f32 %v4727_v8, %v5241_v29  ;;  %v2384_v56 = vmul.f32 %v4727_v8, %v5277_v41 }
 0x372   :  { %v2440_v4 = vadd.f32 %v4926_v19, %v2371_v14  ;;  %3123 = vmatmul.msk.f32.gmra.mxu1 %vm406_vm2, %v6024_v51  ;;  %v1390_v28 = vmul.f32 %v1326_v13, %v832_v61  ;;  %v6026_v14 = vld [vmem:[#allocation84_spill] sm:$0xff]  ;;  %v1886_v13 = vadd.f32 %v4572_v43, %v1817_v9  ;;  %v6034_v9 = vld [vmem:[#allocation95_spill] sm:$0xff] }
 0x373   :  { %v1919_v57 = vadd.f32 %v4498_v11, %v1850_v45  ;;  %v1259_v11 = vmul.f32 %v4534_v54, %v6026_v14  ;;  %v6032_v14 = vld [vmem:[#allocation17_spill] sm:$0xff] }
 0x374   :  { %v2504_v37 = vmul.f32 %v2440_v4, %v1946_v47  ;;  %v1948_v45 = vmul.f32 %v1884_v42, %v1390_v28  ;;  %v6030_v4 = vld [vmem:[#allocation93_spill] sm:$0xff]  ;;  %v2193_v23 = vpop.f32.mrf.mxu0 }
 0x375   :  { %v5326_v10 = vmul.f32 %v1919_v57, %v1425_v63  ;;  %2639 = vmatmul.f32.gmra.mxu2 %v2511_v35  ;;  %v2513_v51 = vmul.f32 %v2449_v16, %v6030_v4  ;;  %v1328_v63 = vadd.f32 %v4550_v53, %v1259_v11  ;;  %v5347_v21 = vpop.f32.mrf.mxu3  ;;  %v834_v35 = vadd.f32 %v4548_v46, %v765_v18 }
 0x376   :  { %2740 = vmatmul.f32.gmra.mxu3 %v2504_v37  ;;  %v2451_v37 = vadd.f32 %v4752_v38, %v2382_v58  ;;  %v767_v11 = vmul.f32 %v4531_v22, %v6032_v14  ;;  %v1819_v18 = vmul.f32 %v4566_v0, %v6033_v17  ;;  %v6037_v14 = vld [vmem:[#allocation87_spill] sm:$0xff]  ;;  %v2386_v17 = vmul.f32 %v4727_v8, %v5314_v49 }
 0x377   :  { %v2282_v1 = vpop.f32.mrf.mxu1  ;;  %v1392_v42 = vmul.f32 %v1328_v63, %v834_v35 }
 0x378   :  { %v2373_v60 = vmul.f32 %v4908_v25, %v2282_v1  ;;  %v5334_v3 = vpop.f32.mrf.mxu2  ;;  %v6031_v1 = vld [vmem:[#allocation89_spill] sm:$0xff]  ;;  %v836_v4 = vadd.f32 %v4548_v46, %v767_v11  ;;  %v1821_v11 = vmul.f32 %v4566_v0, %v6037_v14 }
 0x379   :  { %v1261_v29 = vmul.f32 %v4534_v54, %v6031_v1  ;;  %v6036_v1 = vld [vmem:[#allocation20_spill] sm:$0xff] }
 0x37a   :  { %v2442_v47 = vadd.f32 %v4926_v19, %v2373_v60  ;;  %3124 = vmatmul.msk.f32.gmra.mxu1 %vm406_vm2, %v6029_v40  ;;  %v1950_v60 = vmul.f32 %v1886_v13, %v1392_v42 }
 0x37b   :  { %v1330_v40 = vadd.f32 %v4550_v53, %v1261_v29  ;;  %v769_v29 = vmul.f32 %v4531_v22, %v6036_v1 }
 0x37c   :  { %v2506_v57 = vmul.f32 %v2442_v47, %v1948_v45  ;;  %v2515_v47 = vmul.f32 %v2451_v37, %v6034_v9  ;;  %v2196_v63 = vpop.f32.mrf.mxu0 }
 0x37d   :  { %2642 = vmatmul.f32.gmra.mxu2 %v2513_v51  ;;  %v1888_v51 = vadd.f32 %v4572_v43, %v1819_v18  ;;  %v5371_v35 = vpop.f32.mrf.mxu3  ;;  %v1394_v13 = vmul.f32 %v1330_v40, %v836_v4  ;;  %v6038_v18 = vld [vmem:[#allocation97_spill] sm:$0xff]  ;;  %v1890_v40 = vadd.f32 %v4572_v43, %v1821_v11  ;;  %v2388_v11 = vmul.f32 %v4727_v8, %v2193_v23 }
 0x37e   :  { %2743 = vmatmul.f32.gmra.mxu3 %v2506_v57  ;;  %v2453_v57 = vadd.f32 %v4752_v38, %v2384_v56 }
 0x37f   :  { %v2285_v61 = vpop.f32.mrf.mxu1 }
 0x380   :  { %v2375_v16 = vmul.f32 %v4908_v25, %v2285_v61  ;;  %v5355_v28 = vpop.f32.mrf.mxu2  ;;  %v6035_v61 = vld [vmem:[#allocation94_spill] sm:$0xff] }
 0x381   :  { %v1263_v41 = vmul.f32 %v4534_v54, %v6035_v61 }
 0x382   :  { %v2444_v45 = vadd.f32 %v4926_v19, %v2375_v16  ;;  %3125 = vmatmul.msk.f32.gmra.mxu1 %vm406_vm2, %v4958_v44  ;;  %v1952_v16 = vmul.f32 %v1888_v51, %v1394_v13 }
 0x383   :  { %v1332_v56 = vadd.f32 %v4550_v53, %v1263_v41  ;;  %v6040_v41 = vld [vmem:[#allocation23_spill] sm:$0xff] }
 0x384   :  { %v2508_v58 = vmul.f32 %v2444_v45, %v1950_v60  ;;  %v2517_v45 = vmul.f32 %v2453_v57, %v6038_v18  ;;  %v2199_v13 = vpop.f32.mrf.mxu0 }
 0x385   :  { %2645 = vmatmul.f32.gmra.mxu2 %v2515_v47  ;;  %v838_v47 = vadd.f32 %v4548_v46, %v769_v29  ;;  %v5397_v61 = vpop.f32.mrf.mxu3  ;;  %v6041_v29 = vld [vmem:[#allocation43_spill] sm:$0xff] }
 0x386   :  { %2746 = vmatmul.f32.gmra.mxu3 %v2508_v58  ;;  %v2455_v58 = vadd.f32 %v4752_v38, %v2386_v17 }
 0x387   :  { %v2288_v44 = vpop.f32.mrf.mxu1  ;;  %v1396_v51 = vmul.f32 %v1332_v56, %v838_v47 }
 0x388   :  { %v2377_v37 = vmul.f32 %v4908_v25, %v2288_v44  ;;  %v5376_v42 = vpop.f32.mrf.mxu2  ;;  %v6039_v44 = vld [vmem:[#allocation99_spill] sm:$0xff] }
 0x389   :  { %v1954_v1 = vmul.f32 %v1890_v40, %v1396_v51 }
 0x38a   :  { %v2446_v60 = vadd.f32 %v4926_v19, %v2377_v37  ;;  %3126 = vmatmul.msk.f32.gmra.mxu1 %vm406_vm2, %v4999_v20  ;;  %v1265_v20 = vmul.f32 %v4534_v54, %v6039_v44  ;;  %v771_v37 = vmul.f32 %v4531_v22, %v6040_v41  ;;  %v1825_v41 = vmul.f32 %v4566_v0, %v4979_v39 }
 0x38c   :  { %v2510_v9 = vmul.f32 %v2446_v60, %v1952_v16  ;;  %v1823_v16 = vmul.f32 %v4566_v0, %v6041_v29  ;;  %v2519_v60 = vmul.f32 %v2455_v58, %v5002_v7  ;;  %v1334_v17 = vadd.f32 %v4550_v53, %v1265_v20  ;;  %v6043_v7 = vld [vmem:[#allocation26_spill] sm:$0xff] }
 0x38d   :  { %2648 = vmatmul.f32.gmra.mxu2 %v2517_v45  ;;  %v840_v45 = vadd.f32 %v4548_v46, %v771_v37  ;;  %v773_v58 = vmul.f32 %v4531_v22, %v6043_v7  ;;  %v2202_v37 = vpop.f32.mrf.mxu0 }
 0x38e   :  { %2749 = vmatmul.f32.gmra.mxu3 %v2510_v9  ;;  %v1892_v56 = vadd.f32 %v4572_v43, %v1823_v16  ;;  %v2457_v9 = vadd.f32 %v4752_v38, %v2388_v11  ;;  %v2390_v16 = vmul.f32 %v4727_v8, %v2196_v63 }
 0x38f   :  { %v2291_v4 = vpop.f32.mrf.mxu1  ;;  %v1398_v40 = vmul.f32 %v1334_v17, %v840_v45  ;;  %v842_v39 = vadd.f32 %v4548_v46, %v773_v58  ;;  %v1894_v17 = vadd.f32 %v4572_v43, %v1825_v41  ;;  %v6044_v45 = vld [vmem:[#allocation108_spill] sm:$0xff] }
 0x390   :  { %v2379_v49 = vmul.f32 %v4908_v25, %v2291_v4  ;;  %v5395_v57 = vpop.f32.mrf.mxu2  ;;  %v6042_v4 = vld [vmem:[#allocation103_spill] sm:$0xff] }
 0x391   :  { %v1267_v51 = vmul.f32 %v4534_v54, %v6042_v4 }
 0x392   :  { %v2448_v14 = vadd.f32 %v4926_v19, %v2379_v49  ;;  %v1956_v49 = vmul.f32 %v1892_v56, %v1398_v40 }
 0x393   :  { %v1336_v11 = vadd.f32 %v4550_v53, %v1267_v51 }
 0x394   :  { %v2512_v18 = vmul.f32 %v2448_v14, %v1954_v1  ;;  %v2521_v14 = vmul.f32 %v2457_v9, %v5034_v33  ;;  %v1269_v33 = vmul.f32 %v4534_v54, %v6044_v45  ;;  %v1829_v45 = vmul.f32 %v4566_v0, %v5044_v55 }
 0x395   :  { %2651 = vmatmul.f32.gmra.mxu2 %v2519_v60  ;;  %v1400_v63 = vmul.f32 %v1336_v11, %v842_v39 }
 0x396   :  { %2752 = vmatmul.f32.gmra.mxu3 %v2512_v18  ;;  %v1338_v41 = vadd.f32 %v4550_v53, %v1269_v33  ;;  %v1898_v55 = vadd.f32 %v4572_v43, %v1829_v45  ;;  %v6050_v45 = vld [vmem:[#allocation116_spill] sm:$0xff] }
 0x397   :  { %v2294_v47 = vpop.f32.mrf.mxu1  ;;  %v1958_v51 = vmul.f32 %v1894_v17, %v1400_v63  ;;  %v6047_v17 = vld [vmem:[#allocation33_spill] sm:$0xff] }
 0x398   :  { %v2381_v23 = vmul.f32 %v4908_v25, %v2294_v47  ;;  %v5413_v44 = vpop.f32.mrf.mxu2  ;;  %v6045_v47 = vld [vmem:[#allocation29_spill] sm:$0xff] }
 0x399   :  { %v2705_v20 = vpop.f32.mrf.mxu3  ;;  %v775_v40 = vmul.f32 %v4531_v22, %v6045_v47  ;;  %v2394_v47 = vmul.f32 %v4727_v8, %v2202_v37 }
 0x39a   :  { %v2450_v1 = vadd.f32 %v4926_v19, %v2381_v23  ;;  %v2706_v29 = vadd.f32 %v2705_v20, %v5334_v3  ;;  %v2459_v3 = vadd.f32 %v4752_v38, %v2390_v16  ;;  %v1827_v23 = vmul.f32 %v4566_v0, %v5013_v24 }
 0x39b   :  { %v2392_v20 = vmul.f32 %v4727_v8, %v2199_v13  ;;  %v844_v24 = vadd.f32 %v4548_v46, %v775_v40 }
 0x39c   :  { %2802 = vst.msk [vmem:[%s5768_s6] sm:$0xff] %vm2801_vm3, %v2706_v29  ;;  %v2514_v60 = vmul.f32 %v2450_v1, %v1956_v49  ;;  %v2523_v49 = vmul.f32 %v2459_v3, %v5065_v31  ;;  %v2205_v1 = vpop.f32.mrf.mxu0  ;;  %v1896_v16 = vadd.f32 %v4572_v43, %v1827_v23  ;;  %v6046_v31 = vld [vmem:[#allocation112_spill] sm:$0xff]  ;;  %v777_v3 = vmul.f32 %v4531_v22, %v6047_v17 }
 0x39d   :  { %2654 = vmatmul.f32.gmra.mxu2 %v2521_v14  ;;  %v1402_v14 = vmul.f32 %v1338_v41, %v844_v24  ;;  %v1271_v11 = vmul.f32 %v4534_v54, %v6046_v31 }
 0x39e   :  { %2755 = vmatmul.f32.gmra.mxu3 %v2514_v60  ;;  %v846_v23 = vadd.f32 %v4548_v46, %v777_v3 }
 0x39f   :  { %v2297_v18 = vpop.f32.mrf.mxu1  ;;  %v1960_v63 = vmul.f32 %v1896_v16, %v1402_v14 }
 0x3a0   :  { %v2383_v56 = vmul.f32 %v4908_v25, %v2297_v18  ;;  %v5434_v9 = vpop.f32.mrf.mxu2 }
 0x3a1   :  { %v2708_v4 = vpop.f32.mrf.mxu3 }
 0x3a2   :  { %v2452_v7 = vadd.f32 %v4926_v19, %v2383_v56  ;;  %v2709_v58 = vadd.f32 %v2708_v4, %v5355_v28  ;;  %v2461_v28 = vadd.f32 %v4752_v38, %v2392_v20  ;;  %v1340_v4 = vadd.f32 %v4550_v53, %v1271_v11 }
 0x3a3   :  { %v2396_v11 = vmul.f32 %v4727_v8, %v2205_v1 }
 0x3a4   :  { %2803 = vst.msk [vmem:[%s5768_s6 + $0x8] sm:$0xff] %vm2801_vm3, %v2709_v58  ;;  %v2516_v29 = vmul.f32 %v2452_v7, %v1958_v51  ;;  %v2525_v40 = vmul.f32 %v2461_v28, %v5094_v48  ;;  %v2208_v7 = vpop.f32.mrf.mxu0  ;;  %v1404_v58 = vmul.f32 %v1340_v4, %v846_v23  ;;  %v6048_v48 = vld [vmem:[#allocation115_spill] sm:$0xff] }
 0x3a5   :  { %2657 = vmatmul.f32.gmra.mxu2 %v2523_v49  ;;  %v1273_v20 = vmul.f32 %v4534_v54, %v6048_v48 }
 0x3a6   :  { %2758 = vmatmul.f32.gmra.mxu3 %v2516_v29  ;;  %v6049_v29 = vld [vmem:[#allocation37_spill] sm:$0xff]  ;;  %v1962_v28 = vmul.f32 %v1898_v55, %v1404_v58  ;;  %v1833_v55 = vmul.f32 %v4566_v0, %v5106_v26  ;;  %v2398_v58 = vmul.f32 %v4727_v8, %v2208_v7 }
 0x3a7   :  { %v2300_v13 = vpop.f32.mrf.mxu1  ;;  %v779_v24 = vmul.f32 %v4531_v22, %v6049_v29  ;;  %v1342_v17 = vadd.f32 %v4550_v53, %v1273_v20 }
 0x3a8   :  { %v2385_v60 = vmul.f32 %v4908_v25, %v2300_v13  ;;  %v5455_v39 = vpop.f32.mrf.mxu2  ;;  %v1831_v13 = vmul.f32 %v4566_v0, %v5074_v2  ;;  %v1902_v26 = vadd.f32 %v4572_v43, %v1833_v55 }
 0x3a9   :  { %v2711_v18 = vpop.f32.mrf.mxu3 }
 0x3aa   :  { %v2454_v33 = vadd.f32 %v4926_v19, %v2385_v60  ;;  %v2712_v56 = vadd.f32 %v2711_v18, %v5376_v42  ;;  %v2463_v42 = vadd.f32 %v4752_v38, %v2394_v47  ;;  %v848_v18 = vadd.f32 %v4548_v46, %v779_v24 }
 0x3ab   :  { %v1900_v2 = vadd.f32 %v4572_v43, %v1831_v13 }
 0x3ac   :  { %2804 = vst.msk [vmem:[%s5768_s6 + $0x10] sm:$0xff] %vm2801_vm3, %v2712_v56  ;;  %v2518_v51 = vmul.f32 %v2454_v33, %v1960_v63  ;;  %v2527_v60 = vmul.f32 %v2463_v42, %v5125_v6  ;;  %v1406_v1 = vmul.f32 %v1342_v17, %v848_v18  ;;  %v1275_v6 = vmul.f32 %v4534_v54, %v6050_v45  ;;  %v2211_v33 = vpop.f32.mrf.mxu0 }
 0x3ad   :  { %2660 = vmatmul.f32.gmra.mxu2 %v2525_v40  ;;  %v6051_v40 = vld [vmem:[#allocation41_spill] sm:$0xff]  ;;  %v1835_v17 = vmul.f32 %v4566_v0, %v5136_v32 }
 0x3ae   :  { %2761 = vmatmul.f32.gmra.mxu3 %v2518_v51  ;;  %v781_v4 = vmul.f32 %v4531_v22, %v6051_v40  ;;  %v1964_v23 = vmul.f32 %v1900_v2, %v1406_v1  ;;  %v1344_v20 = vadd.f32 %v4550_v53, %v1275_v6  ;;  %v6054_v40 = vld [vmem:[#allocation118_spill] sm:$0xff] }
 0x3af   :  { %v2303_v37 = vpop.f32.mrf.mxu1  ;;  %v1904_v6 = vadd.f32 %v4572_v43, %v1835_v17 }
 0x3b0   :  { %v2387_v49 = vmul.f32 %v4908_v25, %v2303_v37  ;;  %v5476_v41 = vpop.f32.mrf.mxu2  ;;  %v850_v29 = vadd.f32 %v4548_v46, %v781_v4 }
 0x3b1   :  { %v2714_v16 = vpop.f32.mrf.mxu3 }
 0x3b2   :  { %v2456_v14 = vadd.f32 %v4926_v19, %v2387_v49  ;;  %v2715_v31 = vadd.f32 %v2714_v16, %v5395_v57  ;;  %v2465_v57 = vadd.f32 %v4752_v38, %v2396_v11  ;;  %v1408_v7 = vmul.f32 %v1344_v20, %v850_v29  ;;  %v6052_v16 = vld [vmem:[#allocation117_spill] sm:$0xff] }
 0x3b4   :  { %2805 = vst.msk [vmem:[%s5768_s6 + $0x18] sm:$0xff] %vm2801_vm3, %v2715_v31  ;;  %v2520_v3 = vmul.f32 %v2456_v14, %v1962_v28  ;;  %v2529_v48 = vmul.f32 %v2465_v57, %v5149_v59  ;;  %v1277_v59 = vmul.f32 %v4534_v54, %v6052_v16  ;;  %v6053_v14 = vld [vmem:[#allocation45_spill] sm:$0xff]  ;;  %v2400_v57 = vmul.f32 %v4727_v8, %v2211_v33 }
 0x3b5   :  { %2663 = vmatmul.f32.gmra.mxu2 %v2527_v60  ;;  %v783_v31 = vmul.f32 %v4531_v22, %v6053_v14  ;;  %v1966_v60 = vmul.f32 %v1902_v26, %v1408_v7 }
 0x3b6   :  { %2764 = vmatmul.f32.gmra.mxu3 %v2520_v3  ;;  %v2214_v3 = vpop.f32.mrf.mxu0  ;;  %v1346_v1 = vadd.f32 %v4550_v53, %v1277_v59 }
 0x3b7   :  { %v2306_v63 = vpop.f32.mrf.mxu1  ;;  %v852_v32 = vadd.f32 %v4548_v46, %v783_v31 }
 0x3b8   :  { %v2389_v56 = vmul.f32 %v4908_v25, %v2306_v63  ;;  %v5497_v47 = vpop.f32.mrf.mxu2 }
 0x3b9   :  { %v2717_v51 = vpop.f32.mrf.mxu3  ;;  %v1410_v33 = vmul.f32 %v1346_v1, %v852_v32 }
 0x3ba   :  { %v2458_v42 = vadd.f32 %v4926_v19, %v2389_v56  ;;  %v2718_v37 = vadd.f32 %v2717_v51, %v5413_v44  ;;  %v2467_v44 = vadd.f32 %v4752_v38, %v2398_v58  ;;  %v1837_v58 = vmul.f32 %v4566_v0, %v5172_v34 }
 0x3bc   :  { %2806 = vst.msk [vmem:[%s5768_s6 + $0x20] sm:$0xff] %vm2801_vm3, %v2718_v37  ;;  %v2522_v49 = vmul.f32 %v2458_v42, %v1964_v23  ;;  %v2531_v63 = vmul.f32 %v2467_v44, %v5179_v5  ;;  %v1279_v5 = vmul.f32 %v4534_v54, %v6054_v40  ;;  %v6055_v23 = vld [vmem:[#allocation51_spill] sm:$0xff]  ;;  %v1968_v37 = vmul.f32 %v1904_v6, %v1410_v33 }
 0x3bd   :  { %2666 = vmatmul.f32.gmra.mxu2 %v2529_v48  ;;  %v785_v55 = vmul.f32 %v4531_v22, %v6055_v23  ;;  %v1906_v7 = vadd.f32 %v4572_v43, %v1837_v58  ;;  %v6059_v23 = vld [vmem:[#allocation59_spill] sm:$0xff]  ;;  %v1841_v58 = vmul.f32 %v4566_v0, %v5245_v52 }
 0x3be   :  { %2767 = vmatmul.f32.gmra.mxu3 %v2522_v49  ;;  %v2402_v49 = vmul.f32 %v4727_v8, %v2214_v3  ;;  %v1348_v26 = vadd.f32 %v4550_v53, %v1279_v5  ;;  %v2217_v44 = vpop.f32.mrf.mxu0 }
 0x3bf   :  { %v2309_v24 = vpop.f32.mrf.mxu1  ;;  %v854_v34 = vadd.f32 %v4548_v46, %v785_v55  ;;  %v789_v55 = vmul.f32 %v4531_v22, %v6059_v23  ;;  %v1910_v52 = vadd.f32 %v4572_v43, %v1841_v58 }
 0x3c0   :  { %v2391_v28 = vmul.f32 %v4908_v25, %v2309_v24  ;;  %v5518_v13 = vpop.f32.mrf.mxu2 }
 0x3c1   :  { %v2720_v11 = vpop.f32.mrf.mxu3  ;;  %v1412_v59 = vmul.f32 %v1348_v26, %v854_v34 }
 0x3c2   :  { %v2460_v18 = vadd.f32 %v4926_v19, %v2391_v28  ;;  %v2721_v2 = vadd.f32 %v2720_v11, %v5434_v9  ;;  %v2469_v9 = vadd.f32 %v4752_v38, %v2400_v57  ;;  %v6057_v11 = vld [vmem:[#allocation55_spill] sm:$0xff] }
 0x3c3   :  { %v1970_v3 = vmul.f32 %v1906_v7, %v1412_v59 }
 0x3c4   :  { %2807 = vst.msk [vmem:[%s5768_s6 + $0x28] sm:$0xff] %vm2801_vm3, %v2721_v2  ;;  %v2524_v45 = vmul.f32 %v2460_v18, %v1966_v60  ;;  %v2533_v29 = vmul.f32 %v2469_v9, %v5208_v50  ;;  %v6056_v50 = vld [vmem:[#allocation119_spill] sm:$0xff]  ;;  %v787_v60 = vmul.f32 %v4531_v22, %v6057_v11  ;;  %v1839_v18 = vmul.f32 %v4566_v0, %v5210_v27 }
 0x3c5   :  { %2669 = vmatmul.f32.gmra.mxu2 %v2531_v63  ;;  %v1281_v28 = vmul.f32 %v4534_v54, %v6056_v50  ;;  %v2404_v63 = vmul.f32 %v4727_v8, %v2217_v44 }
 0x3c6   :  { %2770 = vmatmul.f32.gmra.mxu3 %v2524_v45  ;;  %v856_v6 = vadd.f32 %v4548_v46, %v787_v60  ;;  %v1908_v27 = vadd.f32 %v4572_v43, %v1839_v18  ;;  %v2220_v9 = vpop.f32.mrf.mxu0 }
 0x3c7   :  { %v2312_v56 = vpop.f32.mrf.mxu1  ;;  %v1350_v45 = vadd.f32 %v4550_v53, %v1281_v28  ;;  %v6061_v28 = vld [vmem:[#allocation63_spill] sm:$0xff] }
 0x3c8   :  { %v2393_v4 = vmul.f32 %v4908_v25, %v2312_v56  ;;  %v5539_v51 = vpop.f32.mrf.mxu2 }
 0x3c9   :  { %v2723_v42 = vpop.f32.mrf.mxu3  ;;  %v1414_v33 = vmul.f32 %v1350_v45, %v856_v6  ;;  %v6062_v6 = vld [vmem:[#allocation129_spill] sm:$0xff] }
 0x3ca   :  { %v2462_v48 = vadd.f32 %v4926_v19, %v2393_v4  ;;  %v2724_v20 = vadd.f32 %v2723_v42, %v5455_v39  ;;  %v2471_v39 = vadd.f32 %v4752_v38, %v2402_v49  ;;  %v2406_v49 = vmul.f32 %v4727_v8, %v2220_v9 }
 0x3cc   :  { %2808 = vst.msk [vmem:[%s5768_s6 + $0x30] sm:$0xff] %vm2801_vm3, %v2724_v20  ;;  %v2526_v24 = vmul.f32 %v2462_v48, %v1968_v37  ;;  %v2535_v1 = vmul.f32 %v2471_v39, %v5237_v62  ;;  %v6058_v62 = vld [vmem:[#allocation122_spill] sm:$0xff]  ;;  %v1972_v37 = vmul.f32 %v1908_v27, %v1414_v33  ;;  %v6060_v39 = vld [vmem:[#allocation125_spill] sm:$0xff] }
 0x3cd   :  { %2672 = vmatmul.f32.gmra.mxu2 %v2533_v29  ;;  %v1283_v40 = vmul.f32 %v4534_v54, %v6058_v62 }
 0x3ce   :  { %2773 = vmatmul.f32.gmra.mxu3 %v2526_v24  ;;  %v858_v24 = vadd.f32 %v4548_v46, %v789_v55 }
 0x3cf   :  { %v2315_v16 = vpop.f32.mrf.mxu1  ;;  %v1352_v26 = vadd.f32 %v4550_v53, %v1283_v40  ;;  %v1845_v40 = vmul.f32 %v4566_v0, %v5321_v15 }
 0x3d0   :  { %v2395_v14 = vmul.f32 %v4908_v25, %v2315_v16  ;;  %v5560_v31 = vpop.f32.mrf.mxu2  ;;  %v2223_v16 = vpop.f32.mrf.mxu0 }
 0x3d1   :  { %v2726_v17 = vpop.f32.mrf.mxu3  ;;  %v1416_v7 = vmul.f32 %v1352_v26, %v858_v24  ;;  %v1914_v58 = vadd.f32 %v4572_v43, %v1845_v40 }
 0x3d2   :  { %v2464_v2 = vadd.f32 %v4926_v19, %v2395_v14  ;;  %v2727_v57 = vadd.f32 %v2726_v17, %v5476_v41  ;;  %v2473_v41 = vadd.f32 %v4752_v38, %v2404_v63  ;;  %v791_v14 = vmul.f32 %v4531_v22, %v6061_v28 }
 0x3d3   :  { %v1974_v60 = vmul.f32 %v1910_v52, %v1416_v7  ;;  %v1843_v17 = vmul.f32 %v4566_v0, %v5282_v36  ;;  %v1847_v52 = vmul.f32 %v4566_v0, %v5347_v21  ;;  %v6066_v21 = vld [vmem:[#allocation25_spill] sm:$0xff] }
 0x3d4   :  { %2809 = vst.msk [vmem:[%s5768_s6 + $0x38] sm:$0xff] %vm2801_vm3, %v2727_v57  ;;  %v2528_v32 = vmul.f32 %v2464_v2, %v1970_v3  ;;  %v2537_v29 = vmul.f32 %v2473_v41, %v5268_v30  ;;  %v1285_v30 = vmul.f32 %v4534_v54, %v6060_v39  ;;  %v2408_v2 = vmul.f32 %v4727_v8, %v2223_v16  ;;  %v6063_v41 = vld [vmem:[#allocation68_spill] sm:$0xff] }
 0x3d5   :  { %2675 = vmatmul.f32.gmra.mxu2 %v2535_v1  ;;  %v860_v45 = vadd.f32 %v4548_v46, %v791_v14  ;;  %v1912_v36 = vadd.f32 %v4572_v43, %v1843_v17  ;;  %v1916_v16 = vadd.f32 %v4572_v43, %v1847_v52  ;;  %v1291_v14 = vmul.f32 %v4534_v54, %v6066_v21 }
 0x3d6   :  { %2776 = vmatmul.f32.gmra.mxu3 %v2528_v32  ;;  %v1354_v63 = vadd.f32 %v4550_v53, %v1285_v30 }
 0x3d7   :  { %v2318_v56 = vpop.f32.mrf.mxu1 }
 0x3d8   :  { %v2397_v5 = vmul.f32 %v4908_v25, %v2318_v56  ;;  %v5581_v4 = vpop.f32.mrf.mxu2  ;;  %v1418_v8 = vmul.f32 %v1354_v63, %v860_v45  ;;  %v793_v56 = vmul.f32 %v4531_v22, %v6063_v41 }
 0x3d9   :  { %v2729_v42 = vpop.f32.mrf.mxu3 }
 0x3da   :  { %v2466_v48 = vadd.f32 %v4926_v19, %v2397_v5  ;;  %v2730_v20 = vadd.f32 %v2729_v42, %v5497_v47  ;;  %v2475_v47 = vadd.f32 %v4752_v38, %v2406_v49  ;;  %v1976_v62 = vmul.f32 %v1912_v36, %v1418_v8  ;;  %v6065_v49 = vld [vmem:[#allocation72_spill] sm:$0xff]  ;;  %v6068_v8 = vld [vmem:[#allocation5_spill] sm:$0xff] }
 0x3dc   :  { %2810 = vst.msk [vmem:[%s5768_s6 + $0x40] sm:$0xff] %vm2801_vm3, %v2730_v20  ;;  %v2530_v44 = vmul.f32 %v2466_v48, %v1972_v37  ;;  %v2539_v57 = vmul.f32 %v2475_v47, %v5299_v12  ;;  %v1287_v12 = vmul.f32 %v4534_v54, %v6062_v6  ;;  %v862_v37 = vadd.f32 %v4548_v46, %v793_v56  ;;  %v6064_v20 = vld [vmem:[#allocation35_spill] sm:$0xff] }
 0x3dd   :  { %2678 = vmatmul.f32.gmra.mxu2 %v2537_v29  ;;  %v795_v29 = vmul.f32 %v4531_v22, %v6065_v49  ;;  %v1293_v6 = vmul.f32 %v4534_v54, %v6068_v8 }
 0x3de   :  { %2779 = vmatmul.f32.gmra.mxu3 %v2530_v44  ;;  %v1356_v55 = vadd.f32 %v4550_v53, %v1287_v12  ;;  %v6069_v12 = vld [vmem:[#allocation78_spill] sm:$0xff] }
 0x3df   :  { %v2321_v34 = vpop.f32.mrf.mxu1  ;;  %v864_v30 = vadd.f32 %v4548_v46, %v795_v29 }
 0x3e0   :  { %v2399_v59 = vmul.f32 %v4908_v25, %v2321_v34  ;;  %v5602_v50 = vpop.f32.mrf.mxu2  ;;  %v1420_v48 = vmul.f32 %v1356_v55, %v862_v37 }
 0x3e1   :  { %v2732_v11 = vpop.f32.mrf.mxu3 }
 0x3e2   :  { %v2468_v3 = vadd.f32 %v4926_v19, %v2399_v59  ;;  %v2733_v18 = vadd.f32 %v2732_v11, %v5518_v13  ;;  %v2477_v13 = vadd.f32 %v4752_v38, %v2408_v2  ;;  %v1978_v24 = vmul.f32 %v1914_v58, %v1420_v48  ;;  %v6067_v11 = vld [vmem:[#allocation75_spill] sm:$0xff] }
 0x3e4   :  { %2811 = vst.msk [vmem:[%s5768_s6 + $0x48] sm:$0xff] %vm2801_vm3, %v2733_v18  ;;  %v2532_v1 = vmul.f32 %v2468_v3, %v1974_v60  ;;  %v2541_v23 = vmul.f32 %v2477_v13, %v5326_v10  ;;  %v797_v60 = vmul.f32 %v4531_v22, %v6067_v11  ;;  %v1849_v18 = vmul.f32 %v4566_v0, %v5371_v35 }
 0x3e5   :  { %2681 = vmatmul.f32.gmra.mxu2 %v2539_v57 }
 0x3e6   :  { %2782 = vmatmul.f32.gmra.mxu3 %v2532_v1  ;;  %v1360_v1 = vadd.f32 %v4550_v53, %v1291_v14  ;;  %v866_v36 = vadd.f32 %v4548_v46, %v797_v60  ;;  %v1918_v13 = vadd.f32 %v4572_v43, %v1849_v18 }
 0x3e7   :  { %v2324_v32 = vpop.f32.mrf.mxu1 }
 0x3e8   :  { %v2401_v27 = vmul.f32 %v4908_v25, %v2324_v32  ;;  %v5623_v9 = vpop.f32.mrf.mxu2  ;;  %v1424_v35 = vmul.f32 %v1360_v1, %v866_v36 }
 0x3e9   :  { %v2735_v33 = vpop.f32.mrf.mxu3 }
 0x3ea   :  { %v2470_v5 = vadd.f32 %v4926_v19, %v2401_v27  ;;  %v2736_v38 = vadd.f32 %v2735_v33, %v5539_v51  ;;  %v1289_v51 = vmul.f32 %v4534_v54, %v6064_v20  ;;  %v799_v27 = vmul.f32 %v4531_v22, %v6069_v12 }
 0x3eb   :  { %v1982_v56 = vmul.f32 %v1918_v13, %v1424_v35  ;;  %v1851_v33 = vmul.f32 %v4566_v0, %v5397_v61 }
 0x3ec   :  { %2812 = vst.msk [vmem:[%s5768_s6 + $0x50] sm:$0xff] %vm2801_vm3, %v2736_v38  ;;  %v2534_v42 = vmul.f32 %v2470_v5, %v1976_v62  ;;  %v1358_v7 = vadd.f32 %v4550_v53, %v1289_v51  ;;  %v1362_v5 = vadd.f32 %v4550_v53, %v1293_v6  ;;  %v868_v22 = vadd.f32 %v4548_v46, %v799_v27 }
 0x3ed   :  { %2684 = vmatmul.f32.gmra.mxu2 %v2541_v23  ;;  %v1920_v23 = vadd.f32 %v4572_v43, %v1851_v33 }
 0x3ee   :  { %2785 = vmatmul.f32.gmra.mxu3 %v2534_v42  ;;  %v1422_v28 = vmul.f32 %v1358_v7, %v864_v30  ;;  %v1426_v0 = vmul.f32 %v1362_v5, %v868_v22 }
 0x3ef   :  { %v2327_v15 = vpop.f32.mrf.mxu1 }
 0x3f0   :  { %v2403_v10 = vmul.f32 %v4908_v25, %v2327_v15  ;;  %v2637_v26 = vpop.f32.mrf.mxu2  ;;  %v1980_v3 = vmul.f32 %v1916_v16, %v1422_v28 }
 0x3f1   :  { %v2738_v44 = vpop.f32.mrf.mxu3 }
 0x3f2   :  { %v2472_v47 = vadd.f32 %v4926_v19, %v2403_v10  ;;  %v2739_v34 = vadd.f32 %v2738_v44, %v5560_v31 }
 0x3f4   :  { %2813 = vst.msk [vmem:[%s5768_s6 + $0x58] sm:$0xff] %vm2801_vm3, %v2739_v34  ;;  %v2536_v39 = vmul.f32 %v2472_v47, %v1978_v24 }
 0x3f6   :  { %2788 = vmatmul.f32.gmra.mxu3 %v2536_v39 }
 0x3f7   :  { %v2330_v59 = vpop.f32.mrf.mxu1 }
 0x3f8   :  { %v2405_v31 = vmul.f32 %v4908_v25, %v2330_v59  ;;  %v2640_v63 = vpop.f32.mrf.mxu2 }
 0x3f9   :  { %v2741_v17 = vpop.f32.mrf.mxu3 }
 0x3fa   :  { %v2474_v2 = vadd.f32 %v4926_v19, %v2405_v31  ;;  %v2742_v57 = vadd.f32 %v2741_v17, %v5581_v4 }
 0x3fc   :  { %2814 = vst.msk [vmem:[%s5768_s6 + $0x60] sm:$0xff] %vm2801_vm3, %v2742_v57  ;;  %v2538_v45 = vmul.f32 %v2474_v2, %v1980_v3 }
 0x3fe   :  { %2791 = vmatmul.f32.gmra.mxu3 %v2538_v45 }
 0x3ff   :  { %v2333_v32 = vpop.f32.mrf.mxu1 }
 0x400   :  { %v2407_v4 = vmul.f32 %v4908_v25, %v2333_v32  ;;  %v2643_v38 = vpop.f32.mrf.mxu2 }
 0x401   :  { %v2744_v41 = vpop.f32.mrf.mxu3 }
 0x402   :  { %v2476_v62 = vadd.f32 %v4926_v19, %v2407_v4  ;;  %v2745_v40 = vadd.f32 %v2744_v41, %v5602_v50  ;;  %v1984_v50 = vmul.f32 %v1920_v23, %v1426_v0 }
 0x404   :  { %2815 = vst.msk [vmem:[%s5768_s6 + $0x68] sm:$0xff] %vm2801_vm3, %v2745_v40  ;;  %v2540_v54 = vmul.f32 %v2476_v62, %v1982_v56 }
 0x406   :  { %2794 = vmatmul.f32.gmra.mxu3 %v2540_v54 }
 0x407   :  { %v2336_v55 = vpop.f32.mrf.mxu1 }
 0x408   :  { %v2409_v61 = vmul.f32 %v4908_v25, %v2336_v55  ;;  %v2646_v46 = vpop.f32.mrf.mxu2 }
 0x409   :  { %v2747_v42 = vpop.f32.mrf.mxu3 }
 0x40a   :  { %v2478_v53 = vadd.f32 %v4926_v19, %v2409_v61  ;;  %v2748_v37 = vadd.f32 %v2747_v42, %v5623_v9 }
 0x40c   :  { %2816 = vst.msk [vmem:[%s5768_s6 + $0x70] sm:$0xff] %vm2801_vm3, %v2748_v37  ;;  %v2542_v58 = vmul.f32 %v2478_v53, %v1984_v50 }
 0x40e   :  { %2797 = vmatmul.f32.gmra.mxu3 %v2542_v58 }
 0x410   :  { %v2649_v25 = vpop.f32.mrf.mxu2 }
 0x411   :  { %v2750_v43 = vpop.f32.mrf.mxu3 }
 0x412   :  { %v2751_v15 = vadd.f32 %v2750_v43, %v2637_v26 }
 0x414   :  { %2817 = vst.msk [vmem:[%s5768_s6 + $0x78] sm:$0xff] %vm2801_vm3, %v2751_v15 }
 0x418   :  { %v2652_v51 = vpop.f32.mrf.mxu2 }
 0x419   :  { %v2753_v48 = vpop.f32.mrf.mxu3 }
 0x41a   :  { %v2754_v19 = vadd.f32 %v2753_v48, %v2640_v63 }
 0x41c   :  { %2818 = vst.msk [vmem:[%s5768_s6 + $0x80] sm:$0xff] %vm2801_vm3, %v2754_v19 }
 0x420   :  { %v2655_v29 = vpop.f32.mrf.mxu2 }
 0x421   :  { %v2756_v9 = vpop.f32.mrf.mxu3 }
 0x422   :  { %v2757_v20 = vadd.f32 %v2756_v9, %v2643_v38 }
 0x424   :  { %2819 = vst.msk [vmem:[%s5768_s6 + $0x88] sm:$0xff] %vm2801_vm3, %v2757_v20 }
 0x428   :  { %v2658_v24 = vpop.f32.mrf.mxu2 }
 0x429   :  { %v2759_v10 = vpop.f32.mrf.mxu3 }
 0x42a   :  { %v2760_v49 = vadd.f32 %v2759_v10, %v2646_v46 }
 0x42c   :  { %2820 = vst.msk [vmem:[%s5768_s6 + $0x90] sm:$0xff] %vm2801_vm3, %v2760_v49 }
 0x430   :  { %v2661_v34 = vpop.f32.mrf.mxu2 }
 0x431   :  { %v2762_v26 = vpop.f32.mrf.mxu3 }
 0x432   :  { %v2763_v44 = vadd.f32 %v2762_v26, %v2649_v25 }
 0x434   :  { %2821 = vst.msk [vmem:[%s5768_s6 + $0x98] sm:$0xff] %vm2801_vm3, %v2763_v44 }
 0x438   :  { %v2664_v59 = vpop.f32.mrf.mxu2 }
 0x439   :  { %v2765_v52 = vpop.f32.mrf.mxu3 }
 0x43a   :  { %v2766_v47 = vadd.f32 %v2765_v52, %v2652_v51 }
 0x43c   :  { %2822 = vst.msk [vmem:[%s5768_s6 + $0xa0] sm:$0xff] %vm2801_vm3, %v2766_v47 }
 0x440   :  { %v2667_v14 = vpop.f32.mrf.mxu2 }
 0x441   :  { %v2768_v7 = vpop.f32.mrf.mxu3 }
 0x442   :  { %v2769_v39 = vadd.f32 %v2768_v7, %v2655_v29 }
 0x444   :  { %2823 = vst.msk [vmem:[%s5768_s6 + $0xa8] sm:$0xff] %vm2801_vm3, %v2769_v39 }
 0x448   :  { %v2670_v60 = vpop.f32.mrf.mxu2 }
 0x449   :  { %v2771_v30 = vpop.f32.mrf.mxu3 }
 0x44a   :  { %v2772_v16 = vadd.f32 %v2771_v30, %v2658_v24 }
 0x44c   :  { %2824 = vst.msk [vmem:[%s5768_s6 + $0xb0] sm:$0xff] %vm2801_vm3, %v2772_v16 }
 0x450   :  { %v2673_v18 = vpop.f32.mrf.mxu2 }
 0x451   :  { %v2774_v28 = vpop.f32.mrf.mxu3 }
 0x452   :  { %v2775_v21 = vadd.f32 %v2774_v28, %v2661_v34 }
 0x454   :  { %2825 = vst.msk [vmem:[%s5768_s6 + $0xb8] sm:$0xff] %vm2801_vm3, %v2775_v21 }
 0x458   :  { %v2676_v45 = vpop.f32.mrf.mxu2 }
 0x459   :  { %v2777_v31 = vpop.f32.mrf.mxu3 }
 0x45a   :  { %v2778_v11 = vadd.f32 %v2777_v31, %v2664_v59 }
 0x45c   :  { %2826 = vst.msk [vmem:[%s5768_s6 + $0xc0] sm:$0xff] %vm2801_vm3, %v2778_v11 }
 0x460   :  { %v2679_v32 = vpop.f32.mrf.mxu2 }
 0x461   :  { %v2780_v17 = vpop.f32.mrf.mxu3 }
 0x462   :  { %v2781_v3 = vadd.f32 %v2780_v17, %v2667_v14 }
 0x464   :  { %2827 = vst.msk [vmem:[%s5768_s6 + $0xc8] sm:$0xff] %vm2801_vm3, %v2781_v3 }
 0x468   :  { %v2682_v6 = vpop.f32.mrf.mxu2 }
 0x469   :  { %v2783_v2 = vpop.f32.mrf.mxu3 }
 0x46a   :  { %v2784_v57 = vadd.f32 %v2783_v2, %v2670_v60 }
 0x46c   :  { %2828 = vst.msk [vmem:[%s5768_s6 + $0xd0] sm:$0xff] %vm2801_vm3, %v2784_v57 }
 0x470   :  { %v2685_v27 = vpop.f32.mrf.mxu2 }
 0x471   :  { %v2786_v63 = vpop.f32.mrf.mxu3 }
 0x472   :  { %v2787_v1 = vadd.f32 %v2786_v63, %v2673_v18 }
 0x474   :  { %2829 = vst.msk [vmem:[%s5768_s6 + $0xd8] sm:$0xff] %vm2801_vm3, %v2787_v1 }
 0x479   :  { %v2789_v36 = vpop.f32.mrf.mxu3 }
 0x47a   :  { %v2790_v13 = vadd.f32 %v2789_v36, %v2676_v45 }
 0x47c   :  { %2830 = vst.msk [vmem:[%s5768_s6 + $0xe0] sm:$0xff] %vm2801_vm3, %v2790_v13 }
 0x481   :  { %v2792_v35 = vpop.f32.mrf.mxu3 }
 0x482   :  { %v2793_v8 = vadd.f32 %v2792_v35, %v2679_v32 }
 0x484   :  { %2831 = vst.msk [vmem:[%s5768_s6 + $0xe8] sm:$0xff] %vm2801_vm3, %v2793_v8 }
 0x489   :  { %v2795_v4 = vpop.f32.mrf.mxu3 }
 0x48a   :  { %v2796_v12 = vadd.f32 %v2795_v4, %v2682_v6 }
 0x48c   :  { %2832 = vst.msk [vmem:[%s5768_s6 + $0xf0] sm:$0xff] %vm2801_vm3, %v2796_v12 }
 0x491   :  { %v2798_v41 = vpop.f32.mrf.mxu3 }
 0x492   :  { %v2799_v56 = vadd.f32 %v2798_v41, %v2685_v27 }
 0x494   :  { %2833 = vst.msk [vmem:[%s5768_s6 + $0xf8] sm:$0xff] %vm2801_vm3, %v2799_v56 }

</bundles_post_ra>
